<compile_context>
chip_gen: v7x
topology: tpu7x:2x2x1
jax: 0.10.0
libtpu: 0.0.40
codegen_flags: <defaults>
</compile_context>

<pallas_src>
import functools

import jax
import jax.numpy as jnp
from jax import lax
from jax.experimental import pallas as pl
from jax.experimental.pallas import tpu as pltpu


def _round_up(x, m):
    return (x + m - 1) // m * m


def _pad_rows(a, n_pad):
    n = a.shape[0]
    if n_pad == n:
        return a
    return jnp.pad(a, ((0, n_pad - n),) + ((0, 0),) * (a.ndim - 1))


def _tpu_vmem_capacity():
    try:
        info = pltpu.get_tpu_info()
        return int(getattr(info, "vmem_capacity_bytes", 0))
    except Exception:
        return 0


def _vmem_profile():
    """(matmul_vmem_limit, matmul_tile_n, rec_vmem_limit, rec_pipeline_budget)."""
    cap = _tpu_vmem_capacity()
    if cap >= 100 * 1024 * 1024:          # v5e / v6e: 128 MiB physical VMEM
        matmul_limit, tile_n = 64 * 1024 * 1024, 1024
        rec_limit = 64 * 1024 * 1024
    else:                                  # v7x (64 MiB) or unknown: stay safe
        matmul_limit, tile_n = 32 * 1024 * 1024, 512
        rec_limit = 32 * 1024 * 1024
    return matmul_limit, tile_n, rec_limit, int(rec_limit * 0.6)


# ----------------------------------------------------------------------------
# Hoisted input projection:  gx = x @ W_ih^T + (b_ih + b_hh)   -> bf16 output
# One large row-tiled bf16 matmul instead of T tiny matmuls in the recurrence.
# ----------------------------------------------------------------------------
def _proj_kernel(x_ref, w_ref, b_ref, o_ref):
    o_ref[...] = (
        jnp.dot(x_ref[...], w_ref[...], preferred_element_type=jnp.float32)
        + b_ref[...]
    ).astype(o_ref.dtype)


def input_projection(x_flat, w_t, bias):
    """(N, D) @ (D, G) + bias -> (N, G) bfloat16, tiled over rows."""
    N, D = x_flat.shape
    G = w_t.shape[1]
    vmem_limit, max_tile_n, _, _ = _vmem_profile()
    tile_n = min(max_tile_n, _round_up(N, 8))
    n_pad = _round_up(N, tile_n)
    x_p = _pad_rows(x_flat.astype(jnp.bfloat16), n_pad)

    out = pl.pallas_call(
        _proj_kernel,
        out_shape=jax.ShapeDtypeStruct((n_pad, G), jnp.bfloat16),
        grid=(n_pad // tile_n,),
        in_specs=[
            pl.BlockSpec((tile_n, D), lambda i: (i, 0)),
            pl.BlockSpec((D, G), lambda i: (0, 0)),
            pl.BlockSpec((1, G), lambda i: (0, 0)),
        ],
        out_specs=pl.BlockSpec((tile_n, G), lambda i: (i, 0)),
        compiler_params=pltpu.CompilerParams(
            dimension_semantics=("parallel",),
            vmem_limit_bytes=vmem_limit,
        ),
    )(x_p, w_t.astype(jnp.bfloat16), bias.astype(jnp.float32))
    return out[:N]


# ----------------------------------------------------------------------------
# LSTM recurrence over precomputed input gates (batch-block x time-chunk grid).
# Gate order matches PyTorch: [i, f, g, o].  H is padded to a multiple of 128
# by the caller so gate slices are lane-aligned.
# ----------------------------------------------------------------------------
def _lstm_rec_kernel(h0_ref, c0_ref, gx_ref, whh_ref,
                     y_ref, hn_ref, cn_ref,
                     h_sc, c_sc, *, hidden_size, tile_t, seq_len, unroll):
    H = hidden_size
    t_idx = pl.program_id(1)

    @pl.when(t_idx == 0)
    def _():
        h_sc[...] = h0_ref[...]
        c_sc[...] = c0_ref[...]

    t0 = t_idx * tile_t

    def cell(t, masked):
        h_prev = h_sc[...]
        c_prev = c_sc[...]
        # Only the small recurrent matmul remains in the serial chain.
        # Both MXU operands are bf16; accumulation stays f32.
        gates = gx_ref[t].astype(jnp.float32) + jnp.dot(
            h_prev.astype(jnp.bfloat16), whh_ref[...],
            preferred_element_type=jnp.float32)
        i_g = jax.nn.sigmoid(gates[:, 0 * H:1 * H])
        f_g = jax.nn.sigmoid(gates[:, 1 * H:2 * H])
        g_g = jnp.tanh(gates[:, 2 * H:3 * H])
        o_g = jax.nn.sigmoid(gates[:, 3 * H:4 * H])

        c_new = f_g * c_prev + i_g * g_g
        h_new = o_g * jnp.tanh(c_new)
        if masked:
            valid = (t0 + t) < seq_len        # only the padded tail chunk
            c_sc[...] = jnp.where(valid, c_new, c_prev)
            h_sc[...] = jnp.where(valid, h_new, h_prev)
        else:
            c_sc[...] = c_new
            h_sc[...] = h_new
        y_ref[t] = h_new.astype(y_ref.dtype)

    chunk_is_full = (t0 + tile_t) <= seq_len

    @pl.when(chunk_is_full)                   # hot path: no per-step masking
    def _():
        def step(t, carry):
            cell(t, masked=False)
            return carry
        lax.fori_loop(0, tile_t, step, 0, unroll=unroll)

    @pl.when(jnp.logical_not(chunk_is_full))  # padded tail chunk only
    def _():
        def step(t, carry):
            cell(t, masked=True)
            return carry
        lax.fori_loop(0, tile_t, step, 0, unroll=unroll)

    hn_ref[...] = h_sc[...]
    cn_ref[...] = c_sc[...]


def lstm_recurrence(gx_tm, h0, c0, whh_t, *, max_tile_t=128):
    """Sequential LSTM recurrence over precomputed input gates.

    gx_tm : (T, Bp, 4Hp) bf16  == x @ W_ih^T + b_ih + b_hh (padded layout)
    h0,c0 : (Bp, Hp) f32
    whh_t : (Hp, 4Hp)
    returns y (T, Bp, Hp) bf16, h_n (Bp, Hp) f32, c_n (Bp, Hp) f32
    """
    T, Bp, G = gx_tm.shape
    Hp = h0.shape[-1]
    _, _, rec_limit, rec_budget = _vmem_profile()

    # Batch-block "parallel" axis (second TensorCore on v7x when B is large).
    b_blocks = 2 if (Bp >= 16 and Bp % 16 == 0) else 1
    Bb = Bp // b_blocks

    # VMEM-adaptive time chunk: double-buffered bf16 gx/y chunks + bf16 W_hh.
    whh_bytes = Hp * 4 * Hp * 2
    fixed = whh_bytes + 6 * Bb * Hp * 4              # h/c scratch, h0/c0, hn/cn
    per_t = 2 * (Bb * 4 * Hp * 2) + 2 * (Bb * Hp * 2)
    avail = max(rec_budget - fixed, per_t)
    tile_t = int(max(1, min(max_tile_t, T, avail // per_t)))
    t_pad = _round_up(T, tile_t)
    gx_p = _pad_rows(gx_tm.astype(jnp.bfloat16), t_pad)

    # Unroll adapts to vreg pressure of one in-flight step's (Bb, 4Hp) gates.
    per_step_bytes = Bb * 4 * Hp * 4
    if tile_t <= 8:
        unroll = True
    elif per_step_bytes <= 16 * 1024:
        unroll = min(8, tile_t)
    elif per_step_bytes <= 32 * 1024:
        unroll = min(4, tile_t)
    else:
        unroll = min(2, tile_t)

    kernel = functools.partial(
        _lstm_rec_kernel, hidden_size=Hp, tile_t=tile_t, seq_len=T,
        unroll=unroll)

    y, hn, cn = pl.pallas_call(
        kernel,
        out_shape=(
            jax.ShapeDtypeStruct((t_pad, Bp, Hp), jnp.bfloat16),
            jax.ShapeDtypeStruct((Bp, Hp), jnp.float32),
            jax.ShapeDtypeStruct((Bp, Hp), jnp.float32),
        ),
        grid=(b_blocks, t_pad // tile_t),
        in_specs=[
            pl.BlockSpec((Bb, Hp), lambda b, t: (b, 0)),
            pl.BlockSpec((Bb, Hp), lambda b, t: (b, 0)),
            pl.BlockSpec((tile_t, Bb, G), lambda b, t: (t, b, 0)),
            pl.BlockSpec((Hp, G), lambda b, t: (0, 0)),
        ],
        out_specs=(
            pl.BlockSpec((tile_t, Bb, Hp), lambda b, t: (t, b, 0)),
            pl.BlockSpec((Bb, Hp), lambda b, t: (b, 0)),
            pl.BlockSpec((Bb, Hp), lambda b, t: (b, 0)),
        ),
        scratch_shapes=[
            pltpu.VMEM((Bb, Hp), jnp.float32),   # h state (carried over time)
            pltpu.VMEM((Bb, Hp), jnp.float32),   # c state
        ],
        compiler_params=pltpu.CompilerParams(
            dimension_semantics=("parallel", "arbitrary"),
            vmem_limit_bytes=rec_limit,
        ),
    )(h0.astype(jnp.float32), c0.astype(jnp.float32), gx_p,
      whh_t.astype(jnp.bfloat16))
    return y[:T], hn, cn


# ----------------------------------------------------------------------------
# Output head: Linear(H, H) -> Tanh -> Linear(H, O), row-tiled, lane-dense out.
# ----------------------------------------------------------------------------
def _mlp_kernel(x_ref, w1_ref, b1_ref, w2_ref, b2_ref, o_ref):
    h = jnp.tanh(
        jnp.dot(x_ref[...], w1_ref[...], preferred_element_type=jnp.float32)
        + b1_ref[...])
    o_ref[...] = (
        jnp.dot(h.astype(w2_ref.dtype), w2_ref[...],
                preferred_element_type=jnp.float32)
        + b2_ref[...]
    ).astype(o_ref.dtype)


def mlp_head(x_flat, w1, b1, w2, b2):
    N, H = x_flat.shape
    O = w2.shape[0]
    vmem_limit, max_tile_n, _, _ = _vmem_profile()
    o_pad = _round_up(O, 128)                 # lane-dense stores in the kernel
    tile_n = min(max_tile_n, _round_up(N, 8))
    n_pad = _round_up(N, tile_n)

    x_p = _pad_rows(x_flat.astype(jnp.bfloat16), n_pad)
    w1_t = w1.T.astype(jnp.bfloat16)                               # (H, H)
    b1_r = b1.reshape(1, H).astype(jnp.float32)
    w2_t = jnp.zeros((H, o_pad), jnp.bfloat16).at[:, :O].set(
        w2.T.astype(jnp.bfloat16))
    b2_r = jnp.zeros((1, o_pad), jnp.float32).at[:, :O].set(
        b2.reshape(1, O).astype(jnp.float32))

    out = pl.pallas_call(
        _mlp_kernel,
        out_shape=jax.ShapeDtypeStruct((n_pad, o_pad), jnp.float32),
        grid=(n_pad // tile_n,),
        in_specs=[
            pl.BlockSpec((tile_n, H), lambda i: (i, 0)),
            pl.BlockSpec((H, H), lambda i: (0, 0)),
            pl.BlockSpec((1, H), lambda i: (0, 0)),
            pl.BlockSpec((H, o_pad), lambda i: (0, 0)),
            pl.BlockSpec((1, o_pad), lambda i: (0, 0)),
        ],
        out_specs=pl.BlockSpec((tile_n, o_pad), lambda i: (i, 0)),
        compiler_params=pltpu.CompilerParams(
            dimension_semantics=("parallel",),
            vmem_limit_bytes=vmem_limit,
        ),
    )(x_p, w1_t, b1_r, w2_t, b2_r)
    return out[:N, :O]


# ----------------------------------------------------------------------------
# Decoder forward (matches the PyTorch module semantics).
# ----------------------------------------------------------------------------
def decoder_forward(params, x, hidden_input):
    """x: (B, T, input_size); hidden_input: (h0, c0) each (num_layers, B, H).

    Returns (lstm_out, (h_n, c_n)) with lstm_out: (B, T, output_size).
    """
    h0_all, c0_all = hidden_input
    num_layers = h0_all.shape[0]
    B, T, _ = x.shape
    H = h0_all.shape[-1]
    Hp = _round_up(H, 128)   # lane-aligned gate slices in the recurrence
    Bp = _round_up(B, 8)     # full-sublane state / unmasked y stores

    layer_in = jnp.transpose(x, (1, 0, 2))              # (T, B, D) time-major
    if Bp != B:
        layer_in = jnp.pad(layer_in, ((0, 0), (0, Bp - B), (0, 0)))

    h_n, c_n = [], []
    for l in range(num_layers):
        p = params["lstm"][l]
        d_in = p["w_ih"].shape[1]
        D = layer_in.shape[-1]                          # == Hp for l > 0
        # Pad each PyTorch gate block [i,f,g,o] from H to Hp (and the feature
        # dims to match).  Padded weight rows/cols and padded initial state
        # are zero, so padded hidden units stay exactly 0 through time.
        w_ih = p["w_ih"].reshape(4, H, d_in)
        w_ih = jnp.pad(w_ih, ((0, 0), (0, Hp - H), (0, D - d_in)))
        w_ih = w_ih.reshape(4 * Hp, D)
        bias = (p["b_ih"] + p["b_hh"]).reshape(4, H)
        bias = jnp.pad(bias, ((0, 0), (0, Hp - H))).reshape(1, 4 * Hp)
        w_hh = p["w_hh"].reshape(4, H, H)
        w_hh = jnp.pad(w_hh, ((0, 0), (0, Hp - H), (0, Hp - H)))
        w_hh = w_hh.reshape(4 * Hp, Hp)
        h0 = jnp.pad(h0_all[l], ((0, Bp - B), (0, Hp - H)))
        c0 = jnp.pad(c0_all[l], ((0, Bp - B), (0, Hp - H)))

        gx = input_projection(layer_in.reshape(T * Bp, D), w_ih.T, bias)
        gx = gx.reshape(T, Bp, 4 * Hp)
        layer_in, h_l, c_l = lstm_recurrence(gx, h0, c0, w_hh.T)
        h_n.append(h_l[:B, :H])
        c_n.append(c_l[:B, :H])
    h_n = jnp.stack(h_n, axis=0)
    c_n = jnp.stack(c_n, axis=0)

    y = jnp.transpose(layer_in, (1, 0, 2))[:B, :, :H]   # (B, T, H)
    y_flat = y.reshape(B * T, H)
    out_flat = mlp_head(y_flat, params["out"]["w1"], params["out"]["b1"],
                        params["out"]["w2"], params["out"]["b2"])
    O = out_flat.shape[-1]
    lstm_out = out_flat.reshape(B, T, O)
    return lstm_out, (h_n, c_n)


def init_params(key, input_size, hidden_size, num_layers, output_size):
    keys = jax.random.split(key, 4 * num_layers + 4)
    lstm = []
    k = 0
    for l in range(num_layers):
        d_in = input_size if l == 0 else hidden_size
        lstm.append({
            "w_ih": 0.1 * jax.random.normal(keys[k + 0], (4 * hidden_size, d_in), jnp.float32),
            "w_hh": 0.1 * jax.random.normal(keys[k + 1], (4 * hidden_size, hidden_size), jnp.float32),
            "b_ih": 0.1 * jax.random.normal(keys[k + 2], (4 * hidden_size,), jnp.float32),
            "b_hh": 0.1 * jax.random.normal(keys[k + 3], (4 * hidden_size,), jnp.float32),
        })
        k += 4
    out = {
        "w1": 0.1 * jax.random.normal(keys[k + 0], (hidden_size, hidden_size), jnp.float32),
        "b1": 0.1 * jax.random.normal(keys[k + 1], (hidden_size,), jnp.float32),
        "w2": 0.1 * jax.random.normal(keys[k + 2], (output_size, hidden_size), jnp.float32),
        "b2": 0.1 * jax.random.normal(keys[k + 3], (output_size,), jnp.float32),
    }
    return {"lstm": lstm, "out": out}


if __name__ == "__main__":
    B, T = 2, 8
    input_size, hidden_size, num_layers, output_size = 16, 32, 2, 8

    key = jax.random.PRNGKey(0)
    k_p, k_x, k_h, k_c = jax.random.split(key, 4)

    params = init_params(k_p, input_size, hidden_size, num_layers, output_size)
    x = jax.random.normal(k_x, (B, T, input_size), jnp.float32)
    h0 = jax.random.normal(k_h, (num_layers, B, hidden_size), jnp.float32)
    c0 = jax.random.normal(k_c, (num_layers, B, hidden_size), jnp.float32)

    fwd = jax.jit(decoder_forward)
    lstm_out, (h_n, c_n) = fwd(params, x, (h0, c0))
    jax.block_until_ready((lstm_out, h_n, c_n))

    assert lstm_out.shape == (B, T, output_size)
    assert h_n.shape == (num_layers, B, hidden_size)
    assert c_n.shape == (num_layers, B, hidden_size)
    assert bool(jnp.all(jnp.isfinite(lstm_out)))
    assert bool(jnp.all(jnp.isfinite(h_n))) and bool(jnp.all(jnp.isfinite(c_n)))
    # TODO(synk): weight-stationary MXU driving (matmul_push_rhs/acc_lhs/pop)
    # for W_hh across timesteps is left unimplemented; bf16 re-streaming from
    # VMEM is used instead.
    print("KERNEL_OK")
</pallas_src>

<mosaic_0001>
module attributes {stable_mosaic.version = 11 : i64} {
  func.func @_proj_kernel(%arg0: i32, %arg1: memref<64x128xbf16, #tpu.memory_space<vmem>>, %arg2: memref<128x512xbf16, #tpu.memory_space<vmem>>, %arg3: memref<1x512xf32, #tpu.memory_space<vmem>>, %arg4: memref<64x512xbf16, #tpu.memory_space<vmem>>) attributes {dimension_semantics = [#tpu.dimension_semantics<parallel>], iteration_bounds = array<i64: 1>, scalar_prefetch = 0 : i64, scratch_operands = 0 : i64, tpu.core_type = #tpu.core_type<tc>, window_params = [{transform_indices = @transform_0, window_bounds = array<i64: 64, 128>}, {pipeline_mode = #tpu.pipeline_mode<synchronous>, transform_indices = @transform_1, window_bounds = array<i64: 128, 512>}, {pipeline_mode = #tpu.pipeline_mode<synchronous>, transform_indices = @transform_2, window_bounds = array<i64: 1, 512>}, {transform_indices = @transform_3, window_bounds = array<i64: 64, 512>}]} {
    %c0 = arith.constant 0 : index
    %c0_0 = arith.constant 0 : index
    %0 = vector.load %arg1[%c0, %c0_0] : memref<64x128xbf16, #tpu.memory_space<vmem>>, vector<64x128xbf16>
    %c0_1 = arith.constant 0 : index
    %c0_2 = arith.constant 0 : index
    %1 = vector.load %arg2[%c0_1, %c0_2] : memref<128x512xbf16, #tpu.memory_space<vmem>>, vector<128x512xbf16>
    %cst = arith.constant dense<0.000000e+00> : vector<64x512xf32>
    %2 = tpu.matmul %0, %1, %cst {dimension_numbers = #tpu.dot_dimension_numbers<[1], [0], [0], [1], [0, 0, 1, 1], [], []>} : vector<64x128xbf16>, vector<128x512xbf16>, vector<64x512xf32> -> vector<64x512xf32>
    %c0_3 = arith.constant 0 : index
    %c0_4 = arith.constant 0 : index
    %3 = vector.load %arg3[%c0_3, %c0_4] : memref<1x512xf32, #tpu.memory_space<vmem>>, vector<1x512xf32>
    %4 = vector.broadcast %3 : vector<1x512xf32> to vector<64x512xf32>
    %5 = arith.addf %2, %4 : vector<64x512xf32>
    %6 = arith.truncf %5 : vector<64x512xf32> to vector<64x512xbf16>
    %c0_5 = arith.constant 0 : index
    %c0_6 = arith.constant 0 : index
    %7 = vector.load %arg4[%c0_5, %c0_6] : memref<64x512xbf16, #tpu.memory_space<vmem>>, vector<64x512xbf16>
    tpu.vector_store %arg4[%c0_5, %c0_6], %6 {strides = array<i32>} : memref<64x512xbf16, #tpu.memory_space<vmem>>, vector<64x512xbf16>,
    return
  }
  func.func @transform_0(%arg0: i32) -> (i32, i32) {
    %c0_i32 = arith.constant 0 : i32
    %c0_i32_0 = arith.constant 0 : i32
    return %arg0, %c0_i32 : i32, i32
  }
  func.func @transform_1(%arg0: i32) -> (i32, i32) {
    %c0_i32 = arith.constant 0 : i32
    %c0_i32_0 = arith.constant 0 : i32
    %c0_i32_1 = arith.constant 0 : i32
    return %c0_i32, %c0_i32_0 : i32, i32
  }
  func.func @transform_2(%arg0: i32) -> (i32, i32) {
    %c0_i32 = arith.constant 0 : i32
    %c0_i32_0 = arith.constant 0 : i32
    %c0_i32_1 = arith.constant 0 : i32
    return %c0_i32, %c0_i32_0 : i32, i32
  }
  func.func @transform_3(%arg0: i32) -> (i32, i32) {
    %c0_i32 = arith.constant 0 : i32
    %c0_i32_0 = arith.constant 0 : i32
    return %arg0, %c0_i32 : i32, i32
  }
}

module attributes {stable_mosaic.version = 11 : i64} {
  func.func @_proj_kernel(%arg0: i32, %arg1: memref<64x16xbf16, #tpu.memory_space<vmem>>, %arg2: memref<16x512xbf16, #tpu.memory_space<vmem>>, %arg3: memref<1x512xf32, #tpu.memory_space<vmem>>, %arg4: memref<64x512xbf16, #tpu.memory_space<vmem>>) attributes {dimension_semantics = [#tpu.dimension_semantics<parallel>], iteration_bounds = array<i64: 1>, scalar_prefetch = 0 : i64, scratch_operands = 0 : i64, tpu.core_type = #tpu.core_type<tc>, window_params = [{transform_indices = @transform_0, window_bounds = array<i64: 64, 16>}, {pipeline_mode = #tpu.pipeline_mode<synchronous>, transform_indices = @transform_1, window_bounds = array<i64: 16, 512>}, {pipeline_mode = #tpu.pipeline_mode<synchronous>, transform_indices = @transform_2, window_bounds = array<i64: 1, 512>}, {transform_indices = @transform_3, window_bounds = array<i64: 64, 512>}]} {
    %c0 = arith.constant 0 : index
    %c0_0 = arith.constant 0 : index
    %0 = vector.load %arg1[%c0, %c0_0] : memref<64x16xbf16, #tpu.memory_space<vmem>>, vector<64x16xbf16>
    %c0_1 = arith.constant 0 : index
    %c0_2 = arith.constant 0 : index
    %1 = vector.load %arg2[%c0_1, %c0_2] : memref<16x512xbf16, #tpu.memory_space<vmem>>, vector<16x512xbf16>
    %cst = arith.constant dense<0.000000e+00> : vector<64x512xf32>
    %2 = tpu.matmul %0, %1, %cst {dimension_numbers = #tpu.dot_dimension_numbers<[1], [0], [0], [1], [0, 0, 1, 1], [], []>} : vector<64x16xbf16>, vector<16x512xbf16>, vector<64x512xf32> -> vector<64x512xf32>
    %c0_3 = arith.constant 0 : index
    %c0_4 = arith.constant 0 : index
    %3 = vector.load %arg3[%c0_3, %c0_4] : memref<1x512xf32, #tpu.memory_space<vmem>>, vector<1x512xf32>
    %4 = vector.broadcast %3 : vector<1x512xf32> to vector<64x512xf32>
    %5 = arith.addf %2, %4 : vector<64x512xf32>
    %6 = arith.truncf %5 : vector<64x512xf32> to vector<64x512xbf16>
    %c0_5 = arith.constant 0 : index
    %c0_6 = arith.constant 0 : index
    %7 = vector.load %arg4[%c0_5, %c0_6] : memref<64x512xbf16, #tpu.memory_space<vmem>>, vector<64x512xbf16>
    tpu.vector_store %arg4[%c0_5, %c0_6], %6 {strides = array<i32>} : memref<64x512xbf16, #tpu.memory_space<vmem>>, vector<64x512xbf16>,
    return
  }
  func.func @transform_0(%arg0: i32) -> (i32, i32) {
    %c0_i32 = arith.constant 0 : i32
    %c0_i32_0 = arith.constant 0 : i32
    return %arg0, %c0_i32 : i32, i32
  }
  func.func @transform_1(%arg0: i32) -> (i32, i32) {
    %c0_i32 = arith.constant 0 : i32
    %c0_i32_0 = arith.constant 0 : i32
    %c0_i32_1 = arith.constant 0 : i32
    return %c0_i32, %c0_i32_0 : i32, i32
  }
  func.func @transform_2(%arg0: i32) -> (i32, i32) {
    %c0_i32 = arith.constant 0 : i32
    %c0_i32_0 = arith.constant 0 : i32
    %c0_i32_1 = arith.constant 0 : i32
    return %c0_i32, %c0_i32_0 : i32, i32
  }
  func.func @transform_3(%arg0: i32) -> (i32, i32) {
    %c0_i32 = arith.constant 0 : i32
    %c0_i32_0 = arith.constant 0 : i32
    return %arg0, %c0_i32 : i32, i32
  }
}

module attributes {stable_mosaic.version = 11 : i64} {
  func.func @_lstm_rec_kernel(%arg0: i32, %arg1: i32, %arg2: memref<8x128xf32, #tpu.memory_space<vmem>>, %arg3: memref<8x128xf32, #tpu.memory_space<vmem>>, %arg4: memref<8x8x512xbf16, #tpu.memory_space<vmem>>, %arg5: memref<128x512xbf16, #tpu.memory_space<vmem>>, %arg6: memref<8x8x128xbf16, #tpu.memory_space<vmem>>, %arg7: memref<8x128xf32, #tpu.memory_space<vmem>>, %arg8: memref<8x128xf32, #tpu.memory_space<vmem>>, %arg9: memref<8x128xf32, #tpu.memory_space<vmem>>, %arg10: memref<8x128xf32, #tpu.memory_space<vmem>>) attributes {dimension_semantics = [#tpu.dimension_semantics<parallel>, #tpu.dimension_semantics<arbitrary>], iteration_bounds = array<i64: 1, 1>, scalar_prefetch = 0 : i64, scratch_operands = 2 : i64, tpu.core_type = #tpu.core_type<tc>, window_params = [{transform_indices = @transform_0, window_bounds = array<i64: 8, 128>}, {transform_indices = @transform_1, window_bounds = array<i64: 8, 128>}, {transform_indices = @transform_2, window_bounds = array<i64: 8, 8, 512>}, {pipeline_mode = #tpu.pipeline_mode<synchronous>, transform_indices = @transform_3, window_bounds = array<i64: 128, 512>}, {transform_indices = @transform_4, window_bounds = array<i64: 8, 8, 128>}, {transform_indices = @transform_5, window_bounds = array<i64: 8, 128>}, {transform_indices = @transform_6, window_bounds = array<i64: 8, 128>}]} {
    %c0_i32 = arith.constant 0 : i32
    %0 = arith.cmpi eq, %arg1, %c0_i32 : i32
    %1 = arith.extui %0 : i1 to i32
    %c0_i32_0 = arith.constant 0 : i32
    %2 = arith.cmpi ne, %1, %c0_i32_0 : i32
    scf.if %2 {
      %c0_12 = arith.constant 0 : index
      %c0_13 = arith.constant 0 : index
      %15 = vector.load %arg2[%c0_12, %c0_13] : memref<8x128xf32, #tpu.memory_space<vmem>>, vector<8x128xf32>
      %c0_14 = arith.constant 0 : index
      %c0_15 = arith.constant 0 : index
      %16 = vector.load %arg9[%c0_14, %c0_15] : memref<8x128xf32, #tpu.memory_space<vmem>>, vector<8x128xf32>
      tpu.vector_store %arg9[%c0_14, %c0_15], %15 {strides = array<i32>} : memref<8x128xf32, #tpu.memory_space<vmem>>, vector<8x128xf32>,
      %c0_16 = arith.constant 0 : index
      %c0_17 = arith.constant 0 : index
      %17 = vector.load %arg3[%c0_16, %c0_17] : memref<8x128xf32, #tpu.memory_space<vmem>>, vector<8x128xf32>
      %c0_18 = arith.constant 0 : index
      %c0_19 = arith.constant 0 : index
      %18 = vector.load %arg10[%c0_18, %c0_19] : memref<8x128xf32, #tpu.memory_space<vmem>>, vector<8x128xf32>
      tpu.vector_store %arg10[%c0_18, %c0_19], %17 {strides = array<i32>} : memref<8x128xf32, #tpu.memory_space<vmem>>, vector<8x128xf32>,
    } else {
    }
    %c8_i32 = arith.constant 8 : i32
    %3 = arith.muli %arg1, %c8_i32 : i32
    %c8_i32_1 = arith.constant 8 : i32
    %4 = arith.addi %3, %c8_i32_1 : i32
    %c8_i32_2 = arith.constant 8 : i32
    %5 = arith.cmpi sle, %4, %c8_i32_2 : i32
    %6 = arith.extui %5 : i1 to i32
    %c0_i32_3 = arith.constant 0 : i32
    %7 = arith.cmpi ne, %6, %c0_i32_3 : i32
    scf.if %7 {
      %c0_i32_12 = arith.constant 0 : i32
      %c0_13 = arith.constant 0 : index
      %c0_14 = arith.constant 0 : index
      %15 = vector.load %arg9[%c0_13, %c0_14] : memref<8x128xf32, #tpu.memory_space<vmem>>, vector<8x128xf32>
      %c0_15 = arith.constant 0 : index
      %c0_16 = arith.constant 0 : index
      %16 = vector.load %arg10[%c0_15, %c0_16] : memref<8x128xf32, #tpu.memory_space<vmem>>, vector<8x128xf32>
      %17 = arith.index_cast %c0_i32_12 : i32 to index
      %c0_17 = arith.constant 0 : index
      %c0_18 = arith.constant 0 : index
      %18 = vector.load %arg4[%17, %c0_17, %c0_18] : memref<8x8x512xbf16, #tpu.memory_space<vmem>>, vector<1x8x512xbf16>
      %19 = vector.shape_cast %18 : vector<1x8x512xbf16> to vector<8x512xbf16>
      %20 = arith.extf %19 : vector<8x512xbf16> to vector<8x512xf32>
      %21 = arith.truncf %15 : vector<8x128xf32> to vector<8x128xbf16>
      %c0_19 = arith.constant 0 : index
      %c0_20 = arith.constant 0 : index
      %22 = vector.load %arg5[%c0_19, %c0_20] : memref<128x512xbf16, #tpu.memory_space<vmem>>, vector<128x512xbf16>
      %cst = arith.constant dense<0.000000e+00> : vector<8x512xf32>
      %23 = tpu.matmul %21, %22, %cst {dimension_numbers = #tpu.dot_dimension_numbers<[1], [0], [0], [1], [0, 0, 1, 1], [], []>} : vector<8x128xbf16>, vector<128x512xbf16>, vector<8x512xf32> -> vector<8x512xf32>
      %24 = arith.addf %20, %23 : vector<8x512xf32>
      %25 = vector.extract_strided_slice %24 {offsets = [0, 0], sizes = [8, 128], strides = [1, 1]} : vector<8x512xf32> to vector<8x128xf32>
      %26 = arith.negf %25 : vector<8x128xf32>
      %27 = math.exp %26 : vector<8x128xf32>
      %cst_21 = arith.constant 1.000000e+00 : f32
      %28 = vector.broadcast %cst_21 : f32 to vector<8x128xf32>
      %29 = arith.addf %28, %27 : vector<8x128xf32>
      %30 = arith.divf %28, %29 : vector<8x128xf32>
      %31 = vector.extract_strided_slice %24 {offsets = [0, 128], sizes = [8, 128], strides = [1, 1]} : vector<8x512xf32> to vector<8x128xf32>
      %32 = arith.negf %31 : vector<8x128xf32>
      %33 = math.exp %32 : vector<8x128xf32>
      %cst_22 = arith.constant 1.000000e+00 : f32
      %34 = vector.broadcast %cst_22 : f32 to vector<8x128xf32>
      %35 = arith.addf %34, %33 : vector<8x128xf32>
      %36 = arith.divf %34, %35 : vector<8x128xf32>
      %37 = vector.extract_strided_slice %24 {offsets = [0, 256], sizes = [8, 128], strides = [1, 1]} : vector<8x512xf32> to vector<8x128xf32>
      %38 = math.tanh %37 : vector<8x128xf32>
      %39 = vector.extract_strided_slice %24 {offsets = [0, 384], sizes = [8, 128], strides = [1, 1]} : vector<8x512xf32> to vector<8x128xf32>
      %40 = arith.negf %39 : vector<8x128xf32>
      %41 = math.exp %40 : vector<8x128xf32>
      %cst_23 = arith.constant 1.000000e+00 : f32
      %42 = vector.broadcast %cst_23 : f32 to vector<8x128xf32>
      %43 = arith.addf %42, %41 : vector<8x128xf32>
      %44 = arith.divf %42, %43 : vector<8x128xf32>
      %45 = arith.mulf %36, %16 : vector<8x128xf32>
      %46 = arith.mulf %30, %38 : vector<8x128xf32>
      %47 = arith.addf %45, %46 : vector<8x128xf32>
      %48 = math.tanh %47 : vector<8x128xf32>
      %49 = arith.mulf %44, %48 : vector<8x128xf32>
      %c0_24 = arith.constant 0 : index
      %c0_25 = arith.constant 0 : index
      %50 = vector.load %arg10[%c0_24, %c0_25] : memref<8x128xf32, #tpu.memory_space<vmem>>, vector<8x128xf32>
      tpu.vector_store %arg10[%c0_24, %c0_25], %47 {strides = array<i32>} : memref<8x128xf32, #tpu.memory_space<vmem>>, vector<8x128xf32>,
      %c0_26 = arith.constant 0 : index
      %c0_27 = arith.constant 0 : index
      %51 = vector.load %arg9[%c0_26, %c0_27] : memref<8x128xf32, #tpu.memory_space<vmem>>, vector<8x128xf32>
      tpu.vector_store %arg9[%c0_26, %c0_27], %49 {strides = array<i32>} : memref<8x128xf32, #tpu.memory_space<vmem>>, vector<8x128xf32>,
      %52 = arith.truncf %49 : vector<8x128xf32> to vector<8x128xbf16>
      %53 = arith.index_cast %c0_i32_12 : i32 to index
      %c0_28 = arith.constant 0 : index
      %c0_29 = arith.constant 0 : index
      %54 = vector.load %arg6[%53, %c0_28, %c0_29] : memref<8x8x128xbf16, #tpu.memory_space<vmem>>, vector<1x8x128xbf16>
      %55 = vector.shape_cast %54 : vector<1x8x128xbf16> to vector<8x128xbf16>
      %56 = vector.shape_cast %52 : vector<8x128xbf16> to vector<1x8x128xbf16>
      tpu.vector_store %arg6[%53, %c0_28, %c0_29], %56 {strides = array<i32>} : memref<8x8x128xbf16, #tpu.memory_space<vmem>>, vector<1x8x128xbf16>,
      %c1_i32 = arith.constant 1 : i32
      %c0_30 = arith.constant 0 : index
      %c0_31 = arith.constant 0 : index
      %57 = vector.load %arg9[%c0_30, %c0_31] : memref<8x128xf32, #tpu.memory_space<vmem>>, vector<8x128xf32>
      %c0_32 = arith.constant 0 : index
      %c0_33 = arith.constant 0 : index
      %58 = vector.load %arg10[%c0_32, %c0_33] : memref<8x128xf32, #tpu.memory_space<vmem>>, vector<8x128xf32>
      %59 = arith.index_cast %c1_i32 : i32 to index
      %c0_34 = arith.constant 0 : index
      %c0_35 = arith.constant 0 : index
      %60 = vector.load %arg4[%59, %c0_34, %c0_35] : memref<8x8x512xbf16, #tpu.memory_space<vmem>>, vector<1x8x512xbf16>
      %61 = vector.shape_cast %60 : vector<1x8x512xbf16> to vector<8x512xbf16>
      %62 = arith.extf %61 : vector<8x512xbf16> to vector<8x512xf32>
      %63 = arith.truncf %57 : vector<8x128xf32> to vector<8x128xbf16>
      %c0_36 = arith.constant 0 : index
      %c0_37 = arith.constant 0 : index
      %64 = vector.load %arg5[%c0_36, %c0_37] : memref<128x512xbf16, #tpu.memory_space<vmem>>, vector<128x512xbf16>
      %cst_38 = arith.constant dense<0.000000e+00> : vector<8x512xf32>
      %65 = tpu.matmul %63, %64, %cst_38 {dimension_numbers = #tpu.dot_dimension_numbers<[1], [0], [0], [1], [0, 0, 1, 1], [], []>} : vector<8x128xbf16>, vector<128x512xbf16>, vector<8x512xf32> -> vector<8x512xf32>
      %66 = arith.addf %62, %65 : vector<8x512xf32>
      %67 = vector.extract_strided_slice %66 {offsets = [0, 0], sizes = [8, 128], strides = [1, 1]} : vector<8x512xf32> to vector<8x128xf32>
      %68 = arith.negf %67 : vector<8x128xf32>
      %69 = math.exp %68 : vector<8x128xf32>
      %cst_39 = arith.constant 1.000000e+00 : f32
      %70 = vector.broadcast %cst_39 : f32 to vector<8x128xf32>
      %71 = arith.addf %70, %69 : vector<8x128xf32>
      %72 = arith.divf %70, %71 : vector<8x128xf32>
      %73 = vector.extract_strided_slice %66 {offsets = [0, 128], sizes = [8, 128], strides = [1, 1]} : vector<8x512xf32> to vector<8x128xf32>
      %74 = arith.negf %73 : vector<8x128xf32>
      %75 = math.exp %74 : vector<8x128xf32>
      %cst_40 = arith.constant 1.000000e+00 : f32
      %76 = vector.broadcast %cst_40 : f32 to vector<8x128xf32>
      %77 = arith.addf %76, %75 : vector<8x128xf32>
      %78 = arith.divf %76, %77 : vector<8x128xf32>
      %79 = vector.extract_strided_slice %66 {offsets = [0, 256], sizes = [8, 128], strides = [1, 1]} : vector<8x512xf32> to vector<8x128xf32>
      %80 = math.tanh %79 : vector<8x128xf32>
      %81 = vector.extract_strided_slice %66 {offsets = [0, 384], sizes = [8, 128], strides = [1, 1]} : vector<8x512xf32> to vector<8x128xf32>
      %82 = arith.negf %81 : vector<8x128xf32>
      %83 = math.exp %82 : vector<8x128xf32>
      %cst_41 = arith.constant 1.000000e+00 : f32
      %84 = vector.broadcast %cst_41 : f32 to vector<8x128xf32>
      %85 = arith.addf %84, %83 : vector<8x128xf32>
      %86 = arith.divf %84, %85 : vector<8x128xf32>
      %87 = arith.mulf %78, %58 : vector<8x128xf32>
      %88 = arith.mulf %72, %80 : vector<8x128xf32>
      %89 = arith.addf %87, %88 : vector<8x128xf32>
      %90 = math.tanh %89 : vector<8x128xf32>
      %91 = arith.mulf %86, %90 : vector<8x128xf32>
      %c0_42 = arith.constant 0 : index
      %c0_43 = arith.constant 0 : index
      %92 = vector.load %arg10[%c0_42, %c0_43] : memref<8x128xf32, #tpu.memory_space<vmem>>, vector<8x128xf32>
      tpu.vector_store %arg10[%c0_42, %c0_43], %89 {strides = array<i32>} : memref<8x128xf32, #tpu.memory_space<vmem>>, vector<8x128xf32>,
      %c0_44 = arith.constant 0 : index
      %c0_45 = arith.constant 0 : index
      %93 = vector.load %arg9[%c0_44, %c0_45] : memref<8x128xf32, #tpu.memory_space<vmem>>, vector<8x128xf32>
      tpu.vector_store %arg9[%c0_44, %c0_45], %91 {strides = array<i32>} : memref<8x128xf32, #tpu.memory_space<vmem>>, vector<8x128xf32>,
      %94 = arith.truncf %91 : vector<8x128xf32> to vector<8x128xbf16>
      %95 = arith.index_cast %c1_i32 : i32 to index
      %c0_46 = arith.constant 0 : index
      %c0_47 = arith.constant 0 : index
      %96 = vector.load %arg6[%95, %c0_46, %c0_47] : memref<8x8x128xbf16, #tpu.memory_space<vmem>>, vector<1x8x128xbf16>
      %97 = vector.shape_cast %96 : vector<1x8x128xbf16> to vector<8x128xbf16>
      %98 = vector.shape_cast %94 : vector<8x128xbf16> to vector<1x8x128xbf16>
      tpu.vector_store %arg6[%95, %c0_46, %c0_47], %98 {strides = array<i32>} : memref<8x8x128xbf16, #tpu.memory_space<vmem>>, vector<1x8x128xbf16>,
      %c2_i32 = arith.constant 2 : i32
      %c0_48 = arith.constant 0 : index
      %c0_49 = arith.constant 0 : index
      %99 = vector.load %arg9[%c0_48, %c0_49] : memref<8x128xf32, #tpu.memory_space<vmem>>, vector<8x128xf32>
      %c0_50 = arith.constant 0 : index
      %c0_51 = arith.constant 0 : index
      %100 = vector.load %arg10[%c0_50, %c0_51] : memref<8x128xf32, #tpu.memory_space<vmem>>, vector<8x128xf32>
      %101 = arith.index_cast %c2_i32 : i32 to index
      %c0_52 = arith.constant 0 : index
      %c0_53 = arith.constant 0 : index
      %102 = vector.load %arg4[%101, %c0_52, %c0_53] : memref<8x8x512xbf16, #tpu.memory_space<vmem>>, vector<1x8x512xbf16>
      %103 = vector.shape_cast %102 : vector<1x8x512xbf16> to vector<8x512xbf16>
      %104 = arith.extf %103 : vector<8x512xbf16> to vector<8x512xf32>
      %105 = arith.truncf %99 : vector<8x128xf32> to vector<8x128xbf16>
      %c0_54 = arith.constant 0 : index
      %c0_55 = arith.constant 0 : index
      %106 = vector.load %arg5[%c0_54, %c0_55] : memref<128x512xbf16, #tpu.memory_space<vmem>>, vector<128x512xbf16>
      %cst_56 = arith.constant dense<0.000000e+00> : vector<8x512xf32>
      %107 = tpu.matmul %105, %106, %cst_56 {dimension_numbers = #tpu.dot_dimension_numbers<[1], [0], [0], [1], [0, 0, 1, 1], [], []>} : vector<8x128xbf16>, vector<128x512xbf16>, vector<8x512xf32> -> vector<8x512xf32>
      %108 = arith.addf %104, %107 : vector<8x512xf32>
      %109 = vector.extract_strided_slice %108 {offsets = [0, 0], sizes = [8, 128], strides = [1, 1]} : vector<8x512xf32> to vector<8x128xf32>
      %110 = arith.negf %109 : vector<8x128xf32>
      %111 = math.exp %110 : vector<8x128xf32>
      %cst_57 = arith.constant 1.000000e+00 : f32
      %112 = vector.broadcast %cst_57 : f32 to vector<8x128xf32>
      %113 = arith.addf %112, %111 : vector<8x128xf32>
      %114 = arith.divf %112, %113 : vector<8x128xf32>
      %115 = vector.extract_strided_slice %108 {offsets = [0, 128], sizes = [8, 128], strides = [1, 1]} : vector<8x512xf32> to vector<8x128xf32>
      %116 = arith.negf %115 : vector<8x128xf32>
      %117 = math.exp %116 : vector<8x128xf32>
      %cst_58 = arith.constant 1.000000e+00 : f32
      %118 = vector.broadcast %cst_58 : f32 to vector<8x128xf32>
      %119 = arith.addf %118, %117 : vector<8x128xf32>
      %120 = arith.divf %118, %119 : vector<8x128xf32>
      %121 = vector.extract_strided_slice %108 {offsets = [0, 256], sizes = [8, 128], strides = [1, 1]} : vector<8x512xf32> to vector<8x128xf32>
      %122 = math.tanh %121 : vector<8x128xf32>
      %123 = vector.extract_strided_slice %108 {offsets = [0, 384], sizes = [8, 128], strides = [1, 1]} : vector<8x512xf32> to vector<8x128xf32>
      %124 = arith.negf %123 : vector<8x128xf32>
      %125 = math.exp %124 : vector<8x128xf32>
      %cst_59 = arith.constant 1.000000e+00 : f32
      %126 = vector.broadcast %cst_59 : f32 to vector<8x128xf32>
      %127 = arith.addf %126, %125 : vector<8x128xf32>
      %128 = arith.divf %126, %127 : vector<8x128xf32>
      %129 = arith.mulf %120, %100 : vector<8x128xf32>
      %130 = arith.mulf %114, %122 : vector<8x128xf32>
      %131 = arith.addf %129, %130 : vector<8x128xf32>
      %132 = math.tanh %131 : vector<8x128xf32>
      %133 = arith.mulf %128, %132 : vector<8x128xf32>
      %c0_60 = arith.constant 0 : index
      %c0_61 = arith.constant 0 : index
      %134 = vector.load %arg10[%c0_60, %c0_61] : memref<8x128xf32, #tpu.memory_space<vmem>>, vector<8x128xf32>
      tpu.vector_store %arg10[%c0_60, %c0_61], %131 {strides = array<i32>} : memref<8x128xf32, #tpu.memory_space<vmem>>, vector<8x128xf32>,
      %c0_62 = arith.constant 0 : index
      %c0_63 = arith.constant 0 : index
      %135 = vector.load %arg9[%c0_62, %c0_63] : memref<8x128xf32, #tpu.memory_space<vmem>>, vector<8x128xf32>
      tpu.vector_store %arg9[%c0_62, %c0_63], %133 {strides = array<i32>} : memref<8x128xf32, #tpu.memory_space<vmem>>, vector<8x128xf32>,
      %136 = arith.truncf %133 : vector<8x128xf32> to vector<8x128xbf16>
      %137 = arith.index_cast %c2_i32 : i32 to index
      %c0_64 = arith.constant 0 : index
      %c0_65 = arith.constant 0 : index
      %138 = vector.load %arg6[%137, %c0_64, %c0_65] : memref<8x8x128xbf16, #tpu.memory_space<vmem>>, vector<1x8x128xbf16>
      %139 = vector.shape_cast %138 : vector<1x8x128xbf16> to vector<8x128xbf16>
      %140 = vector.shape_cast %136 : vector<8x128xbf16> to vector<1x8x128xbf16>
      tpu.vector_store %arg6[%137, %c0_64, %c0_65], %140 {strides = array<i32>} : memref<8x8x128xbf16, #tpu.memory_space<vmem>>, vector<1x8x128xbf16>,
      %c3_i32 = arith.constant 3 : i32
      %c0_66 = arith.constant 0 : index
      %c0_67 = arith.constant 0 : index
      %141 = vector.load %arg9[%c0_66, %c0_67] : memref<8x128xf32, #tpu.memory_space<vmem>>, vector<8x128xf32>
      %c0_68 = arith.constant 0 : index
      %c0_69 = arith.constant 0 : index
      %142 = vector.load %arg10[%c0_68, %c0_69] : memref<8x128xf32, #tpu.memory_space<vmem>>, vector<8x128xf32>
      %143 = arith.index_cast %c3_i32 : i32 to index
      %c0_70 = arith.constant 0 : index
      %c0_71 = arith.constant 0 : index
      %144 = vector.load %arg4[%143, %c0_70, %c0_71] : memref<8x8x512xbf16, #tpu.memory_space<vmem>>, vector<1x8x512xbf16>
      %145 = vector.shape_cast %144 : vector<1x8x512xbf16> to vector<8x512xbf16>
      %146 = arith.extf %145 : vector<8x512xbf16> to vector<8x512xf32>
      %147 = arith.truncf %141 : vector<8x128xf32> to vector<8x128xbf16>
      %c0_72 = arith.constant 0 : index
      %c0_73 = arith.constant 0 : index
      %148 = vector.load %arg5[%c0_72, %c0_73] : memref<128x512xbf16, #tpu.memory_space<vmem>>, vector<128x512xbf16>
      %cst_74 = arith.constant dense<0.000000e+00> : vector<8x512xf32>
      %149 = tpu.matmul %147, %148, %cst_74 {dimension_numbers = #tpu.dot_dimension_numbers<[1], [0], [0], [1], [0, 0, 1, 1], [], []>} : vector<8x128xbf16>, vector<128x512xbf16>, vector<8x512xf32> -> vector<8x512xf32>
      %150 = arith.addf %146, %149 : vector<8x512xf32>
      %151 = vector.extract_strided_slice %150 {offsets = [0, 0], sizes = [8, 128], strides = [1, 1]} : vector<8x512xf32> to vector<8x128xf32>
      %152 = arith.negf %151 : vector<8x128xf32>
      %153 = math.exp %152 : vector<8x128xf32>
      %cst_75 = arith.constant 1.000000e+00 : f32
      %154 = vector.broadcast %cst_75 : f32 to vector<8x128xf32>
      %155 = arith.addf %154, %153 : vector<8x128xf32>
      %156 = arith.divf %154, %155 : vector<8x128xf32>
      %157 = vector.extract_strided_slice %150 {offsets = [0, 128], sizes = [8, 128], strides = [1, 1]} : vector<8x512xf32> to vector<8x128xf32>
      %158 = arith.negf %157 : vector<8x128xf32>
      %159 = math.exp %158 : vector<8x128xf32>
      %cst_76 = arith.constant 1.000000e+00 : f32
      %160 = vector.broadcast %cst_76 : f32 to vector<8x128xf32>
      %161 = arith.addf %160, %159 : vector<8x128xf32>
      %162 = arith.divf %160, %161 : vector<8x128xf32>
      %163 = vector.extract_strided_slice %150 {offsets = [0, 256], sizes = [8, 128], strides = [1, 1]} : vector<8x512xf32> to vector<8x128xf32>
      %164 = math.tanh %163 : vector<8x128xf32>
      %165 = vector.extract_strided_slice %150 {offsets = [0, 384], sizes = [8, 128], strides = [1, 1]} : vector<8x512xf32> to vector<8x128xf32>
      %166 = arith.negf %165 : vector<8x128xf32>
      %167 = math.exp %166 : vector<8x128xf32>
      %cst_77 = arith.constant 1.000000e+00 : f32
      %168 = vector.broadcast %cst_77 : f32 to vector<8x128xf32>
      %169 = arith.addf %168, %167 : vector<8x128xf32>
      %170 = arith.divf %168, %169 : vector<8x128xf32>
      %171 = arith.mulf %162, %142 : vector<8x128xf32>
      %172 = arith.mulf %156, %164 : vector<8x128xf32>
      %173 = arith.addf %171, %172 : vector<8x128xf32>
      %174 = math.tanh %173 : vector<8x128xf32>
      %175 = arith.mulf %170, %174 : vector<8x128xf32>
      %c0_78 = arith.constant 0 : index
      %c0_79 = arith.constant 0 : index
      %176 = vector.load %arg10[%c0_78, %c0_79] : memref<8x128xf32, #tpu.memory_space<vmem>>, vector<8x128xf32>
      tpu.vector_store %arg10[%c0_78, %c0_79], %173 {strides = array<i32>} : memref<8x128xf32, #tpu.memory_space<vmem>>, vector<8x128xf32>,
      %c0_80 = arith.constant 0 : index
      %c0_81 = arith.constant 0 : index
      %177 = vector.load %arg9[%c0_80, %c0_81] : memref<8x128xf32, #tpu.memory_space<vmem>>, vector<8x128xf32>
      tpu.vector_store %arg9[%c0_80, %c0_81], %175 {strides = array<i32>} : memref<8x128xf32, #tpu.memory_space<vmem>>, vector<8x128xf32>,
      %178 = arith.truncf %175 : vector<8x128xf32> to vector<8x128xbf16>
      %179 = arith.index_cast %c3_i32 : i32 to index
      %c0_82 = arith.constant 0 : index
      %c0_83 = arith.constant 0 : index
      %180 = vector.load %arg6[%179, %c0_82, %c0_83] : memref<8x8x128xbf16, #tpu.memory_space<vmem>>, vector<1x8x128xbf16>
      %181 = vector.shape_cast %180 : vector<1x8x128xbf16> to vector<8x128xbf16>
      %182 = vector.shape_cast %178 : vector<8x128xbf16> to vector<1x8x128xbf16>
      tpu.vector_store %arg6[%179, %c0_82, %c0_83], %182 {strides = array<i32>} : memref<8x8x128xbf16, #tpu.memory_space<vmem>>, vector<1x8x128xbf16>,
      %c4_i32 = arith.constant 4 : i32
      %c0_84 = arith.constant 0 : index
      %c0_85 = arith.constant 0 : index
      %183 = vector.load %arg9[%c0_84, %c0_85] : memref<8x128xf32, #tpu.memory_space<vmem>>, vector<8x128xf32>
      %c0_86 = arith.constant 0 : index
      %c0_87 = arith.constant 0 : index
      %184 = vector.load %arg10[%c0_86, %c0_87] : memref<8x128xf32, #tpu.memory_space<vmem>>, vector<8x128xf32>
      %185 = arith.index_cast %c4_i32 : i32 to index
      %c0_88 = arith.constant 0 : index
      %c0_89 = arith.constant 0 : index
      %186 = vector.load %arg4[%185, %c0_88, %c0_89] : memref<8x8x512xbf16, #tpu.memory_space<vmem>>, vector<1x8x512xbf16>
      %187 = vector.shape_cast %186 : vector<1x8x512xbf16> to vector<8x512xbf16>
      %188 = arith.extf %187 : vector<8x512xbf16> to vector<8x512xf32>
      %189 = arith.truncf %183 : vector<8x128xf32> to vector<8x128xbf16>
      %c0_90 = arith.constant 0 : index
      %c0_91 = arith.constant 0 : index
      %190 = vector.load %arg5[%c0_90, %c0_91] : memref<128x512xbf16, #tpu.memory_space<vmem>>, vector<128x512xbf16>
      %cst_92 = arith.constant dense<0.000000e+00> : vector<8x512xf32>
      %191 = tpu.matmul %189, %190, %cst_92 {dimension_numbers = #tpu.dot_dimension_numbers<[1], [0], [0], [1], [0, 0, 1, 1], [], []>} : vector<8x128xbf16>, vector<128x512xbf16>, vector<8x512xf32> -> vector<8x512xf32>
      %192 = arith.addf %188, %191 : vector<8x512xf32>
      %193 = vector.extract_strided_slice %192 {offsets = [0, 0], sizes = [8, 128], strides = [1, 1]} : vector<8x512xf32> to vector<8x128xf32>
      %194 = arith.negf %193 : vector<8x128xf32>
      %195 = math.exp %194 : vector<8x128xf32>
      %cst_93 = arith.constant 1.000000e+00 : f32
      %196 = vector.broadcast %cst_93 : f32 to vector<8x128xf32>
      %197 = arith.addf %196, %195 : vector<8x128xf32>
      %198 = arith.divf %196, %197 : vector<8x128xf32>
      %199 = vector.extract_strided_slice %192 {offsets = [0, 128], sizes = [8, 128], strides = [1, 1]} : vector<8x512xf32> to vector<8x128xf32>
      %200 = arith.negf %199 : vector<8x128xf32>
      %201 = math.exp %200 : vector<8x128xf32>
      %cst_94 = arith.constant 1.000000e+00 : f32
      %202 = vector.broadcast %cst_94 : f32 to vector<8x128xf32>
      %203 = arith.addf %202, %201 : vector<8x128xf32>
      %204 = arith.divf %202, %203 : vector<8x128xf32>
      %205 = vector.extract_strided_slice %192 {offsets = [0, 256], sizes = [8, 128], strides = [1, 1]} : vector<8x512xf32> to vector<8x128xf32>
      %206 = math.tanh %205 : vector<8x128xf32>
      %207 = vector.extract_strided_slice %192 {offsets = [0, 384], sizes = [8, 128], strides = [1, 1]} : vector<8x512xf32> to vector<8x128xf32>
      %208 = arith.negf %207 : vector<8x128xf32>
      %209 = math.exp %208 : vector<8x128xf32>
      %cst_95 = arith.constant 1.000000e+00 : f32
      %210 = vector.broadcast %cst_95 : f32 to vector<8x128xf32>
      %211 = arith.addf %210, %209 : vector<8x128xf32>
      %212 = arith.divf %210, %211 : vector<8x128xf32>
      %213 = arith.mulf %204, %184 : vector<8x128xf32>
      %214 = arith.mulf %198, %206 : vector<8x128xf32>
      %215 = arith.addf %213, %214 : vector<8x128xf32>
      %216 = math.tanh %215 : vector<8x128xf32>
      %217 = arith.mulf %212, %216 : vector<8x128xf32>
      %c0_96 = arith.constant 0 : index
      %c0_97 = arith.constant 0 : index
      %218 = vector.load %arg10[%c0_96, %c0_97] : memref<8x128xf32, #tpu.memory_space<vmem>>, vector<8x128xf32>
      tpu.vector_store %arg10[%c0_96, %c0_97], %215 {strides = array<i32>} : memref<8x128xf32, #tpu.memory_space<vmem>>, vector<8x128xf32>,
      %c0_98 = arith.constant 0 : index
      %c0_99 = arith.constant 0 : index
      %219 = vector.load %arg9[%c0_98, %c0_99] : memref<8x128xf32, #tpu.memory_space<vmem>>, vector<8x128xf32>
      tpu.vector_store %arg9[%c0_98, %c0_99], %217 {strides = array<i32>} : memref<8x128xf32, #tpu.memory_space<vmem>>, vector<8x128xf32>,
      %220 = arith.truncf %217 : vector<8x128xf32> to vector<8x128xbf16>
      %221 = arith.index_cast %c4_i32 : i32 to index
      %c0_100 = arith.constant 0 : index
      %c0_101 = arith.constant 0 : index
      %222 = vector.load %arg6[%221, %c0_100, %c0_101] : memref<8x8x128xbf16, #tpu.memory_space<vmem>>, vector<1x8x128xbf16>
      %223 = vector.shape_cast %222 : vector<1x8x128xbf16> to vector<8x128xbf16>
      %224 = vector.shape_cast %220 : vector<8x128xbf16> to vector<1x8x128xbf16>
      tpu.vector_store %arg6[%221, %c0_100, %c0_101], %224 {strides = array<i32>} : memref<8x8x128xbf16, #tpu.memory_space<vmem>>, vector<1x8x128xbf16>,
      %c5_i32 = arith.constant 5 : i32
      %c0_102 = arith.constant 0 : index
      %c0_103 = arith.constant 0 : index
      %225 = vector.load %arg9[%c0_102, %c0_103] : memref<8x128xf32, #tpu.memory_space<vmem>>, vector<8x128xf32>
      %c0_104 = arith.constant 0 : index
      %c0_105 = arith.constant 0 : index
      %226 = vector.load %arg10[%c0_104, %c0_105] : memref<8x128xf32, #tpu.memory_space<vmem>>, vector<8x128xf32>
      %227 = arith.index_cast %c5_i32 : i32 to index
      %c0_106 = arith.constant 0 : index
      %c0_107 = arith.constant 0 : index
      %228 = vector.load %arg4[%227, %c0_106, %c0_107] : memref<8x8x512xbf16, #tpu.memory_space<vmem>>, vector<1x8x512xbf16>
      %229 = vector.shape_cast %228 : vector<1x8x512xbf16> to vector<8x512xbf16>
      %230 = arith.extf %229 : vector<8x512xbf16> to vector<8x512xf32>
      %231 = arith.truncf %225 : vector<8x128xf32> to vector<8x128xbf16>
      %c0_108 = arith.constant 0 : index
      %c0_109 = arith.constant 0 : index
      %232 = vector.load %arg5[%c0_108, %c0_109] : memref<128x512xbf16, #tpu.memory_space<vmem>>, vector<128x512xbf16>
      %cst_110 = arith.constant dense<0.000000e+00> : vector<8x512xf32>
      %233 = tpu.matmul %231, %232, %cst_110 {dimension_numbers = #tpu.dot_dimension_numbers<[1], [0], [0], [1], [0, 0, 1, 1], [], []>} : vector<8x128xbf16>, vector<128x512xbf16>, vector<8x512xf32> -> vector<8x512xf32>
      %234 = arith.addf %230, %233 : vector<8x512xf32>
      %235 = vector.extract_strided_slice %234 {offsets = [0, 0], sizes = [8, 128], strides = [1, 1]} : vector<8x512xf32> to vector<8x128xf32>
      %236 = arith.negf %235 : vector<8x128xf32>
      %237 = math.exp %236 : vector<8x128xf32>
      %cst_111 = arith.constant 1.000000e+00 : f32
      %238 = vector.broadcast %cst_111 : f32 to vector<8x128xf32>
      %239 = arith.addf %238, %237 : vector<8x128xf32>
      %240 = arith.divf %238, %239 : vector<8x128xf32>
      %241 = vector.extract_strided_slice %234 {offsets = [0, 128], sizes = [8, 128], strides = [1, 1]} : vector<8x512xf32> to vector<8x128xf32>
      %242 = arith.negf %241 : vector<8x128xf32>
      %243 = math.exp %242 : vector<8x128xf32>
      %cst_112 = arith.constant 1.000000e+00 : f32
      %244 = vector.broadcast %cst_112 : f32 to vector<8x128xf32>
      %245 = arith.addf %244, %243 : vector<8x128xf32>
      %246 = arith.divf %244, %245 : vector<8x128xf32>
      %247 = vector.extract_strided_slice %234 {offsets = [0, 256], sizes = [8, 128], strides = [1, 1]} : vector<8x512xf32> to vector<8x128xf32>
      %248 = math.tanh %247 : vector<8x128xf32>
      %249 = vector.extract_strided_slice %234 {offsets = [0, 384], sizes = [8, 128], strides = [1, 1]} : vector<8x512xf32> to vector<8x128xf32>
      %250 = arith.negf %249 : vector<8x128xf32>
      %251 = math.exp %250 : vector<8x128xf32>
      %cst_113 = arith.constant 1.000000e+00 : f32
      %252 = vector.broadcast %cst_113 : f32 to vector<8x128xf32>
      %253 = arith.addf %252, %251 : vector<8x128xf32>
      %254 = arith.divf %252, %253 : vector<8x128xf32>
      %255 = arith.mulf %246, %226 : vector<8x128xf32>
      %256 = arith.mulf %240, %248 : vector<8x128xf32>
      %257 = arith.addf %255, %256 : vector<8x128xf32>
      %258 = math.tanh %257 : vector<8x128xf32>
      %259 = arith.mulf %254, %258 : vector<8x128xf32>
      %c0_114 = arith.constant 0 : index
      %c0_115 = arith.constant 0 : index
      %260 = vector.load %arg10[%c0_114, %c0_115] : memref<8x128xf32, #tpu.memory_space<vmem>>, vector<8x128xf32>
      tpu.vector_store %arg10[%c0_114, %c0_115], %257 {strides = array<i32>} : memref<8x128xf32, #tpu.memory_space<vmem>>, vector<8x128xf32>,
      %c0_116 = arith.constant 0 : index
      %c0_117 = arith.constant 0 : index
      %261 = vector.load %arg9[%c0_116, %c0_117] : memref<8x128xf32, #tpu.memory_space<vmem>>, vector<8x128xf32>
      tpu.vector_store %arg9[%c0_116, %c0_117], %259 {strides = array<i32>} : memref<8x128xf32, #tpu.memory_space<vmem>>, vector<8x128xf32>,
      %262 = arith.truncf %259 : vector<8x128xf32> to vector<8x128xbf16>
      %263 = arith.index_cast %c5_i32 : i32 to index
      %c0_118 = arith.constant 0 : index
      %c0_119 = arith.constant 0 : index
      %264 = vector.load %arg6[%263, %c0_118, %c0_119] : memref<8x8x128xbf16, #tpu.memory_space<vmem>>, vector<1x8x128xbf16>
      %265 = vector.shape_cast %264 : vector<1x8x128xbf16> to vector<8x128xbf16>
      %266 = vector.shape_cast %262 : vector<8x128xbf16> to vector<1x8x128xbf16>
      tpu.vector_store %arg6[%263, %c0_118, %c0_119], %266 {strides = array<i32>} : memref<8x8x128xbf16, #tpu.memory_space<vmem>>, vector<1x8x128xbf16>,
      %c6_i32 = arith.constant 6 : i32
      %c0_120 = arith.constant 0 : index
      %c0_121 = arith.constant 0 : index
      %267 = vector.load %arg9[%c0_120, %c0_121] : memref<8x128xf32, #tpu.memory_space<vmem>>, vector<8x128xf32>
      %c0_122 = arith.constant 0 : index
      %c0_123 = arith.constant 0 : index
      %268 = vector.load %arg10[%c0_122, %c0_123] : memref<8x128xf32, #tpu.memory_space<vmem>>, vector<8x128xf32>
      %269 = arith.index_cast %c6_i32 : i32 to index
      %c0_124 = arith.constant 0 : index
      %c0_125 = arith.constant 0 : index
      %270 = vector.load %arg4[%269, %c0_124, %c0_125] : memref<8x8x512xbf16, #tpu.memory_space<vmem>>, vector<1x8x512xbf16>
      %271 = vector.shape_cast %270 : vector<1x8x512xbf16> to vector<8x512xbf16>
      %272 = arith.extf %271 : vector<8x512xbf16> to vector<8x512xf32>
      %273 = arith.truncf %267 : vector<8x128xf32> to vector<8x128xbf16>
      %c0_126 = arith.constant 0 : index
      %c0_127 = arith.constant 0 : index
      %274 = vector.load %arg5[%c0_126, %c0_127] : memref<128x512xbf16, #tpu.memory_space<vmem>>, vector<128x512xbf16>
      %cst_128 = arith.constant dense<0.000000e+00> : vector<8x512xf32>
      %275 = tpu.matmul %273, %274, %cst_128 {dimension_numbers = #tpu.dot_dimension_numbers<[1], [0], [0], [1], [0, 0, 1, 1], [], []>} : vector<8x128xbf16>, vector<128x512xbf16>, vector<8x512xf32> -> vector<8x512xf32>
      %276 = arith.addf %272, %275 : vector<8x512xf32>
      %277 = vector.extract_strided_slice %276 {offsets = [0, 0], sizes = [8, 128], strides = [1, 1]} : vector<8x512xf32> to vector<8x128xf32>
      %278 = arith.negf %277 : vector<8x128xf32>
      %279 = math.exp %278 : vector<8x128xf32>
      %cst_129 = arith.constant 1.000000e+00 : f32
      %280 = vector.broadcast %cst_129 : f32 to vector<8x128xf32>
      %281 = arith.addf %280, %279 : vector<8x128xf32>
      %282 = arith.divf %280, %281 : vector<8x128xf32>
      %283 = vector.extract_strided_slice %276 {offsets = [0, 128], sizes = [8, 128], strides = [1, 1]} : vector<8x512xf32> to vector<8x128xf32>
      %284 = arith.negf %283 : vector<8x128xf32>
      %285 = math.exp %284 : vector<8x128xf32>
      %cst_130 = arith.constant 1.000000e+00 : f32
      %286 = vector.broadcast %cst_130 : f32 to vector<8x128xf32>
      %287 = arith.addf %286, %285 : vector<8x128xf32>
      %288 = arith.divf %286, %287 : vector<8x128xf32>
      %289 = vector.extract_strided_slice %276 {offsets = [0, 256], sizes = [8, 128], strides = [1, 1]} : vector<8x512xf32> to vector<8x128xf32>
      %290 = math.tanh %289 : vector<8x128xf32>
      %291 = vector.extract_strided_slice %276 {offsets = [0, 384], sizes = [8, 128], strides = [1, 1]} : vector<8x512xf32> to vector<8x128xf32>
      %292 = arith.negf %291 : vector<8x128xf32>
      %293 = math.exp %292 : vector<8x128xf32>
      %cst_131 = arith.constant 1.000000e+00 : f32
      %294 = vector.broadcast %cst_131 : f32 to vector<8x128xf32>
      %295 = arith.addf %294, %293 : vector<8x128xf32>
      %296 = arith.divf %294, %295 : vector<8x128xf32>
      %297 = arith.mulf %288, %268 : vector<8x128xf32>
      %298 = arith.mulf %282, %290 : vector<8x128xf32>
      %299 = arith.addf %297, %298 : vector<8x128xf32>
      %300 = math.tanh %299 : vector<8x128xf32>
      %301 = arith.mulf %296, %300 : vector<8x128xf32>
      %c0_132 = arith.constant 0 : index
      %c0_133 = arith.constant 0 : index
      %302 = vector.load %arg10[%c0_132, %c0_133] : memref<8x128xf32, #tpu.memory_space<vmem>>, vector<8x128xf32>
      tpu.vector_store %arg10[%c0_132, %c0_133], %299 {strides = array<i32>} : memref<8x128xf32, #tpu.memory_space<vmem>>, vector<8x128xf32>,
      %c0_134 = arith.constant 0 : index
      %c0_135 = arith.constant 0 : index
      %303 = vector.load %arg9[%c0_134, %c0_135] : memref<8x128xf32, #tpu.memory_space<vmem>>, vector<8x128xf32>
      tpu.vector_store %arg9[%c0_134, %c0_135], %301 {strides = array<i32>} : memref<8x128xf32, #tpu.memory_space<vmem>>, vector<8x128xf32>,
      %304 = arith.truncf %301 : vector<8x128xf32> to vector<8x128xbf16>
      %305 = arith.index_cast %c6_i32 : i32 to index
      %c0_136 = arith.constant 0 : index
      %c0_137 = arith.constant 0 : index
      %306 = vector.load %arg6[%305, %c0_136, %c0_137] : memref<8x8x128xbf16, #tpu.memory_space<vmem>>, vector<1x8x128xbf16>
      %307 = vector.shape_cast %306 : vector<1x8x128xbf16> to vector<8x128xbf16>
      %308 = vector.shape_cast %304 : vector<8x128xbf16> to vector<1x8x128xbf16>
      tpu.vector_store %arg6[%305, %c0_136, %c0_137], %308 {strides = array<i32>} : memref<8x8x128xbf16, #tpu.memory_space<vmem>>, vector<1x8x128xbf16>,
      %c7_i32 = arith.constant 7 : i32
      %c0_138 = arith.constant 0 : index
      %c0_139 = arith.constant 0 : index
      %309 = vector.load %arg9[%c0_138, %c0_139] : memref<8x128xf32, #tpu.memory_space<vmem>>, vector<8x128xf32>
      %c0_140 = arith.constant 0 : index
      %c0_141 = arith.constant 0 : index
      %310 = vector.load %arg10[%c0_140, %c0_141] : memref<8x128xf32, #tpu.memory_space<vmem>>, vector<8x128xf32>
      %311 = arith.index_cast %c7_i32 : i32 to index
      %c0_142 = arith.constant 0 : index
      %c0_143 = arith.constant 0 : index
      %312 = vector.load %arg4[%311, %c0_142, %c0_143] : memref<8x8x512xbf16, #tpu.memory_space<vmem>>, vector<1x8x512xbf16>
      %313 = vector.shape_cast %312 : vector<1x8x512xbf16> to vector<8x512xbf16>
      %314 = arith.extf %313 : vector<8x512xbf16> to vector<8x512xf32>
      %315 = arith.truncf %309 : vector<8x128xf32> to vector<8x128xbf16>
      %c0_144 = arith.constant 0 : index
      %c0_145 = arith.constant 0 : index
      %316 = vector.load %arg5[%c0_144, %c0_145] : memref<128x512xbf16, #tpu.memory_space<vmem>>, vector<128x512xbf16>
      %cst_146 = arith.constant dense<0.000000e+00> : vector<8x512xf32>
      %317 = tpu.matmul %315, %316, %cst_146 {dimension_numbers = #tpu.dot_dimension_numbers<[1], [0], [0], [1], [0, 0, 1, 1], [], []>} : vector<8x128xbf16>, vector<128x512xbf16>, vector<8x512xf32> -> vector<8x512xf32>
      %318 = arith.addf %314, %317 : vector<8x512xf32>
      %319 = vector.extract_strided_slice %318 {offsets = [0, 0], sizes = [8, 128], strides = [1, 1]} : vector<8x512xf32> to vector<8x128xf32>
      %320 = arith.negf %319 : vector<8x128xf32>
      %321 = math.exp %320 : vector<8x128xf32>
      %cst_147 = arith.constant 1.000000e+00 : f32
      %322 = vector.broadcast %cst_147 : f32 to vector<8x128xf32>
      %323 = arith.addf %322, %321 : vector<8x128xf32>
      %324 = arith.divf %322, %323 : vector<8x128xf32>
      %325 = vector.extract_strided_slice %318 {offsets = [0, 128], sizes = [8, 128], strides = [1, 1]} : vector<8x512xf32> to vector<8x128xf32>
      %326 = arith.negf %325 : vector<8x128xf32>
      %327 = math.exp %326 : vector<8x128xf32>
      %cst_148 = arith.constant 1.000000e+00 : f32
      %328 = vector.broadcast %cst_148 : f32 to vector<8x128xf32>
      %329 = arith.addf %328, %327 : vector<8x128xf32>
      %330 = arith.divf %328, %329 : vector<8x128xf32>
      %331 = vector.extract_strided_slice %318 {offsets = [0, 256], sizes = [8, 128], strides = [1, 1]} : vector<8x512xf32> to vector<8x128xf32>
      %332 = math.tanh %331 : vector<8x128xf32>
      %333 = vector.extract_strided_slice %318 {offsets = [0, 384], sizes = [8, 128], strides = [1, 1]} : vector<8x512xf32> to vector<8x128xf32>
      %334 = arith.negf %333 : vector<8x128xf32>
      %335 = math.exp %334 : vector<8x128xf32>
      %cst_149 = arith.constant 1.000000e+00 : f32
      %336 = vector.broadcast %cst_149 : f32 to vector<8x128xf32>
      %337 = arith.addf %336, %335 : vector<8x128xf32>
      %338 = arith.divf %336, %337 : vector<8x128xf32>
      %339 = arith.mulf %330, %310 : vector<8x128xf32>
      %340 = arith.mulf %324, %332 : vector<8x128xf32>
      %341 = arith.addf %339, %340 : vector<8x128xf32>
      %342 = math.tanh %341 : vector<8x128xf32>
      %343 = arith.mulf %338, %342 : vector<8x128xf32>
      %c0_150 = arith.constant 0 : index
      %c0_151 = arith.constant 0 : index
      %344 = vector.load %arg10[%c0_150, %c0_151] : memref<8x128xf32, #tpu.memory_space<vmem>>, vector<8x128xf32>
      tpu.vector_store %arg10[%c0_150, %c0_151], %341 {strides = array<i32>} : memref<8x128xf32, #tpu.memory_space<vmem>>, vector<8x128xf32>,
      %c0_152 = arith.constant 0 : index
      %c0_153 = arith.constant 0 : index
      %345 = vector.load %arg9[%c0_152, %c0_153] : memref<8x128xf32, #tpu.memory_space<vmem>>, vector<8x128xf32>
      tpu.vector_store %arg9[%c0_152, %c0_153], %343 {strides = array<i32>} : memref<8x128xf32, #tpu.memory_space<vmem>>, vector<8x128xf32>,
      %346 = arith.truncf %343 : vector<8x128xf32> to vector<8x128xbf16>
      %347 = arith.index_cast %c7_i32 : i32 to index
      %c0_154 = arith.constant 0 : index
      %c0_155 = arith.constant 0 : index
      %348 = vector.load %arg6[%347, %c0_154, %c0_155] : memref<8x8x128xbf16, #tpu.memory_space<vmem>>, vector<1x8x128xbf16>
      %349 = vector.shape_cast %348 : vector<1x8x128xbf16> to vector<8x128xbf16>
      %350 = vector.shape_cast %346 : vector<8x128xbf16> to vector<1x8x128xbf16>
      tpu.vector_store %arg6[%347, %c0_154, %c0_155], %350 {strides = array<i32>} : memref<8x8x128xbf16, #tpu.memory_space<vmem>>, vector<1x8x128xbf16>,
      %c8_i32_156 = arith.constant 8 : i32
    } else {
    }
    %true = arith.constant true
    %8 = arith.xori %5, %true : i1
    %9 = arith.extui %8 : i1 to i32
    %c0_i32_4 = arith.constant 0 : i32
    %10 = arith.cmpi ne, %9, %c0_i32_4 : i32
    scf.if %10 {
      %c0_i32_12 = arith.constant 0 : i32
      %c0_13 = arith.constant 0 : index
      %c0_14 = arith.constant 0 : index
      %15 = vector.load %arg9[%c0_13, %c0_14] : memref<8x128xf32, #tpu.memory_space<vmem>>, vector<8x128xf32>
      %c0_15 = arith.constant 0 : index
      %c0_16 = arith.constant 0 : index
      %16 = vector.load %arg10[%c0_15, %c0_16] : memref<8x128xf32, #tpu.memory_space<vmem>>, vector<8x128xf32>
      %17 = arith.index_cast %c0_i32_12 : i32 to index
      %c0_17 = arith.constant 0 : index
      %c0_18 = arith.constant 0 : index
      %18 = vector.load %arg4[%17, %c0_17, %c0_18] : memref<8x8x512xbf16, #tpu.memory_space<vmem>>, vector<1x8x512xbf16>
      %19 = vector.shape_cast %18 : vector<1x8x512xbf16> to vector<8x512xbf16>
      %20 = arith.extf %19 : vector<8x512xbf16> to vector<8x512xf32>
      %21 = arith.truncf %15 : vector<8x128xf32> to vector<8x128xbf16>
      %c0_19 = arith.constant 0 : index
      %c0_20 = arith.constant 0 : index
      %22 = vector.load %arg5[%c0_19, %c0_20] : memref<128x512xbf16, #tpu.memory_space<vmem>>, vector<128x512xbf16>
      %cst = arith.constant dense<0.000000e+00> : vector<8x512xf32>
      %23 = tpu.matmul %21, %22, %cst {dimension_numbers = #tpu.dot_dimension_numbers<[1], [0], [0], [1], [0, 0, 1, 1], [], []>} : vector<8x128xbf16>, vector<128x512xbf16>, vector<8x512xf32> -> vector<8x512xf32>
      %24 = arith.addf %20, %23 : vector<8x512xf32>
      %25 = vector.extract_strided_slice %24 {offsets = [0, 0], sizes = [8, 128], strides = [1, 1]} : vector<8x512xf32> to vector<8x128xf32>
      %26 = arith.negf %25 : vector<8x128xf32>
      %27 = math.exp %26 : vector<8x128xf32>
      %cst_21 = arith.constant 1.000000e+00 : f32
      %28 = vector.broadcast %cst_21 : f32 to vector<8x128xf32>
      %29 = arith.addf %28, %27 : vector<8x128xf32>
      %30 = arith.divf %28, %29 : vector<8x128xf32>
      %31 = vector.extract_strided_slice %24 {offsets = [0, 128], sizes = [8, 128], strides = [1, 1]} : vector<8x512xf32> to vector<8x128xf32>
      %32 = arith.negf %31 : vector<8x128xf32>
      %33 = math.exp %32 : vector<8x128xf32>
      %cst_22 = arith.constant 1.000000e+00 : f32
      %34 = vector.broadcast %cst_22 : f32 to vector<8x128xf32>
      %35 = arith.addf %34, %33 : vector<8x128xf32>
      %36 = arith.divf %34, %35 : vector<8x128xf32>
      %37 = vector.extract_strided_slice %24 {offsets = [0, 256], sizes = [8, 128], strides = [1, 1]} : vector<8x512xf32> to vector<8x128xf32>
      %38 = math.tanh %37 : vector<8x128xf32>
      %39 = vector.extract_strided_slice %24 {offsets = [0, 384], sizes = [8, 128], strides = [1, 1]} : vector<8x512xf32> to vector<8x128xf32>
      %40 = arith.negf %39 : vector<8x128xf32>
      %41 = math.exp %40 : vector<8x128xf32>
      %cst_23 = arith.constant 1.000000e+00 : f32
      %42 = vector.broadcast %cst_23 : f32 to vector<8x128xf32>
      %43 = arith.addf %42, %41 : vector<8x128xf32>
      %44 = arith.divf %42, %43 : vector<8x128xf32>
      %45 = arith.mulf %36, %16 : vector<8x128xf32>
      %46 = arith.mulf %30, %38 : vector<8x128xf32>
      %47 = arith.addf %45, %46 : vector<8x128xf32>
      %48 = math.tanh %47 : vector<8x128xf32>
      %49 = arith.mulf %44, %48 : vector<8x128xf32>
      %50 = arith.addi %3, %c0_i32_12 : i32
      %c8_i32_24 = arith.constant 8 : i32
      %51 = arith.cmpi slt, %50, %c8_i32_24 : i32
      %52 = arith.select %51, %47, %16 : vector<8x128xf32>
      %c0_25 = arith.constant 0 : index
      %c0_26 = arith.constant 0 : index
      %53 = vector.load %arg10[%c0_25, %c0_26] : memref<8x128xf32, #tpu.memory_space<vmem>>, vector<8x128xf32>
      tpu.vector_store %arg10[%c0_25, %c0_26], %52 {strides = array<i32>} : memref<8x128xf32, #tpu.memory_space<vmem>>, vector<8x128xf32>,
      %54 = arith.select %51, %49, %15 : vector<8x128xf32>
      %c0_27 = arith.constant 0 : index
      %c0_28 = arith.constant 0 : index
      %55 = vector.load %arg9[%c0_27, %c0_28] : memref<8x128xf32, #tpu.memory_space<vmem>>, vector<8x128xf32>
      tpu.vector_store %arg9[%c0_27, %c0_28], %54 {strides = array<i32>} : memref<8x128xf32, #tpu.memory_space<vmem>>, vector<8x128xf32>,
      %56 = arith.truncf %49 : vector<8x128xf32> to vector<8x128xbf16>
      %57 = arith.index_cast %c0_i32_12 : i32 to index
      %c0_29 = arith.constant 0 : index
      %c0_30 = arith.constant 0 : index
      %58 = vector.load %arg6[%57, %c0_29, %c0_30] : memref<8x8x128xbf16, #tpu.memory_space<vmem>>, vector<1x8x128xbf16>
      %59 = vector.shape_cast %58 : vector<1x8x128xbf16> to vector<8x128xbf16>
      %60 = vector.shape_cast %56 : vector<8x128xbf16> to vector<1x8x128xbf16>
      tpu.vector_store %arg6[%57, %c0_29, %c0_30], %60 {strides = array<i32>} : memref<8x8x128xbf16, #tpu.memory_space<vmem>>, vector<1x8x128xbf16>,
      %c1_i32 = arith.constant 1 : i32
      %c0_31 = arith.constant 0 : index
      %c0_32 = arith.constant 0 : index
      %61 = vector.load %arg9[%c0_31, %c0_32] : memref<8x128xf32, #tpu.memory_space<vmem>>, vector<8x128xf32>
      %c0_33 = arith.constant 0 : index
      %c0_34 = arith.constant 0 : index
      %62 = vector.load %arg10[%c0_33, %c0_34] : memref<8x128xf32, #tpu.memory_space<vmem>>, vector<8x128xf32>
      %63 = arith.index_cast %c1_i32 : i32 to index
      %c0_35 = arith.constant 0 : index
      %c0_36 = arith.constant 0 : index
      %64 = vector.load %arg4[%63, %c0_35, %c0_36] : memref<8x8x512xbf16, #tpu.memory_space<vmem>>, vector<1x8x512xbf16>
      %65 = vector.shape_cast %64 : vector<1x8x512xbf16> to vector<8x512xbf16>
      %66 = arith.extf %65 : vector<8x512xbf16> to vector<8x512xf32>
      %67 = arith.truncf %61 : vector<8x128xf32> to vector<8x128xbf16>
      %c0_37 = arith.constant 0 : index
      %c0_38 = arith.constant 0 : index
      %68 = vector.load %arg5[%c0_37, %c0_38] : memref<128x512xbf16, #tpu.memory_space<vmem>>, vector<128x512xbf16>
      %cst_39 = arith.constant dense<0.000000e+00> : vector<8x512xf32>
      %69 = tpu.matmul %67, %68, %cst_39 {dimension_numbers = #tpu.dot_dimension_numbers<[1], [0], [0], [1], [0, 0, 1, 1], [], []>} : vector<8x128xbf16>, vector<128x512xbf16>, vector<8x512xf32> -> vector<8x512xf32>
      %70 = arith.addf %66, %69 : vector<8x512xf32>
      %71 = vector.extract_strided_slice %70 {offsets = [0, 0], sizes = [8, 128], strides = [1, 1]} : vector<8x512xf32> to vector<8x128xf32>
      %72 = arith.negf %71 : vector<8x128xf32>
      %73 = math.exp %72 : vector<8x128xf32>
      %cst_40 = arith.constant 1.000000e+00 : f32
      %74 = vector.broadcast %cst_40 : f32 to vector<8x128xf32>
      %75 = arith.addf %74, %73 : vector<8x128xf32>
      %76 = arith.divf %74, %75 : vector<8x128xf32>
      %77 = vector.extract_strided_slice %70 {offsets = [0, 128], sizes = [8, 128], strides = [1, 1]} : vector<8x512xf32> to vector<8x128xf32>
      %78 = arith.negf %77 : vector<8x128xf32>
      %79 = math.exp %78 : vector<8x128xf32>
      %cst_41 = arith.constant 1.000000e+00 : f32
      %80 = vector.broadcast %cst_41 : f32 to vector<8x128xf32>
      %81 = arith.addf %80, %79 : vector<8x128xf32>
      %82 = arith.divf %80, %81 : vector<8x128xf32>
      %83 = vector.extract_strided_slice %70 {offsets = [0, 256], sizes = [8, 128], strides = [1, 1]} : vector<8x512xf32> to vector<8x128xf32>
      %84 = math.tanh %83 : vector<8x128xf32>
      %85 = vector.extract_strided_slice %70 {offsets = [0, 384], sizes = [8, 128], strides = [1, 1]} : vector<8x512xf32> to vector<8x128xf32>
      %86 = arith.negf %85 : vector<8x128xf32>
      %87 = math.exp %86 : vector<8x128xf32>
      %cst_42 = arith.constant 1.000000e+00 : f32
      %88 = vector.broadcast %cst_42 : f32 to vector<8x128xf32>
      %89 = arith.addf %88, %87 : vector<8x128xf32>
      %90 = arith.divf %88, %89 : vector<8x128xf32>
      %91 = arith.mulf %82, %62 : vector<8x128xf32>
      %92 = arith.mulf %76, %84 : vector<8x128xf32>
      %93 = arith.addf %91, %92 : vector<8x128xf32>
      %94 = math.tanh %93 : vector<8x128xf32>
      %95 = arith.mulf %90, %94 : vector<8x128xf32>
      %96 = arith.addi %3, %c1_i32 : i32
      %c8_i32_43 = arith.constant 8 : i32
      %97 = arith.cmpi slt, %96, %c8_i32_43 : i32
      %98 = arith.select %97, %93, %62 : vector<8x128xf32>
      %c0_44 = arith.constant 0 : index
      %c0_45 = arith.constant 0 : index
      %99 = vector.load %arg10[%c0_44, %c0_45] : memref<8x128xf32, #tpu.memory_space<vmem>>, vector<8x128xf32>
      tpu.vector_store %arg10[%c0_44, %c0_45], %98 {strides = array<i32>} : memref<8x128xf32, #tpu.memory_space<vmem>>, vector<8x128xf32>,
      %100 = arith.select %97, %95, %61 : vector<8x128xf32>
      %c0_46 = arith.constant 0 : index
      %c0_47 = arith.constant 0 : index
      %101 = vector.load %arg9[%c0_46, %c0_47] : memref<8x128xf32, #tpu.memory_space<vmem>>, vector<8x128xf32>
      tpu.vector_store %arg9[%c0_46, %c0_47], %100 {strides = array<i32>} : memref<8x128xf32, #tpu.memory_space<vmem>>, vector<8x128xf32>,
      %102 = arith.truncf %95 : vector<8x128xf32> to vector<8x128xbf16>
      %103 = arith.index_cast %c1_i32 : i32 to index
      %c0_48 = arith.constant 0 : index
      %c0_49 = arith.constant 0 : index
      %104 = vector.load %arg6[%103, %c0_48, %c0_49] : memref<8x8x128xbf16, #tpu.memory_space<vmem>>, vector<1x8x128xbf16>
      %105 = vector.shape_cast %104 : vector<1x8x128xbf16> to vector<8x128xbf16>
      %106 = vector.shape_cast %102 : vector<8x128xbf16> to vector<1x8x128xbf16>
      tpu.vector_store %arg6[%103, %c0_48, %c0_49], %106 {strides = array<i32>} : memref<8x8x128xbf16, #tpu.memory_space<vmem>>, vector<1x8x128xbf16>,
      %c2_i32 = arith.constant 2 : i32
      %c0_50 = arith.constant 0 : index
      %c0_51 = arith.constant 0 : index
      %107 = vector.load %arg9[%c0_50, %c0_51] : memref<8x128xf32, #tpu.memory_space<vmem>>, vector<8x128xf32>
      %c0_52 = arith.constant 0 : index
      %c0_53 = arith.constant 0 : index
      %108 = vector.load %arg10[%c0_52, %c0_53] : memref<8x128xf32, #tpu.memory_space<vmem>>, vector<8x128xf32>
      %109 = arith.index_cast %c2_i32 : i32 to index
      %c0_54 = arith.constant 0 : index
      %c0_55 = arith.constant 0 : index
      %110 = vector.load %arg4[%109, %c0_54, %c0_55] : memref<8x8x512xbf16, #tpu.memory_space<vmem>>, vector<1x8x512xbf16>
      %111 = vector.shape_cast %110 : vector<1x8x512xbf16> to vector<8x512xbf16>
      %112 = arith.extf %111 : vector<8x512xbf16> to vector<8x512xf32>
      %113 = arith.truncf %107 : vector<8x128xf32> to vector<8x128xbf16>
      %c0_56 = arith.constant 0 : index
      %c0_57 = arith.constant 0 : index
      %114 = vector.load %arg5[%c0_56, %c0_57] : memref<128x512xbf16, #tpu.memory_space<vmem>>, vector<128x512xbf16>
      %cst_58 = arith.constant dense<0.000000e+00> : vector<8x512xf32>
      %115 = tpu.matmul %113, %114, %cst_58 {dimension_numbers = #tpu.dot_dimension_numbers<[1], [0], [0], [1], [0, 0, 1, 1], [], []>} : vector<8x128xbf16>, vector<128x512xbf16>, vector<8x512xf32> -> vector<8x512xf32>
      %116 = arith.addf %112, %115 : vector<8x512xf32>
      %117 = vector.extract_strided_slice %116 {offsets = [0, 0], sizes = [8, 128], strides = [1, 1]} : vector<8x512xf32> to vector<8x128xf32>
      %118 = arith.negf %117 : vector<8x128xf32>
      %119 = math.exp %118 : vector<8x128xf32>
      %cst_59 = arith.constant 1.000000e+00 : f32
      %120 = vector.broadcast %cst_59 : f32 to vector<8x128xf32>
      %121 = arith.addf %120, %119 : vector<8x128xf32>
      %122 = arith.divf %120, %121 : vector<8x128xf32>
      %123 = vector.extract_strided_slice %116 {offsets = [0, 128], sizes = [8, 128], strides = [1, 1]} : vector<8x512xf32> to vector<8x128xf32>
      %124 = arith.negf %123 : vector<8x128xf32>
      %125 = math.exp %124 : vector<8x128xf32>
      %cst_60 = arith.constant 1.000000e+00 : f32
      %126 = vector.broadcast %cst_60 : f32 to vector<8x128xf32>
      %127 = arith.addf %126, %125 : vector<8x128xf32>
      %128 = arith.divf %126, %127 : vector<8x128xf32>
      %129 = vector.extract_strided_slice %116 {offsets = [0, 256], sizes = [8, 128], strides = [1, 1]} : vector<8x512xf32> to vector<8x128xf32>
      %130 = math.tanh %129 : vector<8x128xf32>
      %131 = vector.extract_strided_slice %116 {offsets = [0, 384], sizes = [8, 128], strides = [1, 1]} : vector<8x512xf32> to vector<8x128xf32>
      %132 = arith.negf %131 : vector<8x128xf32>
      %133 = math.exp %132 : vector<8x128xf32>
      %cst_61 = arith.constant 1.000000e+00 : f32
      %134 = vector.broadcast %cst_61 : f32 to vector<8x128xf32>
      %135 = arith.addf %134, %133 : vector<8x128xf32>
      %136 = arith.divf %134, %135 : vector<8x128xf32>
      %137 = arith.mulf %128, %108 : vector<8x128xf32>
      %138 = arith.mulf %122, %130 : vector<8x128xf32>
      %139 = arith.addf %137, %138 : vector<8x128xf32>
      %140 = math.tanh %139 : vector<8x128xf32>
      %141 = arith.mulf %136, %140 : vector<8x128xf32>
      %142 = arith.addi %3, %c2_i32 : i32
      %c8_i32_62 = arith.constant 8 : i32
      %143 = arith.cmpi slt, %142, %c8_i32_62 : i32
      %144 = arith.select %143, %139, %108 : vector<8x128xf32>
      %c0_63 = arith.constant 0 : index
      %c0_64 = arith.constant 0 : index
      %145 = vector.load %arg10[%c0_63, %c0_64] : memref<8x128xf32, #tpu.memory_space<vmem>>, vector<8x128xf32>
      tpu.vector_store %arg10[%c0_63, %c0_64], %144 {strides = array<i32>} : memref<8x128xf32, #tpu.memory_space<vmem>>, vector<8x128xf32>,
      %146 = arith.select %143, %141, %107 : vector<8x128xf32>
      %c0_65 = arith.constant 0 : index
      %c0_66 = arith.constant 0 : index
      %147 = vector.load %arg9[%c0_65, %c0_66] : memref<8x128xf32, #tpu.memory_space<vmem>>, vector<8x128xf32>
      tpu.vector_store %arg9[%c0_65, %c0_66], %146 {strides = array<i32>} : memref<8x128xf32, #tpu.memory_space<vmem>>, vector<8x128xf32>,
      %148 = arith.truncf %141 : vector<8x128xf32> to vector<8x128xbf16>
      %149 = arith.index_cast %c2_i32 : i32 to index
      %c0_67 = arith.constant 0 : index
      %c0_68 = arith.constant 0 : index
      %150 = vector.load %arg6[%149, %c0_67, %c0_68] : memref<8x8x128xbf16, #tpu.memory_space<vmem>>, vector<1x8x128xbf16>
      %151 = vector.shape_cast %150 : vector<1x8x128xbf16> to vector<8x128xbf16>
      %152 = vector.shape_cast %148 : vector<8x128xbf16> to vector<1x8x128xbf16>
      tpu.vector_store %arg6[%149, %c0_67, %c0_68], %152 {strides = array<i32>} : memref<8x8x128xbf16, #tpu.memory_space<vmem>>, vector<1x8x128xbf16>,
      %c3_i32 = arith.constant 3 : i32
      %c0_69 = arith.constant 0 : index
      %c0_70 = arith.constant 0 : index
      %153 = vector.load %arg9[%c0_69, %c0_70] : memref<8x128xf32, #tpu.memory_space<vmem>>, vector<8x128xf32>
      %c0_71 = arith.constant 0 : index
      %c0_72 = arith.constant 0 : index
      %154 = vector.load %arg10[%c0_71, %c0_72] : memref<8x128xf32, #tpu.memory_space<vmem>>, vector<8x128xf32>
      %155 = arith.index_cast %c3_i32 : i32 to index
      %c0_73 = arith.constant 0 : index
      %c0_74 = arith.constant 0 : index
      %156 = vector.load %arg4[%155, %c0_73, %c0_74] : memref<8x8x512xbf16, #tpu.memory_space<vmem>>, vector<1x8x512xbf16>
      %157 = vector.shape_cast %156 : vector<1x8x512xbf16> to vector<8x512xbf16>
      %158 = arith.extf %157 : vector<8x512xbf16> to vector<8x512xf32>
      %159 = arith.truncf %153 : vector<8x128xf32> to vector<8x128xbf16>
      %c0_75 = arith.constant 0 : index
      %c0_76 = arith.constant 0 : index
      %160 = vector.load %arg5[%c0_75, %c0_76] : memref<128x512xbf16, #tpu.memory_space<vmem>>, vector<128x512xbf16>
      %cst_77 = arith.constant dense<0.000000e+00> : vector<8x512xf32>
      %161 = tpu.matmul %159, %160, %cst_77 {dimension_numbers = #tpu.dot_dimension_numbers<[1], [0], [0], [1], [0, 0, 1, 1], [], []>} : vector<8x128xbf16>, vector<128x512xbf16>, vector<8x512xf32> -> vector<8x512xf32>
      %162 = arith.addf %158, %161 : vector<8x512xf32>
      %163 = vector.extract_strided_slice %162 {offsets = [0, 0], sizes = [8, 128], strides = [1, 1]} : vector<8x512xf32> to vector<8x128xf32>
      %164 = arith.negf %163 : vector<8x128xf32>
      %165 = math.exp %164 : vector<8x128xf32>
      %cst_78 = arith.constant 1.000000e+00 : f32
      %166 = vector.broadcast %cst_78 : f32 to vector<8x128xf32>
      %167 = arith.addf %166, %165 : vector<8x128xf32>
      %168 = arith.divf %166, %167 : vector<8x128xf32>
      %169 = vector.extract_strided_slice %162 {offsets = [0, 128], sizes = [8, 128], strides = [1, 1]} : vector<8x512xf32> to vector<8x128xf32>
      %170 = arith.negf %169 : vector<8x128xf32>
      %171 = math.exp %170 : vector<8x128xf32>
      %cst_79 = arith.constant 1.000000e+00 : f32
      %172 = vector.broadcast %cst_79 : f32 to vector<8x128xf32>
      %173 = arith.addf %172, %171 : vector<8x128xf32>
      %174 = arith.divf %172, %173 : vector<8x128xf32>
      %175 = vector.extract_strided_slice %162 {offsets = [0, 256], sizes = [8, 128], strides = [1, 1]} : vector<8x512xf32> to vector<8x128xf32>
      %176 = math.tanh %175 : vector<8x128xf32>
      %177 = vector.extract_strided_slice %162 {offsets = [0, 384], sizes = [8, 128], strides = [1, 1]} : vector<8x512xf32> to vector<8x128xf32>
      %178 = arith.negf %177 : vector<8x128xf32>
      %179 = math.exp %178 : vector<8x128xf32>
      %cst_80 = arith.constant 1.000000e+00 : f32
      %180 = vector.broadcast %cst_80 : f32 to vector<8x128xf32>
      %181 = arith.addf %180, %179 : vector<8x128xf32>
      %182 = arith.divf %180, %181 : vector<8x128xf32>
      %183 = arith.mulf %174, %154 : vector<8x128xf32>
      %184 = arith.mulf %168, %176 : vector<8x128xf32>
      %185 = arith.addf %183, %184 : vector<8x128xf32>
      %186 = math.tanh %185 : vector<8x128xf32>
      %187 = arith.mulf %182, %186 : vector<8x128xf32>
      %188 = arith.addi %3, %c3_i32 : i32
      %c8_i32_81 = arith.constant 8 : i32
      %189 = arith.cmpi slt, %188, %c8_i32_81 : i32
      %190 = arith.select %189, %185, %154 : vector<8x128xf32>
      %c0_82 = arith.constant 0 : index
      %c0_83 = arith.constant 0 : index
      %191 = vector.load %arg10[%c0_82, %c0_83] : memref<8x128xf32, #tpu.memory_space<vmem>>, vector<8x128xf32>
      tpu.vector_store %arg10[%c0_82, %c0_83], %190 {strides = array<i32>} : memref<8x128xf32, #tpu.memory_space<vmem>>, vector<8x128xf32>,
      %192 = arith.select %189, %187, %153 : vector<8x128xf32>
      %c0_84 = arith.constant 0 : index
      %c0_85 = arith.constant 0 : index
      %193 = vector.load %arg9[%c0_84, %c0_85] : memref<8x128xf32, #tpu.memory_space<vmem>>, vector<8x128xf32>
      tpu.vector_store %arg9[%c0_84, %c0_85], %192 {strides = array<i32>} : memref<8x128xf32, #tpu.memory_space<vmem>>, vector<8x128xf32>,
      %194 = arith.truncf %187 : vector<8x128xf32> to vector<8x128xbf16>
      %195 = arith.index_cast %c3_i32 : i32 to index
      %c0_86 = arith.constant 0 : index
      %c0_87 = arith.constant 0 : index
      %196 = vector.load %arg6[%195, %c0_86, %c0_87] : memref<8x8x128xbf16, #tpu.memory_space<vmem>>, vector<1x8x128xbf16>
      %197 = vector.shape_cast %196 : vector<1x8x128xbf16> to vector<8x128xbf16>
      %198 = vector.shape_cast %194 : vector<8x128xbf16> to vector<1x8x128xbf16>
      tpu.vector_store %arg6[%195, %c0_86, %c0_87], %198 {strides = array<i32>} : memref<8x8x128xbf16, #tpu.memory_space<vmem>>, vector<1x8x128xbf16>,
      %c4_i32 = arith.constant 4 : i32
      %c0_88 = arith.constant 0 : index
      %c0_89 = arith.constant 0 : index
      %199 = vector.load %arg9[%c0_88, %c0_89] : memref<8x128xf32, #tpu.memory_space<vmem>>, vector<8x128xf32>
      %c0_90 = arith.constant 0 : index
      %c0_91 = arith.constant 0 : index
      %200 = vector.load %arg10[%c0_90, %c0_91] : memref<8x128xf32, #tpu.memory_space<vmem>>, vector<8x128xf32>
      %201 = arith.index_cast %c4_i32 : i32 to index
      %c0_92 = arith.constant 0 : index
      %c0_93 = arith.constant 0 : index
      %202 = vector.load %arg4[%201, %c0_92, %c0_93] : memref<8x8x512xbf16, #tpu.memory_space<vmem>>, vector<1x8x512xbf16>
      %203 = vector.shape_cast %202 : vector<1x8x512xbf16> to vector<8x512xbf16>
      %204 = arith.extf %203 : vector<8x512xbf16> to vector<8x512xf32>
      %205 = arith.truncf %199 : vector<8x128xf32> to vector<8x128xbf16>
      %c0_94 = arith.constant 0 : index
      %c0_95 = arith.constant 0 : index
      %206 = vector.load %arg5[%c0_94, %c0_95] : memref<128x512xbf16, #tpu.memory_space<vmem>>, vector<128x512xbf16>
      %cst_96 = arith.constant dense<0.000000e+00> : vector<8x512xf32>
      %207 = tpu.matmul %205, %206, %cst_96 {dimension_numbers = #tpu.dot_dimension_numbers<[1], [0], [0], [1], [0, 0, 1, 1], [], []>} : vector<8x128xbf16>, vector<128x512xbf16>, vector<8x512xf32> -> vector<8x512xf32>
      %208 = arith.addf %204, %207 : vector<8x512xf32>
      %209 = vector.extract_strided_slice %208 {offsets = [0, 0], sizes = [8, 128], strides = [1, 1]} : vector<8x512xf32> to vector<8x128xf32>
      %210 = arith.negf %209 : vector<8x128xf32>
      %211 = math.exp %210 : vector<8x128xf32>
      %cst_97 = arith.constant 1.000000e+00 : f32
      %212 = vector.broadcast %cst_97 : f32 to vector<8x128xf32>
      %213 = arith.addf %212, %211 : vector<8x128xf32>
      %214 = arith.divf %212, %213 : vector<8x128xf32>
      %215 = vector.extract_strided_slice %208 {offsets = [0, 128], sizes = [8, 128], strides = [1, 1]} : vector<8x512xf32> to vector<8x128xf32>
      %216 = arith.negf %215 : vector<8x128xf32>
      %217 = math.exp %216 : vector<8x128xf32>
      %cst_98 = arith.constant 1.000000e+00 : f32
      %218 = vector.broadcast %cst_98 : f32 to vector<8x128xf32>
      %219 = arith.addf %218, %217 : vector<8x128xf32>
      %220 = arith.divf %218, %219 : vector<8x128xf32>
      %221 = vector.extract_strided_slice %208 {offsets = [0, 256], sizes = [8, 128], strides = [1, 1]} : vector<8x512xf32> to vector<8x128xf32>
      %222 = math.tanh %221 : vector<8x128xf32>
      %223 = vector.extract_strided_slice %208 {offsets = [0, 384], sizes = [8, 128], strides = [1, 1]} : vector<8x512xf32> to vector<8x128xf32>
      %224 = arith.negf %223 : vector<8x128xf32>
      %225 = math.exp %224 : vector<8x128xf32>
      %cst_99 = arith.constant 1.000000e+00 : f32
      %226 = vector.broadcast %cst_99 : f32 to vector<8x128xf32>
      %227 = arith.addf %226, %225 : vector<8x128xf32>
      %228 = arith.divf %226, %227 : vector<8x128xf32>
      %229 = arith.mulf %220, %200 : vector<8x128xf32>
      %230 = arith.mulf %214, %222 : vector<8x128xf32>
      %231 = arith.addf %229, %230 : vector<8x128xf32>
      %232 = math.tanh %231 : vector<8x128xf32>
      %233 = arith.mulf %228, %232 : vector<8x128xf32>
      %234 = arith.addi %3, %c4_i32 : i32
      %c8_i32_100 = arith.constant 8 : i32
      %235 = arith.cmpi slt, %234, %c8_i32_100 : i32
      %236 = arith.select %235, %231, %200 : vector<8x128xf32>
      %c0_101 = arith.constant 0 : index
      %c0_102 = arith.constant 0 : index
      %237 = vector.load %arg10[%c0_101, %c0_102] : memref<8x128xf32, #tpu.memory_space<vmem>>, vector<8x128xf32>
      tpu.vector_store %arg10[%c0_101, %c0_102], %236 {strides = array<i32>} : memref<8x128xf32, #tpu.memory_space<vmem>>, vector<8x128xf32>,
      %238 = arith.select %235, %233, %199 : vector<8x128xf32>
      %c0_103 = arith.constant 0 : index
      %c0_104 = arith.constant 0 : index
      %239 = vector.load %arg9[%c0_103, %c0_104] : memref<8x128xf32, #tpu.memory_space<vmem>>, vector<8x128xf32>
      tpu.vector_store %arg9[%c0_103, %c0_104], %238 {strides = array<i32>} : memref<8x128xf32, #tpu.memory_space<vmem>>, vector<8x128xf32>,
      %240 = arith.truncf %233 : vector<8x128xf32> to vector<8x128xbf16>
      %241 = arith.index_cast %c4_i32 : i32 to index
      %c0_105 = arith.constant 0 : index
      %c0_106 = arith.constant 0 : index
      %242 = vector.load %arg6[%241, %c0_105, %c0_106] : memref<8x8x128xbf16, #tpu.memory_space<vmem>>, vector<1x8x128xbf16>
      %243 = vector.shape_cast %242 : vector<1x8x128xbf16> to vector<8x128xbf16>
      %244 = vector.shape_cast %240 : vector<8x128xbf16> to vector<1x8x128xbf16>
      tpu.vector_store %arg6[%241, %c0_105, %c0_106], %244 {strides = array<i32>} : memref<8x8x128xbf16, #tpu.memory_space<vmem>>, vector<1x8x128xbf16>,
      %c5_i32 = arith.constant 5 : i32
      %c0_107 = arith.constant 0 : index
      %c0_108 = arith.constant 0 : index
      %245 = vector.load %arg9[%c0_107, %c0_108] : memref<8x128xf32, #tpu.memory_space<vmem>>, vector<8x128xf32>
      %c0_109 = arith.constant 0 : index
      %c0_110 = arith.constant 0 : index
      %246 = vector.load %arg10[%c0_109, %c0_110] : memref<8x128xf32, #tpu.memory_space<vmem>>, vector<8x128xf32>
      %247 = arith.index_cast %c5_i32 : i32 to index
      %c0_111 = arith.constant 0 : index
      %c0_112 = arith.constant 0 : index
      %248 = vector.load %arg4[%247, %c0_111, %c0_112] : memref<8x8x512xbf16, #tpu.memory_space<vmem>>, vector<1x8x512xbf16>
      %249 = vector.shape_cast %248 : vector<1x8x512xbf16> to vector<8x512xbf16>
      %250 = arith.extf %249 : vector<8x512xbf16> to vector<8x512xf32>
      %251 = arith.truncf %245 : vector<8x128xf32> to vector<8x128xbf16>
      %c0_113 = arith.constant 0 : index
      %c0_114 = arith.constant 0 : index
      %252 = vector.load %arg5[%c0_113, %c0_114] : memref<128x512xbf16, #tpu.memory_space<vmem>>, vector<128x512xbf16>
      %cst_115 = arith.constant dense<0.000000e+00> : vector<8x512xf32>
      %253 = tpu.matmul %251, %252, %cst_115 {dimension_numbers = #tpu.dot_dimension_numbers<[1], [0], [0], [1], [0, 0, 1, 1], [], []>} : vector<8x128xbf16>, vector<128x512xbf16>, vector<8x512xf32> -> vector<8x512xf32>
      %254 = arith.addf %250, %253 : vector<8x512xf32>
      %255 = vector.extract_strided_slice %254 {offsets = [0, 0], sizes = [8, 128], strides = [1, 1]} : vector<8x512xf32> to vector<8x128xf32>
      %256 = arith.negf %255 : vector<8x128xf32>
      %257 = math.exp %256 : vector<8x128xf32>
      %cst_116 = arith.constant 1.000000e+00 : f32
      %258 = vector.broadcast %cst_116 : f32 to vector<8x128xf32>
      %259 = arith.addf %258, %257 : vector<8x128xf32>
      %260 = arith.divf %258, %259 : vector<8x128xf32>
      %261 = vector.extract_strided_slice %254 {offsets = [0, 128], sizes = [8, 128], strides = [1, 1]} : vector<8x512xf32> to vector<8x128xf32>
      %262 = arith.negf %261 : vector<8x128xf32>
      %263 = math.exp %262 : vector<8x128xf32>
      %cst_117 = arith.constant 1.000000e+00 : f32
      %264 = vector.broadcast %cst_117 : f32 to vector<8x128xf32>
      %265 = arith.addf %264, %263 : vector<8x128xf32>
      %266 = arith.divf %264, %265 : vector<8x128xf32>
      %267 = vector.extract_strided_slice %254 {offsets = [0, 256], sizes = [8, 128], strides = [1, 1]} : vector<8x512xf32> to vector<8x128xf32>
      %268 = math.tanh %267 : vector<8x128xf32>
      %269 = vector.extract_strided_slice %254 {offsets = [0, 384], sizes = [8, 128], strides = [1, 1]} : vector<8x512xf32> to vector<8x128xf32>
      %270 = arith.negf %269 : vector<8x128xf32>
      %271 = math.exp %270 : vector<8x128xf32>
      %cst_118 = arith.constant 1.000000e+00 : f32
      %272 = vector.broadcast %cst_118 : f32 to vector<8x128xf32>
      %273 = arith.addf %272, %271 : vector<8x128xf32>
      %274 = arith.divf %272, %273 : vector<8x128xf32>
      %275 = arith.mulf %266, %246 : vector<8x128xf32>
      %276 = arith.mulf %260, %268 : vector<8x128xf32>
      %277 = arith.addf %275, %276 : vector<8x128xf32>
      %278 = math.tanh %277 : vector<8x128xf32>
      %279 = arith.mulf %274, %278 : vector<8x128xf32>
      %280 = arith.addi %3, %c5_i32 : i32
      %c8_i32_119 = arith.constant 8 : i32
      %281 = arith.cmpi slt, %280, %c8_i32_119 : i32
      %282 = arith.select %281, %277, %246 : vector<8x128xf32>
      %c0_120 = arith.constant 0 : index
      %c0_121 = arith.constant 0 : index
      %283 = vector.load %arg10[%c0_120, %c0_121] : memref<8x128xf32, #tpu.memory_space<vmem>>, vector<8x128xf32>
      tpu.vector_store %arg10[%c0_120, %c0_121], %282 {strides = array<i32>} : memref<8x128xf32, #tpu.memory_space<vmem>>, vector<8x128xf32>,
      %284 = arith.select %281, %279, %245 : vector<8x128xf32>
      %c0_122 = arith.constant 0 : index
      %c0_123 = arith.constant 0 : index
      %285 = vector.load %arg9[%c0_122, %c0_123] : memref<8x128xf32, #tpu.memory_space<vmem>>, vector<8x128xf32>
      tpu.vector_store %arg9[%c0_122, %c0_123], %284 {strides = array<i32>} : memref<8x128xf32, #tpu.memory_space<vmem>>, vector<8x128xf32>,
      %286 = arith.truncf %279 : vector<8x128xf32> to vector<8x128xbf16>
      %287 = arith.index_cast %c5_i32 : i32 to index
      %c0_124 = arith.constant 0 : index
      %c0_125 = arith.constant 0 : index
      %288 = vector.load %arg6[%287, %c0_124, %c0_125] : memref<8x8x128xbf16, #tpu.memory_space<vmem>>, vector<1x8x128xbf16>
      %289 = vector.shape_cast %288 : vector<1x8x128xbf16> to vector<8x128xbf16>
      %290 = vector.shape_cast %286 : vector<8x128xbf16> to vector<1x8x128xbf16>
      tpu.vector_store %arg6[%287, %c0_124, %c0_125], %290 {strides = array<i32>} : memref<8x8x128xbf16, #tpu.memory_space<vmem>>, vector<1x8x128xbf16>,
      %c6_i32 = arith.constant 6 : i32
      %c0_126 = arith.constant 0 : index
      %c0_127 = arith.constant 0 : index
      %291 = vector.load %arg9[%c0_126, %c0_127] : memref<8x128xf32, #tpu.memory_space<vmem>>, vector<8x128xf32>
      %c0_128 = arith.constant 0 : index
      %c0_129 = arith.constant 0 : index
      %292 = vector.load %arg10[%c0_128, %c0_129] : memref<8x128xf32, #tpu.memory_space<vmem>>, vector<8x128xf32>
      %293 = arith.index_cast %c6_i32 : i32 to index
      %c0_130 = arith.constant 0 : index
      %c0_131 = arith.constant 0 : index
      %294 = vector.load %arg4[%293, %c0_130, %c0_131] : memref<8x8x512xbf16, #tpu.memory_space<vmem>>, vector<1x8x512xbf16>
      %295 = vector.shape_cast %294 : vector<1x8x512xbf16> to vector<8x512xbf16>
      %296 = arith.extf %295 : vector<8x512xbf16> to vector<8x512xf32>
      %297 = arith.truncf %291 : vector<8x128xf32> to vector<8x128xbf16>
      %c0_132 = arith.constant 0 : index
      %c0_133 = arith.constant 0 : index
      %298 = vector.load %arg5[%c0_132, %c0_133] : memref<128x512xbf16, #tpu.memory_space<vmem>>, vector<128x512xbf16>
      %cst_134 = arith.constant dense<0.000000e+00> : vector<8x512xf32>
      %299 = tpu.matmul %297, %298, %cst_134 {dimension_numbers = #tpu.dot_dimension_numbers<[1], [0], [0], [1], [0, 0, 1, 1], [], []>} : vector<8x128xbf16>, vector<128x512xbf16>, vector<8x512xf32> -> vector<8x512xf32>
      %300 = arith.addf %296, %299 : vector<8x512xf32>
      %301 = vector.extract_strided_slice %300 {offsets = [0, 0], sizes = [8, 128], strides = [1, 1]} : vector<8x512xf32> to vector<8x128xf32>
      %302 = arith.negf %301 : vector<8x128xf32>
      %303 = math.exp %302 : vector<8x128xf32>
      %cst_135 = arith.constant 1.000000e+00 : f32
      %304 = vector.broadcast %cst_135 : f32 to vector<8x128xf32>
      %305 = arith.addf %304, %303 : vector<8x128xf32>
      %306 = arith.divf %304, %305 : vector<8x128xf32>
      %307 = vector.extract_strided_slice %300 {offsets = [0, 128], sizes = [8, 128], strides = [1, 1]} : vector<8x512xf32> to vector<8x128xf32>
      %308 = arith.negf %307 : vector<8x128xf32>
      %309 = math.exp %308 : vector<8x128xf32>
      %cst_136 = arith.constant 1.000000e+00 : f32
      %310 = vector.broadcast %cst_136 : f32 to vector<8x128xf32>
      %311 = arith.addf %310, %309 : vector<8x128xf32>
      %312 = arith.divf %310, %311 : vector<8x128xf32>
      %313 = vector.extract_strided_slice %300 {offsets = [0, 256], sizes = [8, 128], strides = [1, 1]} : vector<8x512xf32> to vector<8x128xf32>
      %314 = math.tanh %313 : vector<8x128xf32>
      %315 = vector.extract_strided_slice %300 {offsets = [0, 384], sizes = [8, 128], strides = [1, 1]} : vector<8x512xf32> to vector<8x128xf32>
      %316 = arith.negf %315 : vector<8x128xf32>
      %317 = math.exp %316 : vector<8x128xf32>
      %cst_137 = arith.constant 1.000000e+00 : f32
      %318 = vector.broadcast %cst_137 : f32 to vector<8x128xf32>
      %319 = arith.addf %318, %317 : vector<8x128xf32>
      %320 = arith.divf %318, %319 : vector<8x128xf32>
      %321 = arith.mulf %312, %292 : vector<8x128xf32>
      %322 = arith.mulf %306, %314 : vector<8x128xf32>
      %323 = arith.addf %321, %322 : vector<8x128xf32>
      %324 = math.tanh %323 : vector<8x128xf32>
      %325 = arith.mulf %320, %324 : vector<8x128xf32>
      %326 = arith.addi %3, %c6_i32 : i32
      %c8_i32_138 = arith.constant 8 : i32
      %327 = arith.cmpi slt, %326, %c8_i32_138 : i32
      %328 = arith.select %327, %323, %292 : vector<8x128xf32>
      %c0_139 = arith.constant 0 : index
      %c0_140 = arith.constant 0 : index
      %329 = vector.load %arg10[%c0_139, %c0_140] : memref<8x128xf32, #tpu.memory_space<vmem>>, vector<8x128xf32>
      tpu.vector_store %arg10[%c0_139, %c0_140], %328 {strides = array<i32>} : memref<8x128xf32, #tpu.memory_space<vmem>>, vector<8x128xf32>,
      %330 = arith.select %327, %325, %291 : vector<8x128xf32>
      %c0_141 = arith.constant 0 : index
      %c0_142 = arith.constant 0 : index
      %331 = vector.load %arg9[%c0_141, %c0_142] : memref<8x128xf32, #tpu.memory_space<vmem>>, vector<8x128xf32>
      tpu.vector_store %arg9[%c0_141, %c0_142], %330 {strides = array<i32>} : memref<8x128xf32, #tpu.memory_space<vmem>>, vector<8x128xf32>,
      %332 = arith.truncf %325 : vector<8x128xf32> to vector<8x128xbf16>
      %333 = arith.index_cast %c6_i32 : i32 to index
      %c0_143 = arith.constant 0 : index
      %c0_144 = arith.constant 0 : index
      %334 = vector.load %arg6[%333, %c0_143, %c0_144] : memref<8x8x128xbf16, #tpu.memory_space<vmem>>, vector<1x8x128xbf16>
      %335 = vector.shape_cast %334 : vector<1x8x128xbf16> to vector<8x128xbf16>
      %336 = vector.shape_cast %332 : vector<8x128xbf16> to vector<1x8x128xbf16>
      tpu.vector_store %arg6[%333, %c0_143, %c0_144], %336 {strides = array<i32>} : memref<8x8x128xbf16, #tpu.memory_space<vmem>>, vector<1x8x128xbf16>,
      %c7_i32 = arith.constant 7 : i32
      %c0_145 = arith.constant 0 : index
      %c0_146 = arith.constant 0 : index
      %337 = vector.load %arg9[%c0_145, %c0_146] : memref<8x128xf32, #tpu.memory_space<vmem>>, vector<8x128xf32>
      %c0_147 = arith.constant 0 : index
      %c0_148 = arith.constant 0 : index
      %338 = vector.load %arg10[%c0_147, %c0_148] : memref<8x128xf32, #tpu.memory_space<vmem>>, vector<8x128xf32>
      %339 = arith.index_cast %c7_i32 : i32 to index
      %c0_149 = arith.constant 0 : index
      %c0_150 = arith.constant 0 : index
      %340 = vector.load %arg4[%339, %c0_149, %c0_150] : memref<8x8x512xbf16, #tpu.memory_space<vmem>>, vector<1x8x512xbf16>
      %341 = vector.shape_cast %340 : vector<1x8x512xbf16> to vector<8x512xbf16>
      %342 = arith.extf %341 : vector<8x512xbf16> to vector<8x512xf32>
      %343 = arith.truncf %337 : vector<8x128xf32> to vector<8x128xbf16>
      %c0_151 = arith.constant 0 : index
      %c0_152 = arith.constant 0 : index
      %344 = vector.load %arg5[%c0_151, %c0_152] : memref<128x512xbf16, #tpu.memory_space<vmem>>, vector<128x512xbf16>
      %cst_153 = arith.constant dense<0.000000e+00> : vector<8x512xf32>
      %345 = tpu.matmul %343, %344, %cst_153 {dimension_numbers = #tpu.dot_dimension_numbers<[1], [0], [0], [1], [0, 0, 1, 1], [], []>} : vector<8x128xbf16>, vector<128x512xbf16>, vector<8x512xf32> -> vector<8x512xf32>
      %346 = arith.addf %342, %345 : vector<8x512xf32>
      %347 = vector.extract_strided_slice %346 {offsets = [0, 0], sizes = [8, 128], strides = [1, 1]} : vector<8x512xf32> to vector<8x128xf32>
      %348 = arith.negf %347 : vector<8x128xf32>
      %349 = math.exp %348 : vector<8x128xf32>
      %cst_154 = arith.constant 1.000000e+00 : f32
      %350 = vector.broadcast %cst_154 : f32 to vector<8x128xf32>
      %351 = arith.addf %350, %349 : vector<8x128xf32>
      %352 = arith.divf %350, %351 : vector<8x128xf32>
      %353 = vector.extract_strided_slice %346 {offsets = [0, 128], sizes = [8, 128], strides = [1, 1]} : vector<8x512xf32> to vector<8x128xf32>
      %354 = arith.negf %353 : vector<8x128xf32>
      %355 = math.exp %354 : vector<8x128xf32>
      %cst_155 = arith.constant 1.000000e+00 : f32
      %356 = vector.broadcast %cst_155 : f32 to vector<8x128xf32>
      %357 = arith.addf %356, %355 : vector<8x128xf32>
      %358 = arith.divf %356, %357 : vector<8x128xf32>
      %359 = vector.extract_strided_slice %346 {offsets = [0, 256], sizes = [8, 128], strides = [1, 1]} : vector<8x512xf32> to vector<8x128xf32>
      %360 = math.tanh %359 : vector<8x128xf32>
      %361 = vector.extract_strided_slice %346 {offsets = [0, 384], sizes = [8, 128], strides = [1, 1]} : vector<8x512xf32> to vector<8x128xf32>
      %362 = arith.negf %361 : vector<8x128xf32>
      %363 = math.exp %362 : vector<8x128xf32>
      %cst_156 = arith.constant 1.000000e+00 : f32
      %364 = vector.broadcast %cst_156 : f32 to vector<8x128xf32>
      %365 = arith.addf %364, %363 : vector<8x128xf32>
      %366 = arith.divf %364, %365 : vector<8x128xf32>
      %367 = arith.mulf %358, %338 : vector<8x128xf32>
      %368 = arith.mulf %352, %360 : vector<8x128xf32>
      %369 = arith.addf %367, %368 : vector<8x128xf32>
      %370 = math.tanh %369 : vector<8x128xf32>
      %371 = arith.mulf %366, %370 : vector<8x128xf32>
      %372 = arith.addi %3, %c7_i32 : i32
      %c8_i32_157 = arith.constant 8 : i32
      %373 = arith.cmpi slt, %372, %c8_i32_157 : i32
      %374 = arith.select %373, %369, %338 : vector<8x128xf32>
      %c0_158 = arith.constant 0 : index
      %c0_159 = arith.constant 0 : index
      %375 = vector.load %arg10[%c0_158, %c0_159] : memref<8x128xf32, #tpu.memory_space<vmem>>, vector<8x128xf32>
      tpu.vector_store %arg10[%c0_158, %c0_159], %374 {strides = array<i32>} : memref<8x128xf32, #tpu.memory_space<vmem>>, vector<8x128xf32>,
      %376 = arith.select %373, %371, %337 : vector<8x128xf32>
      %c0_160 = arith.constant 0 : index
      %c0_161 = arith.constant 0 : index
      %377 = vector.load %arg9[%c0_160, %c0_161] : memref<8x128xf32, #tpu.memory_space<vmem>>, vector<8x128xf32>
      tpu.vector_store %arg9[%c0_160, %c0_161], %376 {strides = array<i32>} : memref<8x128xf32, #tpu.memory_space<vmem>>, vector<8x128xf32>,
      %378 = arith.truncf %371 : vector<8x128xf32> to vector<8x128xbf16>
      %379 = arith.index_cast %c7_i32 : i32 to index
      %c0_162 = arith.constant 0 : index
      %c0_163 = arith.constant 0 : index
      %380 = vector.load %arg6[%379, %c0_162, %c0_163] : memref<8x8x128xbf16, #tpu.memory_space<vmem>>, vector<1x8x128xbf16>
      %381 = vector.shape_cast %380 : vector<1x8x128xbf16> to vector<8x128xbf16>
      %382 = vector.shape_cast %378 : vector<8x128xbf16> to vector<1x8x128xbf16>
      tpu.vector_store %arg6[%379, %c0_162, %c0_163], %382 {strides = array<i32>} : memref<8x8x128xbf16, #tpu.memory_space<vmem>>, vector<1x8x128xbf16>,
      %c8_i32_164 = arith.constant 8 : i32
    } else {
    }
    %c0 = arith.constant 0 : index
    %c0_5 = arith.constant 0 : index
    %11 = vector.load %arg9[%c0, %c0_5] : memref<8x128xf32, #tpu.memory_space<vmem>>, vector<8x128xf32>
    %c0_6 = arith.constant 0 : index
    %c0_7 = arith.constant 0 : index
    %12 = vector.load %arg7[%c0_6, %c0_7] : memref<8x128xf32, #tpu.memory_space<vmem>>, vector<8x128xf32>
    tpu.vector_store %arg7[%c0_6, %c0_7], %11 {strides = array<i32>} : memref<8x128xf32, #tpu.memory_space<vmem>>, vector<8x128xf32>,
    %c0_8 = arith.constant 0 : index
    %c0_9 = arith.constant 0 : index
    %13 = vector.load %arg10[%c0_8, %c0_9] : memref<8x128xf32, #tpu.memory_space<vmem>>, vector<8x128xf32>
    %c0_10 = arith.constant 0 : index
    %c0_11 = arith.constant 0 : index
    %14 = vector.load %arg8[%c0_10, %c0_11] : memref<8x128xf32, #tpu.memory_space<vmem>>, vector<8x128xf32>
    tpu.vector_store %arg8[%c0_10, %c0_11], %13 {strides = array<i32>} : memref<8x128xf32, #tpu.memory_space<vmem>>, vector<8x128xf32>,
    return
  }
  func.func @transform_0(%arg0: i32, %arg1: i32) -> (i32, i32) {
    %c0_i32 = arith.constant 0 : i32
    %c0_i32_0 = arith.constant 0 : i32
    return %arg0, %c0_i32 : i32, i32
  }
  func.func @transform_1(%arg0: i32, %arg1: i32) -> (i32, i32) {
    %c0_i32 = arith.constant 0 : i32
    %c0_i32_0 = arith.constant 0 : i32
    return %arg0, %c0_i32 : i32, i32
  }
  func.func @transform_2(%arg0: i32, %arg1: i32) -> (i32, i32, i32) {
    %c0_i32 = arith.constant 0 : i32
    %c0_i32_0 = arith.constant 0 : i32
    return %arg1, %arg0, %c0_i32 : i32, i32, i32
  }
  func.func @transform_3(%arg0: i32, %arg1: i32) -> (i32, i32) {
    %c0_i32 = arith.constant 0 : i32
    %c0_i32_0 = arith.constant 0 : i32
    %c0_i32_1 = arith.constant 0 : i32
    return %c0_i32, %c0_i32_0 : i32, i32
  }
  func.func @transform_4(%arg0: i32, %arg1: i32) -> (i32, i32, i32) {
    %c0_i32 = arith.constant 0 : i32
    %c0_i32_0 = arith.constant 0 : i32
    return %arg1, %arg0, %c0_i32 : i32, i32, i32
  }
  func.func @transform_5(%arg0: i32, %arg1: i32) -> (i32, i32) {
    %c0_i32 = arith.constant 0 : i32
    %c0_i32_0 = arith.constant 0 : i32
    return %arg0, %c0_i32 : i32, i32
  }
  func.func @transform_6(%arg0: i32, %arg1: i32) -> (i32, i32) {
    %c0_i32 = arith.constant 0 : i32
    %c0_i32_0 = arith.constant 0 : i32
    return %arg0, %c0_i32 : i32, i32
  }
}

module attributes {stable_mosaic.version = 11 : i64} {
  func.func @_mlp_kernel(%arg0: i32, %arg1: memref<16x32xbf16, #tpu.memory_space<vmem>>, %arg2: memref<32x32xbf16, #tpu.memory_space<vmem>>, %arg3: memref<1x32xf32, #tpu.memory_space<vmem>>, %arg4: memref<32x128xbf16, #tpu.memory_space<vmem>>, %arg5: memref<1x128xf32, #tpu.memory_space<vmem>>, %arg6: memref<16x128xf32, #tpu.memory_space<vmem>>) attributes {dimension_semantics = [#tpu.dimension_semantics<parallel>], iteration_bounds = array<i64: 1>, scalar_prefetch = 0 : i64, scratch_operands = 0 : i64, tpu.core_type = #tpu.core_type<tc>, window_params = [{transform_indices = @transform_0, window_bounds = array<i64: 16, 32>}, {pipeline_mode = #tpu.pipeline_mode<synchronous>, transform_indices = @transform_1, window_bounds = array<i64: 32, 32>}, {pipeline_mode = #tpu.pipeline_mode<synchronous>, transform_indices = @transform_2, window_bounds = array<i64: 1, 32>}, {pipeline_mode = #tpu.pipeline_mode<synchronous>, transform_indices = @transform_3, window_bounds = array<i64: 32, 128>}, {pipeline_mode = #tpu.pipeline_mode<synchronous>, transform_indices = @transform_4, window_bounds = array<i64: 1, 128>}, {transform_indices = @transform_5, window_bounds = array<i64: 16, 128>}]} {
    %c0 = arith.constant 0 : index
    %c0_0 = arith.constant 0 : index
    %0 = vector.load %arg1[%c0, %c0_0] : memref<16x32xbf16, #tpu.memory_space<vmem>>, vector<16x32xbf16>
    %c0_1 = arith.constant 0 : index
    %c0_2 = arith.constant 0 : index
    %1 = vector.load %arg2[%c0_1, %c0_2] : memref<32x32xbf16, #tpu.memory_space<vmem>>, vector<32x32xbf16>
    %cst = arith.constant dense<0.000000e+00> : vector<16x32xf32>
    %2 = tpu.matmul %0, %1, %cst {dimension_numbers = #tpu.dot_dimension_numbers<[1], [0], [0], [1], [0, 0, 1, 1], [], []>} : vector<16x32xbf16>, vector<32x32xbf16>, vector<16x32xf32> -> vector<16x32xf32>
    %c0_3 = arith.constant 0 : index
    %c0_4 = arith.constant 0 : index
    %3 = vector.load %arg3[%c0_3, %c0_4] : memref<1x32xf32, #tpu.memory_space<vmem>>, vector<1x32xf32>
    %4 = vector.broadcast %3 : vector<1x32xf32> to vector<16x32xf32>
    %5 = arith.addf %2, %4 : vector<16x32xf32>
    %6 = math.tanh %5 : vector<16x32xf32>
    %7 = arith.truncf %6 : vector<16x32xf32> to vector<16x32xbf16>
    %c0_5 = arith.constant 0 : index
    %c0_6 = arith.constant 0 : index
    %8 = vector.load %arg4[%c0_5, %c0_6] : memref<32x128xbf16, #tpu.memory_space<vmem>>, vector<32x128xbf16>
    %cst_7 = arith.constant dense<0.000000e+00> : vector<16x128xf32>
    %9 = tpu.matmul %7, %8, %cst_7 {dimension_numbers = #tpu.dot_dimension_numbers<[1], [0], [0], [1], [0, 0, 1, 1], [], []>} : vector<16x32xbf16>, vector<32x128xbf16>, vector<16x128xf32> -> vector<16x128xf32>
    %c0_8 = arith.constant 0 : index
    %c0_9 = arith.constant 0 : index
    %10 = vector.load %arg5[%c0_8, %c0_9] : memref<1x128xf32, #tpu.memory_space<vmem>>, vector<1x128xf32>
    %11 = vector.broadcast %10 : vector<1x128xf32> to vector<16x128xf32>
    %12 = arith.addf %9, %11 : vector<16x128xf32>
    %c0_10 = arith.constant 0 : index
    %c0_11 = arith.constant 0 : index
    %13 = vector.load %arg6[%c0_10, %c0_11] : memref<16x128xf32, #tpu.memory_space<vmem>>, vector<16x128xf32>
    tpu.vector_store %arg6[%c0_10, %c0_11], %12 {strides = array<i32>} : memref<16x128xf32, #tpu.memory_space<vmem>>, vector<16x128xf32>,
    return
  }
  func.func @transform_0(%arg0: i32) -> (i32, i32) {
    %c0_i32 = arith.constant 0 : i32
    %c0_i32_0 = arith.constant 0 : i32
    return %arg0, %c0_i32 : i32, i32
  }
  func.func @transform_1(%arg0: i32) -> (i32, i32) {
    %c0_i32 = arith.constant 0 : i32
    %c0_i32_0 = arith.constant 0 : i32
    %c0_i32_1 = arith.constant 0 : i32
    return %c0_i32, %c0_i32_0 : i32, i32
  }
  func.func @transform_2(%arg0: i32) -> (i32, i32) {
    %c0_i32 = arith.constant 0 : i32
    %c0_i32_0 = arith.constant 0 : i32
    %c0_i32_1 = arith.constant 0 : i32
    return %c0_i32, %c0_i32_0 : i32, i32
  }
  func.func @transform_3(%arg0: i32) -> (i32, i32) {
    %c0_i32 = arith.constant 0 : i32
    %c0_i32_0 = arith.constant 0 : i32
    %c0_i32_1 = arith.constant 0 : i32
    return %c0_i32, %c0_i32_0 : i32, i32
  }
  func.func @transform_4(%arg0: i32) -> (i32, i32) {
    %c0_i32 = arith.constant 0 : i32
    %c0_i32_0 = arith.constant 0 : i32
    %c0_i32_1 = arith.constant 0 : i32
    return %c0_i32, %c0_i32_0 : i32, i32
  }
  func.func @transform_5(%arg0: i32) -> (i32, i32) {
    %c0_i32 = arith.constant 0 : i32
    %c0_i32_0 = arith.constant 0 : i32
    return %arg0, %c0_i32 : i32, i32
  }
}

</mosaic_0001>

<bundles_post_ra>
// kernel: decoder_forward.7
= control target key start
LH: loop header
LB: loop body
LE: loop exit
PB: predicated region body
PF: predicated region fallthrough
CT: control target
= control target key end

     0   :  { %v644_v1 = vmov 0   ;;  %v57_v37 = vlaneseq  ;;  %s872_s1 = inlined_call_operand.vmem [shape: bf16[128,512], index: 1, kind: input, shape index: {}]   ;;  %s873_s0 = inlined_call_operand.vmem [shape: bf16[64,128], index: 0, kind: input, shape index: {}]   ;;  %s874_s2 = inlined_call_operand.vmem [shape: f32[1,512], index: 2, kind: input, shape index: {}]   ;;  %s875_s3 = inlined_call_operand.vmem [shape: bf16[64,512], index: 3, kind: output, shape index: {}]  }
   0x1   :  { %v592_v0 = vld [vmem:[%s872_s1 + $0x4] ss:$16 sps:$4 sm:$0xff]   ;;  %293 = vmatprep.mubr.bf16.mxu0 %v644_v1  ;;  %366 = vmatprep.mubr.bf16.mxu1 %v644_v1  ;;  %v594_v2 = vld [vmem:[%s872_s1 + $0xc] ss:$16 sps:$4 sm:$0xff]   ;;  %v596_v3 = vld [vmem:[%s872_s1] ss:$16 sps:$4 sm:$0xff]  }
   0x2   :  { %261 = vmatprep.subr.bf16.mxu0 %v592_v0  ;;  %v597_v4 = vld [vmem:[%s872_s1 + $0x8] ss:$16 sps:$4 sm:$0xff]   ;;  %334 = vmatprep.subr.bf16.mxu1 %v594_v2  ;;  %v598_v5 = vld [vmem:[%s872_s1 + $0x24] ss:$16 sps:$4 sm:$0xff]   ;;  %v600_v6 = vld [vmem:[%s872_s1 + $0x2c] ss:$16 sps:$4 sm:$0xff]  }
   0x3   :  { %262 = vmatpush1.bf16.msra.mxu0 %v596_v3  ;;  %335 = vmatpush1.bf16.msra.mxu1 %v597_v4  ;;  %v602_v7 = vld [vmem:[%s872_s1 + $0x20] ss:$16 sps:$4 sm:$0xff]   ;;  %v603_v8 = vld [vmem:[%s872_s1 + $0x28] ss:$16 sps:$4 sm:$0xff]   ;;  %v604_v9 = vld [vmem:[%s872_s1 + $0x44] ss:$16 sps:$4 sm:$0xff]  }
   0x4   :  { %263 = vmatprep.subr.bf16.mxu0 %v598_v5  ;;  %336 = vmatprep.subr.bf16.mxu1 %v600_v6  ;;  %v606_v10 = vld [vmem:[%s872_s1 + $0x4c] ss:$16 sps:$4 sm:$0xff]   ;;  %v608_v11 = vld [vmem:[%s872_s1 + $0x40] ss:$16 sps:$4 sm:$0xff]   ;;  %v609_v12 = vld [vmem:[%s872_s1 + $0x48] ss:$16 sps:$4 sm:$0xff]  }
   0x5   :  { %v610_v13 = vld [vmem:[%s872_s1 + $0x64] ss:$16 sps:$4 sm:$0xff]   ;;  %v612_v14 = vld [vmem:[%s872_s1 + $0x6c] ss:$16 sps:$4 sm:$0xff]   ;;  %v614_v15 = vld [vmem:[%s872_s1 + $0x60] ss:$16 sps:$4 sm:$0xff]  }
   0x6   :  { %v615_v16 = vld [vmem:[%s872_s1 + $0x68] ss:$16 sps:$4 sm:$0xff]   ;;  %v616_v17 = vld [vmem:[%s872_s1 + $0x84] ss:$16 sps:$4 sm:$0xff]   ;;  %v618_v18 = vld [vmem:[%s872_s1 + $0x8c] ss:$16 sps:$4 sm:$0xff]  }
   0x7   :  { %264 = vmatpush1.bf16.msra.mxu0 %v602_v7  ;;  %337 = vmatpush1.bf16.msra.mxu1 %v603_v8  ;;  %v620_v19 = vld [vmem:[%s872_s1 + $0x80] ss:$16 sps:$4 sm:$0xff]   ;;  %v621_v20 = vld [vmem:[%s872_s1 + $0x88] ss:$16 sps:$4 sm:$0xff]   ;;  %v622_v21 = vld [vmem:[%s872_s1 + $0xa4] ss:$16 sps:$4 sm:$0xff]  }
   0x8   :  { %265 = vmatprep.subr.bf16.mxu0 %v604_v9  ;;  %338 = vmatprep.subr.bf16.mxu1 %v606_v10  ;;  %v624_v22 = vld [vmem:[%s872_s1 + $0xac] ss:$16 sps:$4 sm:$0xff]   ;;  %v626_v23 = vld [vmem:[%s872_s1 + $0xa0] ss:$16 sps:$4 sm:$0xff]   ;;  %v627_v24 = vld [vmem:[%s872_s1 + $0xa8] ss:$16 sps:$4 sm:$0xff]  }
   0x9   :  { %v628_v25 = vld [vmem:[%s872_s1 + $0xc4] ss:$16 sps:$4 sm:$0xff]   ;;  %v630_v26 = vld [vmem:[%s872_s1 + $0xcc] ss:$16 sps:$4 sm:$0xff]   ;;  %v632_v27 = vld [vmem:[%s872_s1 + $0xc0] ss:$16 sps:$4 sm:$0xff]  }
   0xa   :  { %v633_v28 = vld [vmem:[%s872_s1 + $0xc8] ss:$16 sps:$4 sm:$0xff]   ;;  %v634_v29 = vld [vmem:[%s872_s1 + $0xe4] ss:$16 sps:$4 sm:$0xff]   ;;  %v636_v30 = vld [vmem:[%s872_s1 + $0xec] ss:$16 sps:$4 sm:$0xff]  }
   0xb   :  { %266 = vmatpush1.bf16.msra.mxu0 %v608_v11  ;;  %339 = vmatpush1.bf16.msra.mxu1 %v609_v12  ;;  %v638_v31 = vld [vmem:[%s872_s1 + $0xe0] ss:$16 sps:$4 sm:$0xff]   ;;  %v639_v32 = vld [vmem:[%s872_s1 + $0xe8] ss:$16 sps:$4 sm:$0xff]   ;;  %v58_v38 = vshrl.u32 %v57_v37, 7 }
   0xc   :  { %267 = vmatprep.subr.bf16.mxu0 %v610_v13  ;;  %340 = vmatprep.subr.bf16.mxu1 %v612_v14  ;;  %v640_v33 = vld [vmem:[%s873_s0] sm:$0xff]   ;;  %v641_v34 = vld [vmem:[%s873_s0 + $0x8] sm:$0xff]   ;;  %v642_v35 = vld [vmem:[%s873_s0 + $0x10] sm:$0xff]  }
   0xd   :  { %v643_v36 = vld [vmem:[%s873_s0 + $0x18] sm:$0xff]   ;;  %v59_v39 = vsub.s32 0, %v58_v38  ;;  %v67_v40 = vsub.s32 2, %v58_v38  ;;  %v55_v41 = vld [vmem:[%s874_s2] sm:$0xf]  ;;  %v63_v42 = vsub.s32 1, %v58_v38 }
   0xe   :  { %v71_v43 = vsub.s32 3, %v58_v38 }
   0xf   :  { %268 = vmatpush1.bf16.msra.mxu0 %v614_v15  ;;  %341 = vmatpush1.bf16.msra.mxu1 %v615_v16  ;;  %v784_v44 = vrot.slane %v55_v41, %v59_v39  ;;  %v786_v45 = vrot.slane %v55_v41, %v67_v40  ;;  %v788_v46 = vrot.slane %v55_v41, %v63_v42 }
  0x10   :  { %269 = vmatprep.subr.bf16.mxu0 %v616_v17  ;;  %342 = vmatprep.subr.bf16.mxu1 %v618_v18  ;;  %v790_v47 = vrot.slane %v55_v41, %v71_v43 }
  0x13   :  { %270 = vmatpush1.bf16.msra.mxu0 %v620_v19  ;;  %343 = vmatpush1.bf16.msra.mxu1 %v621_v20 }
  0x14   :  { %271 = vmatprep.subr.bf16.mxu0 %v622_v21  ;;  %344 = vmatprep.subr.bf16.mxu1 %v624_v22 }
  0x17   :  { %272 = vmatpush1.bf16.msra.mxu0 %v626_v23  ;;  %345 = vmatpush1.bf16.msra.mxu1 %v627_v24 }
  0x18   :  { %273 = vmatprep.subr.bf16.mxu0 %v628_v25  ;;  %346 = vmatprep.subr.bf16.mxu1 %v630_v26 }
  0x1b   :  { %274 = vmatpush1.bf16.msra.mxu0 %v632_v27  ;;  %347 = vmatpush1.bf16.msra.mxu1 %v633_v28 }
  0x1c   :  { %275 = vmatprep.subr.bf16.mxu0 %v634_v29  ;;  %348 = vmatprep.subr.bf16.mxu1 %v636_v30 }
  0x1f   :  { %276 = vmatpush1.bf16.msra.mxu0 %v638_v31  ;;  %349 = vmatpush1.bf16.msra.mxu1 %v639_v32 }
  0x22   :  { %294 = vmatmul.mubr.bf16.vlgmr.msra.gmra.mrb[0].mxu0 %v640_v33  ;;  %367 = vmatmul.mubr.bf16.vlgmr.msra.gmra.mrb[0].mxu1 %v640_v33 }
  0x23   :  { %303 = vmatprep.mubr.bf16.mxu0 %v644_v1  ;;  %376 = vmatprep.mubr.bf16.mxu1 %v644_v1 }
  0x2a   :  { %304 = vmatmul.mubr.bf16.gmra.mrb[4].mxu0 %v641_v34  ;;  %377 = vmatmul.mubr.bf16.gmra.mrb[4].mxu1 %v641_v34 }
  0x2b   :  { %313 = vmatprep.mubr.bf16.mxu0 %v644_v1  ;;  %386 = vmatprep.mubr.bf16.mxu1 %v644_v1 }
  0x32   :  { %314 = vmatmul.mubr.bf16.gmra.mrb[8].mxu0 %v642_v35  ;;  %387 = vmatmul.mubr.bf16.gmra.mrb[8].mxu1 %v642_v35 }
  0x33   :  { %323 = vmatprep.mubr.bf16.mxu0 %v644_v1  ;;  %396 = vmatprep.mubr.bf16.mxu1 %v644_v1 }
  0x3a   :  { %324 = vmatmul.mubr.bf16.gmra.mrb[12].mxu0 %v643_v36  ;;  %397 = vmatmul.mubr.bf16.gmra.mrb[12].mxu1 %v643_v36 }
  0xf5   :  { %v295_v48 = vpop.f32.mrb[0].mxu0  ;;  %v368_v49 = vpop.f32.mrb[0].mxu1 }
  0xf6   :  { %v296_v50 = vadd.f32 %v295_v48, %v784_v44  ;;  %v369_v51 = vadd.f32 %v368_v49, %v786_v45  ;;  %v297_v52 = vpop.f32.mrb[1].mxu0  ;;  %v370_v53 = vpop.f32.mrb[1].mxu1 }
  0xf7   :  { %v298_v54 = vadd.f32 %v297_v52, %v788_v46  ;;  %v371_v55 = vadd.f32 %v370_v53, %v790_v47  ;;  %v299_v56 = vpop.f32.mrb[2].mxu0  ;;  %v372_v57 = vpop.f32.mrb[2].mxu1 }
  0xf8   :  { %v300_v58 = vadd.f32 %v299_v56, %v784_v44  ;;  %v373_v59 = vadd.f32 %v372_v57, %v786_v45  ;;  %v301_v60 = vpop.f32.mrb[3].mxu0  ;;  %v374_v61 = vpop.f32.mrb[3].mxu1 }
  0xf9   :  { %v575_v62 = vpack.c.bf16 %v298_v54, %v296_v50  ;;  %v576_v63 = vpack.c.bf16 %v371_v55, %v369_v51  ;;  %v302_v0 = vadd.f32 %v301_v60, %v788_v46  ;;  %v375_v1 = vadd.f32 %v374_v61, %v790_v47 }
  0xfb   :  { %503 = vst [vmem:[%s875_s3] sm:$0xff] %v575_v62  ;;  %504 = vst [vmem:[%s875_s3 + $0x8] sm:$0xff] %v576_v63  ;;  %v577_v2 = vpack.c.bf16 %v302_v0, %v300_v58  ;;  %v578_v3 = vpack.c.bf16 %v375_v1, %v373_v59 }
  0xfd   :  { %505 = vst [vmem:[%s875_s3 + $0x10] sm:$0xff] %v577_v2  ;;  %506 = vst [vmem:[%s875_s3 + $0x18] sm:$0xff] %v578_v3  ;;  %v305_v4 = vpop.f32.mrb[4].mxu0  ;;  %v378_v5 = vpop.f32.mrb[4].mxu1 }
  0xfe   :  { %v306_v6 = vadd.f32 %v305_v4, %v784_v44  ;;  %v379_v7 = vadd.f32 %v378_v5, %v786_v45  ;;  %v307_v8 = vpop.f32.mrb[5].mxu0  ;;  %v380_v9 = vpop.f32.mrb[5].mxu1 }
  0xff   :  { %v308_v10 = vadd.f32 %v307_v8, %v788_v46  ;;  %v381_v11 = vadd.f32 %v380_v9, %v790_v47  ;;  %v309_v12 = vpop.f32.mrb[6].mxu0  ;;  %v382_v13 = vpop.f32.mrb[6].mxu1 }
 0x100   :  { %v310_v14 = vadd.f32 %v309_v12, %v784_v44  ;;  %v383_v15 = vadd.f32 %v382_v13, %v786_v45  ;;  %v311_v16 = vpop.f32.mrb[7].mxu0  ;;  %v384_v17 = vpop.f32.mrb[7].mxu1 }
 0x101   :  { %v579_v18 = vpack.c.bf16 %v308_v10, %v306_v6  ;;  %v580_v19 = vpack.c.bf16 %v381_v11, %v379_v7  ;;  %v312_v20 = vadd.f32 %v311_v16, %v788_v46  ;;  %v385_v21 = vadd.f32 %v384_v17, %v790_v47 }
 0x103   :  { %507 = vst [vmem:[%s875_s3 + $0x20] sm:$0xff] %v579_v18  ;;  %508 = vst [vmem:[%s875_s3 + $0x28] sm:$0xff] %v580_v19  ;;  %v581_v22 = vpack.c.bf16 %v312_v20, %v310_v14  ;;  %v582_v23 = vpack.c.bf16 %v385_v21, %v383_v15 }
 0x105   :  { %509 = vst [vmem:[%s875_s3 + $0x30] sm:$0xff] %v581_v22  ;;  %510 = vst [vmem:[%s875_s3 + $0x38] sm:$0xff] %v582_v23  ;;  %v315_v24 = vpop.f32.mrb[8].mxu0  ;;  %v388_v25 = vpop.f32.mrb[8].mxu1 }
 0x106   :  { %v316_v26 = vadd.f32 %v315_v24, %v784_v44  ;;  %v389_v27 = vadd.f32 %v388_v25, %v786_v45  ;;  %v317_v28 = vpop.f32.mrb[9].mxu0  ;;  %v390_v29 = vpop.f32.mrb[9].mxu1 }
 0x107   :  { %v318_v30 = vadd.f32 %v317_v28, %v788_v46  ;;  %v391_v31 = vadd.f32 %v390_v29, %v790_v47  ;;  %v319_v32 = vpop.f32.mrb[10].mxu0  ;;  %v392_v33 = vpop.f32.mrb[10].mxu1 }
 0x108   :  { %v320_v34 = vadd.f32 %v319_v32, %v784_v44  ;;  %v393_v35 = vadd.f32 %v392_v33, %v786_v45  ;;  %v321_v36 = vpop.f32.mrb[11].mxu0  ;;  %v394_v37 = vpop.f32.mrb[11].mxu1 }
 0x109   :  { %v583_v38 = vpack.c.bf16 %v318_v30, %v316_v26  ;;  %v584_v39 = vpack.c.bf16 %v391_v31, %v389_v27  ;;  %v322_v40 = vadd.f32 %v321_v36, %v788_v46  ;;  %v395_v41 = vadd.f32 %v394_v37, %v790_v47 }
 0x10b   :  { %511 = vst [vmem:[%s875_s3 + $0x40] sm:$0xff] %v583_v38  ;;  %512 = vst [vmem:[%s875_s3 + $0x48] sm:$0xff] %v584_v39  ;;  %v585_v42 = vpack.c.bf16 %v322_v40, %v320_v34  ;;  %v586_v43 = vpack.c.bf16 %v395_v41, %v393_v35 }
 0x10d   :  { %513 = vst [vmem:[%s875_s3 + $0x50] sm:$0xff] %v585_v42  ;;  %514 = vst [vmem:[%s875_s3 + $0x58] sm:$0xff] %v586_v43  ;;  %v325_v48 = vpop.f32.mrb[12].mxu0  ;;  %v398_v49 = vpop.f32.mrb[12].mxu1 }
 0x10e   :  { %v326_v50 = vadd.f32 %v325_v48, %v784_v44  ;;  %v399_v51 = vadd.f32 %v398_v49, %v786_v45  ;;  %v327_v52 = vpop.f32.mrb[13].mxu0  ;;  %v400_v53 = vpop.f32.mrb[13].mxu1 }
 0x10f   :  { %v328_v54 = vadd.f32 %v327_v52, %v788_v46  ;;  %v401_v55 = vadd.f32 %v400_v53, %v790_v47  ;;  %v329_v56 = vpop.f32.mrb[14].mxu0  ;;  %v402_v57 = vpop.f32.mrb[14].mxu1 }
 0x110   :  { %v330_v58 = vadd.f32 %v329_v56, %v784_v44  ;;  %v403_v59 = vadd.f32 %v402_v57, %v786_v45  ;;  %v331_v60 = vpop.f32.mrb[15].mxu0  ;;  %v404_v61 = vpop.f32.mrb[15].mxu1 }
 0x111   :  { %v587_v62 = vpack.c.bf16 %v328_v54, %v326_v50  ;;  %v588_v63 = vpack.c.bf16 %v401_v55, %v399_v51  ;;  %v332_v0 = vadd.f32 %v331_v60, %v788_v46  ;;  %v405_v1 = vadd.f32 %v404_v61, %v790_v47 }
 0x113   :  { %515 = vst [vmem:[%s875_s3 + $0x60] sm:$0xff] %v587_v62  ;;  %516 = vst [vmem:[%s875_s3 + $0x68] sm:$0xff] %v588_v63  ;;  %v589_v2 = vpack.c.bf16 %v332_v0, %v330_v58  ;;  %v590_v44 = vpack.c.bf16 %v405_v1, %v403_v59 }
 0x115   :  { %517 = vst [vmem:[%s875_s3 + $0x70] sm:$0xff] %v589_v2  ;;  %518 = vst [vmem:[%s875_s3 + $0x78] sm:$0xff] %v590_v44 }

// kernel: decoder_forward.5
= control target key start
LH: loop header
LB: loop body
LE: loop exit
PB: predicated region body
PF: predicated region fallthrough
CT: control target
= control target key end

     0   :  { %v423_v1 = vmov 0   ;;  %vm89_vm0 = vcmask 130048   ;;  %v29_v9 = vlaneseq  ;;  %s567_s1 = inlined_call_operand.vmem [shape: bf16[16,512], index: 1, kind: input, shape index: {}]   ;;  %s568_s0 = inlined_call_operand.vmem [shape: bf16[64,16], index: 0, kind: input, shape index: {}]   ;;  %s569_s2 = inlined_call_operand.vmem [shape: f32[1,512], index: 2, kind: input, shape index: {}]   ;;  %s570_s3 = inlined_call_operand.vmem [shape: bf16[64,512], index: 3, kind: output, shape index: {}]  }
   0x1   :  { %v413_v0 = vld [vmem:[%s567_s1 + $0x4] ss:$16 sps:$4 sm:$0xff]   ;;  %134 = vmatprep.mubr.bf16.mxu0 %v423_v1  ;;  %207 = vmatprep.mubr.bf16.mxu1 %v423_v1  ;;  %v415_v2 = vld [vmem:[%s567_s1 + $0xc] ss:$16 sps:$4 sm:$0xff]   ;;  %v417_v3 = vld [vmem:[%s567_s1] ss:$16 sps:$4 sm:$0xff]  }
   0x2   :  { %102 = vmatprep.subr.bf16.mxu0 %v413_v0  ;;  %v418_v4 = vld [vmem:[%s567_s1 + $0x8] ss:$16 sps:$4 sm:$0xff]   ;;  %175 = vmatprep.subr.bf16.mxu1 %v415_v2  ;;  %v419_v5 = vld [vmem:[%s568_s0] sm:$0xff]   ;;  %v421_v7 = vld [vmem:[%s568_s0 + $0x10] sm:$0xff]   ;;  %v30_v10 = vshrl.u32 %v29_v9, 7 }
   0x3   :  { %103 = vmatpush1.bf16.msra.mxu0 %v417_v3  ;;  %176 = vmatpush1.bf16.msra.mxu1 %v418_v4  ;;  %v420_v6 = vld [vmem:[%s568_s0 + $0x8] sm:$0xff]   ;;  %v422_v8 = vld [vmem:[%s568_s0 + $0x18] sm:$0xff]   ;;  %v27_v13 = vld [vmem:[%s569_s2] sm:$0xf] }
   0x4   :  { %v31_v11 = vsub.s32 0, %v30_v10  ;;  %v39_v12 = vsub.s32 2, %v30_v10  ;;  %v35_v14 = vsub.s32 1, %v30_v10  ;;  %v43_v15 = vsub.s32 3, %v30_v10 }
   0x6   :  { %372 = vmatmul.mubr.msk.bf16.vlgmr.msra.gmra.mrb[0].mxu0 %vm89_vm0, %v419_v5  ;;  %376 = vmatmul.mubr.msk.bf16.vlgmr.msra.gmra.mrb[0].mxu1 %vm89_vm0, %v419_v5  ;;  %v479_v16 = vrot.slane %v27_v13, %v31_v11  ;;  %v481_v17 = vrot.slane %v27_v13, %v39_v12  ;;  %v483_v18 = vrot.slane %v27_v13, %v35_v14 }
   0x7   :  { %144 = vmatprep.mubr.bf16.mxu0 %v423_v1  ;;  %217 = vmatprep.mubr.bf16.mxu1 %v423_v1  ;;  %v485_v19 = vrot.slane %v27_v13, %v43_v15 }
   0xe   :  { %373 = vmatmul.mubr.msk.bf16.gmra.mrb[4].mxu0 %vm89_vm0, %v420_v6  ;;  %377 = vmatmul.mubr.msk.bf16.gmra.mrb[4].mxu1 %vm89_vm0, %v420_v6 }
   0xf   :  { %154 = vmatprep.mubr.bf16.mxu0 %v423_v1  ;;  %227 = vmatprep.mubr.bf16.mxu1 %v423_v1 }
  0x16   :  { %374 = vmatmul.mubr.msk.bf16.gmra.mrb[8].mxu0 %vm89_vm0, %v421_v7  ;;  %378 = vmatmul.mubr.msk.bf16.gmra.mrb[8].mxu1 %vm89_vm0, %v421_v7 }
  0x17   :  { %164 = vmatprep.mubr.bf16.mxu0 %v423_v1  ;;  %237 = vmatprep.mubr.bf16.mxu1 %v423_v1 }
  0x1e   :  { %375 = vmatmul.mubr.msk.bf16.gmra.mrb[12].mxu0 %vm89_vm0, %v422_v8  ;;  %379 = vmatmul.mubr.msk.bf16.gmra.mrb[12].mxu1 %vm89_vm0, %v422_v8 }
  0xd9   :  { %v136_v20 = vpop.f32.mrb[0].mxu0  ;;  %v209_v21 = vpop.f32.mrb[0].mxu1 }
  0xda   :  { %v137_v22 = vadd.f32 %v136_v20, %v479_v16  ;;  %v210_v23 = vadd.f32 %v209_v21, %v481_v17  ;;  %v138_v24 = vpop.f32.mrb[1].mxu0  ;;  %v211_v25 = vpop.f32.mrb[1].mxu1 }
  0xdb   :  { %v139_v26 = vadd.f32 %v138_v24, %v483_v18  ;;  %v212_v27 = vadd.f32 %v211_v25, %v485_v19  ;;  %v140_v28 = vpop.f32.mrb[2].mxu0  ;;  %v213_v29 = vpop.f32.mrb[2].mxu1 }
  0xdc   :  { %v141_v30 = vadd.f32 %v140_v28, %v479_v16  ;;  %v214_v31 = vadd.f32 %v213_v29, %v481_v17  ;;  %v142_v32 = vpop.f32.mrb[3].mxu0  ;;  %v215_v33 = vpop.f32.mrb[3].mxu1 }
  0xdd   :  { %v396_v34 = vpack.c.bf16 %v139_v26, %v137_v22  ;;  %v397_v35 = vpack.c.bf16 %v212_v27, %v210_v23  ;;  %v143_v36 = vadd.f32 %v142_v32, %v483_v18  ;;  %v216_v37 = vadd.f32 %v215_v33, %v485_v19 }
  0xdf   :  { %344 = vst [vmem:[%s570_s3] sm:$0xff] %v396_v34  ;;  %345 = vst [vmem:[%s570_s3 + $0x8] sm:$0xff] %v397_v35  ;;  %v398_v38 = vpack.c.bf16 %v143_v36, %v141_v30  ;;  %v399_v39 = vpack.c.bf16 %v216_v37, %v214_v31 }
  0xe1   :  { %346 = vst [vmem:[%s570_s3 + $0x10] sm:$0xff] %v398_v38  ;;  %347 = vst [vmem:[%s570_s3 + $0x18] sm:$0xff] %v399_v39  ;;  %v146_v40 = vpop.f32.mrb[4].mxu0  ;;  %v219_v41 = vpop.f32.mrb[4].mxu1 }
  0xe2   :  { %v147_v42 = vadd.f32 %v146_v40, %v479_v16  ;;  %v220_v43 = vadd.f32 %v219_v41, %v481_v17  ;;  %v148_v44 = vpop.f32.mrb[5].mxu0  ;;  %v221_v45 = vpop.f32.mrb[5].mxu1 }
  0xe3   :  { %v149_v46 = vadd.f32 %v148_v44, %v483_v18  ;;  %v222_v47 = vadd.f32 %v221_v45, %v485_v19  ;;  %v150_v48 = vpop.f32.mrb[6].mxu0  ;;  %v223_v49 = vpop.f32.mrb[6].mxu1 }
  0xe4   :  { %v151_v50 = vadd.f32 %v150_v48, %v479_v16  ;;  %v224_v51 = vadd.f32 %v223_v49, %v481_v17  ;;  %v152_v52 = vpop.f32.mrb[7].mxu0  ;;  %v225_v53 = vpop.f32.mrb[7].mxu1 }
  0xe5   :  { %v400_v54 = vpack.c.bf16 %v149_v46, %v147_v42  ;;  %v401_v55 = vpack.c.bf16 %v222_v47, %v220_v43  ;;  %v153_v56 = vadd.f32 %v152_v52, %v483_v18  ;;  %v226_v57 = vadd.f32 %v225_v53, %v485_v19 }
  0xe7   :  { %348 = vst [vmem:[%s570_s3 + $0x20] sm:$0xff] %v400_v54  ;;  %349 = vst [vmem:[%s570_s3 + $0x28] sm:$0xff] %v401_v55  ;;  %v402_v58 = vpack.c.bf16 %v153_v56, %v151_v50  ;;  %v403_v59 = vpack.c.bf16 %v226_v57, %v224_v51 }
  0xe9   :  { %350 = vst [vmem:[%s570_s3 + $0x30] sm:$0xff] %v402_v58  ;;  %351 = vst [vmem:[%s570_s3 + $0x38] sm:$0xff] %v403_v59  ;;  %v156_v60 = vpop.f32.mrb[8].mxu0  ;;  %v229_v61 = vpop.f32.mrb[8].mxu1 }
  0xea   :  { %v157_v62 = vadd.f32 %v156_v60, %v479_v16  ;;  %v230_v63 = vadd.f32 %v229_v61, %v481_v17  ;;  %v158_v0 = vpop.f32.mrb[9].mxu0  ;;  %v231_v1 = vpop.f32.mrb[9].mxu1 }
  0xeb   :  { %v159_v2 = vadd.f32 %v158_v0, %v483_v18  ;;  %v232_v3 = vadd.f32 %v231_v1, %v485_v19  ;;  %v160_v4 = vpop.f32.mrb[10].mxu0  ;;  %v233_v5 = vpop.f32.mrb[10].mxu1 }
  0xec   :  { %v161_v6 = vadd.f32 %v160_v4, %v479_v16  ;;  %v234_v7 = vadd.f32 %v233_v5, %v481_v17  ;;  %v162_v8 = vpop.f32.mrb[11].mxu0  ;;  %v235_v9 = vpop.f32.mrb[11].mxu1 }
  0xed   :  { %v404_v10 = vpack.c.bf16 %v159_v2, %v157_v62  ;;  %v405_v11 = vpack.c.bf16 %v232_v3, %v230_v63  ;;  %v163_v12 = vadd.f32 %v162_v8, %v483_v18  ;;  %v236_v13 = vadd.f32 %v235_v9, %v485_v19 }
  0xef   :  { %352 = vst [vmem:[%s570_s3 + $0x40] sm:$0xff] %v404_v10  ;;  %353 = vst [vmem:[%s570_s3 + $0x48] sm:$0xff] %v405_v11  ;;  %v406_v14 = vpack.c.bf16 %v163_v12, %v161_v6  ;;  %v407_v15 = vpack.c.bf16 %v236_v13, %v234_v7 }
  0xf1   :  { %354 = vst [vmem:[%s570_s3 + $0x50] sm:$0xff] %v406_v14  ;;  %355 = vst [vmem:[%s570_s3 + $0x58] sm:$0xff] %v407_v15  ;;  %v166_v20 = vpop.f32.mrb[12].mxu0  ;;  %v239_v21 = vpop.f32.mrb[12].mxu1 }
  0xf2   :  { %v167_v22 = vadd.f32 %v166_v20, %v479_v16  ;;  %v240_v23 = vadd.f32 %v239_v21, %v481_v17  ;;  %v168_v24 = vpop.f32.mrb[13].mxu0  ;;  %v241_v25 = vpop.f32.mrb[13].mxu1 }
  0xf3   :  { %v169_v26 = vadd.f32 %v168_v24, %v483_v18  ;;  %v242_v27 = vadd.f32 %v241_v25, %v485_v19  ;;  %v170_v28 = vpop.f32.mrb[14].mxu0  ;;  %v243_v29 = vpop.f32.mrb[14].mxu1 }
  0xf4   :  { %v171_v30 = vadd.f32 %v170_v28, %v479_v16  ;;  %v244_v31 = vadd.f32 %v243_v29, %v481_v17  ;;  %v172_v32 = vpop.f32.mrb[15].mxu0  ;;  %v245_v33 = vpop.f32.mrb[15].mxu1 }
  0xf5   :  { %v408_v34 = vpack.c.bf16 %v169_v26, %v167_v22  ;;  %v409_v35 = vpack.c.bf16 %v242_v27, %v240_v23  ;;  %v173_v36 = vadd.f32 %v172_v32, %v483_v18  ;;  %v246_v37 = vadd.f32 %v245_v33, %v485_v19 }
  0xf7   :  { %356 = vst [vmem:[%s570_s3 + $0x60] sm:$0xff] %v408_v34  ;;  %357 = vst [vmem:[%s570_s3 + $0x68] sm:$0xff] %v409_v35  ;;  %v410_v38 = vpack.c.bf16 %v173_v36, %v171_v30  ;;  %v411_v16 = vpack.c.bf16 %v246_v37, %v244_v31 }
  0xf9   :  { %358 = vst [vmem:[%s570_s3 + $0x70] sm:$0xff] %v410_v38  ;;  %359 = vst [vmem:[%s570_s3 + $0x78] sm:$0xff] %v411_v16 }

// kernel: decoder_forward.9
= control target key start
LH: loop header
LB: loop body
LE: loop exit
PB: predicated region body
PF: predicated region fallthrough
CT: control target
= control target key end

     0   :  { %v214_v0 = vmov 0.0   ;;  %vm215_vm0 = vmmov 0   ;;  %vm51_vm1 = vcmask 261120   ;;  %s275_s1 = inlined_call_operand.vmem [shape: bf16[32,32], index: 1, kind: input, shape index: {}]   ;;  %s276_s0 = inlined_call_operand.vmem [shape: bf16[16,32], index: 0, kind: input, shape index: {}]   ;;  %s277_s3 = inlined_call_operand.vmem [shape: bf16[32,128], index: 3, kind: input, shape index: {}]   ;;  %s278_s2 = inlined_call_operand.vmem [shape: f32[1,32], index: 2, kind: input, shape index: {}]   ;;  %s279_s4 = inlined_call_operand.vmem [shape: f32[1,128], index: 4, kind: input, shape index: {}]   ;;  %s280_s5 = inlined_call_operand.vmem [shape: f32[16,128], index: 5, kind: output, shape index: {}]  }
   0x1   :  { %187 = vmatprep.subr.bf16.mxu0 %v214_v0  ;;  %v205_v1 = vld [vmem:[%s275_s1] sm:$0xff]   ;;  %191 = vmatprep.mubr.msk.bf16.mxu0 %vm215_vm0, %v214_v0  ;;  %v206_v2 = vld [vmem:[%s275_s1 + $0x8] sm:$0xff]  }
   0x2   :  { %195 = vmatprep.subr.bf16.mxu1 %v214_v0  ;;  %199 = vmatprep.mubr.msk.bf16.mxu1 %vm215_vm0, %v214_v0  ;;  %v207_v3 = vld [vmem:[%s276_s0] sm:$0xff]   ;;  %v209_v5 = vld [vmem:[%s277_s3 + $0x8] sm:$0xff]  }
   0x3   :  { %188 = vmatpush3.bf16.msra.mxu0 %v205_v1  ;;  %v208_v4 = vld [vmem:[%s277_s3] sm:$0xff]  }
   0x4   :  { %189 = vmatprep.subr.bf16.mxu0 %v214_v0  ;;  %196 = vmatpush3.bf16.msra.mxu1 %v208_v4  ;;  %v172_v6 = vld [vmem:[%s278_s2] ss:$0 sm:$0xff] }
   0x5   :  { %197 = vmatprep.subr.bf16.mxu1 %v214_v0  ;;  %v177_v16 = vld [vmem:[%s279_s4] ss:$0 sm:$0xff] }
   0x7   :  { %190 = vmatpush3.bf16.msra.mxu0 %v206_v2 }
   0x8   :  { %198 = vmatpush3.bf16.msra.mxu1 %v209_v5 }
   0xa   :  { %192 = vmatmul.mubr.msk.bf16.vlgmr.msra.gmra.mrb[0].mxu0 %vm51_vm1, %v207_v3 }
  0xdd   :  { %v89_v7 = vpop.f32.mrb[0].mxu0 }
  0xde   :  { %v90_v8 = vadd.f32 %v172_v6, %v89_v7  ;;  %v193_v9 = vpop.f32.mrb[1].mxu0 }
  0xdf   :  { %v92_v10 = vpop.f32.mrb[2].mxu0 }
  0xe0   :  { %v93_v11 = vadd.f32 %v172_v6, %v92_v10  ;;  %v194_v12 = vpop.f32.mrb[3].mxu0  ;;  %210 = vtanh.f32 %v90_v8 }
  0xe2   :  { %212 = vtanh.f32 %v93_v11 }
  0xea   :  { %v211_v13 = vpop.eup %210 }
  0xec   :  { %v213_v14 = vpop.eup %212 }
  0xed   :  { %v98_v15 = vpack.c.bf16 %v213_v14, %v211_v13 }
  0xef   :  { %200 = vmatmul.mubr.msk.bf16.vlgmr.msra.gmra.mrb[0].mxu1 %vm51_vm1, %v98_v15 }
 0x1c2   :  { %v159_v17 = vpop.f32.mrb[0].mxu1 }
 0x1c3   :  { %v160_v18 = vadd.f32 %v177_v16, %v159_v17  ;;  %v201_v19 = vpop.f32.mrb[1].mxu1 }
 0x1c4   :  { %v162_v20 = vpop.f32.mrb[2].mxu1 }
 0x1c5   :  { %166 = vst [vmem:[%s280_s5] sm:$0xff] %v160_v18  ;;  %v163_v21 = vadd.f32 %v177_v16, %v162_v20  ;;  %v202_v22 = vpop.f32.mrb[3].mxu1 }
 0x1c7   :  { %167 = vst [vmem:[%s280_s5 + $0x8] sm:$0xff] %v163_v21 }

// kernel: decoder_forward.6
= control target key start
LH: loop header
LB: loop body
LE: loop exit
PB: predicated region body
PF: predicated region fallthrough
CT: control target
= control target key end

     0   :  { %v6005_v1 = vmov 0   ;;  %s6741_s3 = inlined_call_operand.vmem [shape: bf16[128,512], index: 3, kind: input, shape index: {}]   ;;  %s6742_s0 = inlined_call_operand.vmem [shape: f32[8,128], index: 0, kind: input, shape index: {}]   ;;  %s6743_s2 = inlined_call_operand.vmem [shape: bf16[8,8,512], index: 2, kind: input, shape index: {}]   ;;  %s6744_s1 = inlined_call_operand.vmem [shape: f32[8,128], index: 1, kind: input, shape index: {}]   ;;  %s6745_s4 = inlined_call_operand.vmem [shape: bf16[8,8,128], index: 4, kind: output, shape index: {0}]   ;;  %s6746_s6 = inlined_call_operand.vmem [shape: f32[8,128], index: 6, kind: output, shape index: {2}]   ;;  %s6747_s5 = inlined_call_operand.vmem [shape: f32[8,128], index: 5, kind: output, shape index: {1}]  }
   0x1   :  { %v6044_v0 = vld [vmem:[%s6741_s3 + $0x4] ss:$16 sps:$4 sm:$0xff]   ;;  %268 = vmatprep.mubr.bf16.mxu0 %v6005_v1  ;;  %309 = vmatprep.mubr.bf16.mxu1 %v6005_v1  ;;  %v6051_v2 = vld [vmem:[%s6741_s3] ss:$16 sps:$4 sm:$0xff]   ;;  %v6074_v6 = vld [vmem:[%s6741_s3 + $0xc] ss:$16 sps:$4 sm:$0xff]  }
   0x2   :  { %236 = vmatprep.subr.bf16.mxu0 %v6044_v0  ;;  %v6057_v3 = vld [vmem:[%s6741_s3 + $0x24] ss:$16 sps:$4 sm:$0xff]   ;;  %v6063_v4 = vld [vmem:[%s6741_s3 + $0x20] ss:$16 sps:$4 sm:$0xff]   ;;  %v6079_v7 = vld [vmem:[%s6741_s3 + $0x8] ss:$16 sps:$4 sm:$0xff]   ;;  %277 = vmatprep.subr.bf16.mxu1 %v6074_v6 }
   0x3   :  { %237 = vmatpush1.bf16.msra.mxu0 %v6051_v2  ;;  %v6069_v5 = vld [vmem:[%s6741_s3 + $0x44] ss:$16 sps:$4 sm:$0xff]   ;;  %v6085_v8 = vld [vmem:[%s6741_s3 + $0x40] ss:$16 sps:$4 sm:$0xff]   ;;  %278 = vmatpush1.bf16.msra.mxu1 %v6079_v7  ;;  %v6098_v10 = vld [vmem:[%s6741_s3 + $0x2c] ss:$16 sps:$4 sm:$0xff]  }
   0x4   :  { %238 = vmatprep.subr.bf16.mxu0 %v6057_v3  ;;  %v6092_v9 = vld [vmem:[%s6741_s3 + $0x64] ss:$16 sps:$4 sm:$0xff]   ;;  %v6103_v11 = vld [vmem:[%s6741_s3 + $0x28] ss:$16 sps:$4 sm:$0xff]   ;;  %279 = vmatprep.subr.bf16.mxu1 %v6098_v10  ;;  %v6110_v12 = vld [vmem:[%s6741_s3 + $0x60] ss:$16 sps:$4 sm:$0xff]  }
   0x5   :  { %v6115_v13 = vld [vmem:[%s6741_s3 + $0x84] ss:$16 sps:$4 sm:$0xff]   ;;  %v6120_v14 = vld [vmem:[%s6741_s3 + $0x4c] ss:$16 sps:$4 sm:$0xff]   ;;  %v6127_v15 = vld [vmem:[%s6741_s3 + $0x48] ss:$16 sps:$4 sm:$0xff]  }
   0x6   :  { %v6133_v16 = vld [vmem:[%s6741_s3 + $0x6c] ss:$16 sps:$4 sm:$0xff]   ;;  %v6139_v17 = vld [vmem:[%s6741_s3 + $0x80] ss:$16 sps:$4 sm:$0xff]   ;;  %v6145_v18 = vld [vmem:[%s6741_s3 + $0xa4] ss:$16 sps:$4 sm:$0xff]  }
   0x7   :  { %239 = vmatpush1.bf16.msra.mxu0 %v6063_v4  ;;  %280 = vmatpush1.bf16.msra.mxu1 %v6103_v11  ;;  %v6151_v19 = vld [vmem:[%s6741_s3 + $0x68] ss:$16 sps:$4 sm:$0xff]   ;;  %v6157_v20 = vld [vmem:[%s6741_s3 + $0x8c] ss:$16 sps:$4 sm:$0xff]   ;;  %v6162_v21 = vld [vmem:[%s6741_s3 + $0xa0] ss:$16 sps:$4 sm:$0xff]  }
   0x8   :  { %240 = vmatprep.subr.bf16.mxu0 %v6069_v5  ;;  %281 = vmatprep.subr.bf16.mxu1 %v6120_v14  ;;  %v6168_v22 = vld [vmem:[%s6741_s3 + $0xc4] ss:$16 sps:$4 sm:$0xff]   ;;  %v6175_v23 = vld [vmem:[%s6741_s3 + $0x88] ss:$16 sps:$4 sm:$0xff]   ;;  %v6180_v24 = vld [vmem:[%s6741_s3 + $0xc0] ss:$16 sps:$4 sm:$0xff]  }
   0x9   :  { %v6186_v25 = vld [vmem:[%s6741_s3 + $0xac] ss:$16 sps:$4 sm:$0xff]   ;;  %v6191_v26 = vld [vmem:[%s6741_s3 + $0xe4] ss:$16 sps:$4 sm:$0xff]   ;;  %v6196_v27 = vld [vmem:[%s6741_s3 + $0xa8] ss:$16 sps:$4 sm:$0xff]  }
   0xa   :  { %v6202_v28 = vld [vmem:[%s6741_s3 + $0xcc] ss:$16 sps:$4 sm:$0xff]   ;;  %v6209_v29 = vld [vmem:[%s6741_s3 + $0xe0] ss:$16 sps:$4 sm:$0xff]   ;;  %v6218_v31 = vld [vmem:[%s6741_s3 + $0xc8] ss:$16 sps:$4 sm:$0xff]  }
   0xb   :  { %241 = vmatpush1.bf16.msra.mxu0 %v6085_v8  ;;  %282 = vmatpush1.bf16.msra.mxu1 %v6127_v15  ;;  %v25_v30 = vld [vmem:[%s6742_s0] sm:$0xff]  ;;  %v6224_v32 = vld [vmem:[%s6741_s3 + $0xec] ss:$16 sps:$4 sm:$0xff]   ;;  %v6234_v34 = vld [vmem:[%s6741_s3 + $0xe8] ss:$16 sps:$4 sm:$0xff]  }
   0xc   :  { %242 = vmatprep.subr.bf16.mxu0 %v6092_v9  ;;  %283 = vmatprep.subr.bf16.mxu1 %v6133_v16  ;;  %v43_v33 = vpack.c.bf16 %v25_v30, %v25_v30  ;;  %v37_v35 = vld [vmem:[%s6743_s2] sm:$0xff]  ;;  %v38_v39 = vld [vmem:[%s6743_s2 + $0x8] sm:$0xff] }
   0xd   :  { %v39_v36 = vunpack.c.l.bf16 %v37_v35  ;;  %v40_v37 = vunpack.c.h.bf16 %v37_v35  ;;  %v42_v46 = vunpack.c.h.bf16 %v38_v39  ;;  %v41_v52 = vunpack.c.l.bf16 %v38_v39  ;;  %v27_v62 = vld [vmem:[%s6744_s1] sm:$0xff] }
   0xf   :  { %243 = vmatpush1.bf16.msra.mxu0 %v6110_v12  ;;  %284 = vmatpush1.bf16.msra.mxu1 %v6151_v19 }
  0x10   :  { %244 = vmatprep.subr.bf16.mxu0 %v6115_v13  ;;  %285 = vmatprep.subr.bf16.mxu1 %v6157_v20 }
  0x13   :  { %245 = vmatpush1.bf16.msra.mxu0 %v6139_v17  ;;  %286 = vmatpush1.bf16.msra.mxu1 %v6175_v23 }
  0x14   :  { %246 = vmatprep.subr.bf16.mxu0 %v6145_v18  ;;  %287 = vmatprep.subr.bf16.mxu1 %v6186_v25 }
  0x17   :  { %247 = vmatpush1.bf16.msra.mxu0 %v6162_v21  ;;  %288 = vmatpush1.bf16.msra.mxu1 %v6196_v27 }
  0x18   :  { %248 = vmatprep.subr.bf16.mxu0 %v6168_v22  ;;  %289 = vmatprep.subr.bf16.mxu1 %v6202_v28 }
  0x1b   :  { %249 = vmatpush1.bf16.msra.mxu0 %v6180_v24  ;;  %290 = vmatpush1.bf16.msra.mxu1 %v6218_v31 }
  0x1c   :  { %250 = vmatprep.subr.bf16.mxu0 %v6191_v26  ;;  %291 = vmatprep.subr.bf16.mxu1 %v6224_v32 }
  0x1f   :  { %251 = vmatpush1.bf16.msra.mxu0 %v6209_v29  ;;  %292 = vmatpush1.bf16.msra.mxu1 %v6234_v34 }
  0x20   :  { %552 = vmatprep.subr.bf16.mxu0 %v6044_v0  ;;  %593 = vmatprep.subr.bf16.mxu1 %v6074_v6 }
  0x22   :  { %269 = vmatmul.mubr.bf16.vlgmr.msra.gmra.mrb[0].mxu0 %v43_v33  ;;  %310 = vmatmul.mubr.bf16.vlgmr.msra.gmra.mrb[0].mxu1 %v43_v33 }
  0x23   :  { %553 = vmatpush1.bf16.msra.mxu0 %v6051_v2  ;;  %584 = vmatprep.mubr.bf16.mxu0 %v6005_v1 }
  0x24   :  { %554 = vmatprep.subr.bf16.mxu0 %v6057_v3  ;;  %594 = vmatpush1.bf16.msra.mxu1 %v6079_v7 }
  0x25   :  { %595 = vmatprep.subr.bf16.mxu1 %v6098_v10  ;;  %625 = vmatprep.mubr.bf16.mxu1 %v6005_v1 }
  0x27   :  { %555 = vmatpush1.bf16.msra.mxu0 %v6063_v4 }
  0x28   :  { %556 = vmatprep.subr.bf16.mxu0 %v6069_v5  ;;  %596 = vmatpush1.bf16.msra.mxu1 %v6103_v11 }
  0x29   :  { %597 = vmatprep.subr.bf16.mxu1 %v6120_v14 }
  0x2b   :  { %557 = vmatpush1.bf16.msra.mxu0 %v6085_v8 }
  0x2c   :  { %558 = vmatprep.subr.bf16.mxu0 %v6092_v9  ;;  %598 = vmatpush1.bf16.msra.mxu1 %v6127_v15 }
  0x2d   :  { %599 = vmatprep.subr.bf16.mxu1 %v6133_v16 }
  0x2f   :  { %559 = vmatpush1.bf16.msra.mxu0 %v6110_v12 }
  0x30   :  { %560 = vmatprep.subr.bf16.mxu0 %v6115_v13  ;;  %600 = vmatpush1.bf16.msra.mxu1 %v6151_v19 }
  0x31   :  { %601 = vmatprep.subr.bf16.mxu1 %v6157_v20 }
  0x33   :  { %561 = vmatpush1.bf16.msra.mxu0 %v6139_v17 }
  0x34   :  { %562 = vmatprep.subr.bf16.mxu0 %v6145_v18  ;;  %602 = vmatpush1.bf16.msra.mxu1 %v6175_v23 }
  0x35   :  { %603 = vmatprep.subr.bf16.mxu1 %v6186_v25 }
  0x37   :  { %563 = vmatpush1.bf16.msra.mxu0 %v6162_v21 }
  0x38   :  { %564 = vmatprep.subr.bf16.mxu0 %v6168_v22  ;;  %604 = vmatpush1.bf16.msra.mxu1 %v6196_v27 }
  0x39   :  { %605 = vmatprep.subr.bf16.mxu1 %v6202_v28 }
  0x3b   :  { %565 = vmatpush1.bf16.msra.mxu0 %v6180_v24 }
  0x3c   :  { %566 = vmatprep.subr.bf16.mxu0 %v6191_v26  ;;  %606 = vmatpush1.bf16.msra.mxu1 %v6218_v31 }
  0x3d   :  { %607 = vmatprep.subr.bf16.mxu1 %v6224_v32 }
  0x3f   :  { %567 = vmatpush1.bf16.msra.mxu0 %v6209_v29 }
  0x40   :  { %869 = vmatprep.subr.bf16.mxu0 %v6044_v0  ;;  %608 = vmatpush1.bf16.msra.mxu1 %v6234_v34 }
  0x41   :  { %910 = vmatprep.subr.bf16.mxu1 %v6074_v6 }
  0xf5   :  { %v270_v38 = vpop.f32.mrb[0].mxu0  ;;  %v311_v48 = vpop.f32.mrb[0].mxu1 }
  0xf6   :  { %v318_v40 = vadd.f32 %v270_v38, %v39_v36  ;;  %v272_v41 = vpop.f32.mrb[1].mxu0  ;;  %v313_v49 = vpop.f32.mrb[1].mxu1  ;;  %v320_v55 = vadd.f32 %v311_v48, %v41_v52  ;;  %v5214_v48 = vld [vmem:[%s6743_s2 + $0x18] sm:$0xff] }
  0xf7   :  { %v319_v42 = vadd.f32 %v272_v41, %v40_v37  ;;  %v274_v43 = vpop.f32.mrb[2].mxu0  ;;  %v321_v50 = vadd.f32 %v313_v49, %v42_v46  ;;  %v315_v51 = vpop.f32.mrb[2].mxu1 }
  0xf8   :  { %v5210_v44 = vmul.f32 -1.442695, %v318_v40  ;;  %v275_v45 = vpop.f32.mrb[3].mxu0  ;;  %v316_v53 = vpop.f32.mrb[3].mxu1 }
  0xf9   :  { %v5211_v47 = vmul.f32 -1.442695, %v319_v42  ;;  %v5212_v54 = vmul.f32 -1.442695, %v321_v50  ;;  %v5213_v42 = vld [vmem:[%s6743_s2 + $0x10] sm:$0xff] }
  0xfa   :  { %5877 = vpow2.f32 %v5210_v44  ;;  %v355_v43 = vunpack.c.l.bf16 %v5213_v42  ;;  %v356_v44 = vunpack.c.h.bf16 %v5213_v42 }
  0xfb   :  { %5879 = vpow2.f32 %v5211_v47 }
  0xfc   :  { %5881 = vpow2.f32 %v5212_v54 }
  0xfd   :  { %5883 = vtanh.f32 %v320_v55 }
 0x104   :  { %v5878_v56 = vpop.eup %5877 }
 0x105   :  { %v5880_v57 = vpop.eup %5879  ;;  %v325_v58 = vadd.f32 1.0, %v5878_v56  ;;  %v358_v56 = vunpack.c.h.bf16 %v5214_v48 }
 0x106   :  { %v331_v59 = vadd.f32 1.0, %v5880_v57  ;;  %v5882_v60 = vpop.eup %5881 }
 0x107   :  { %5885 = vrcp.f32 %v325_v58  ;;  %v5884_v61 = vpop.eup %5883  ;;  %v338_v30 = vadd.f32 1.0, %v5882_v60  ;;  %v357_v58 = vunpack.c.l.bf16 %v5214_v48 }
 0x108   :  { %5887 = vrcp.f32 %v331_v59 }
 0x109   :  { %5889 = vrcp.f32 %v338_v30 }
 0x111   :  { %v5886_v63 = vpop.eup %5885 }
 0x112   :  { %v5888_v33 = vpop.eup %5887  ;;  %v342_v35 = vmul.f32 %v5886_v63, %v5884_v61 }
 0x113   :  { %v341_v36 = vmul.f32 %v5888_v33, %v27_v62  ;;  %v5890_v38 = vpop.eup %5889 }
 0x115   :  { %v6283_v37 = vadd.f32 %v342_v35, %v341_v36 }
 0x117   :  { %5891 = vtanh.f32 %v6283_v37 }
 0x121   :  { %v5892_v39 = vpop.eup %5891 }
 0x122   :  { %v345_v40 = vmul.f32 %v5892_v39, %v5890_v38 }
 0x124   :  { %v348_v41 = vpack.c.bf16 %v345_v40, %v345_v40 }
 0x126   :  { %349 = vst [vmem:[%s6745_s4] sm:$0xf] %v348_v41  ;;  %585 = vmatmul.mubr.bf16.vlgmr.msra.gmra.mrb[4].mxu0 %v348_v41  ;;  %626 = vmatmul.mubr.bf16.vlgmr.msra.gmra.mrb[4].mxu1 %v348_v41 }
 0x127   :  { %870 = vmatpush1.bf16.msra.mxu0 %v6051_v2  ;;  %911 = vmatpush1.bf16.msra.mxu1 %v6079_v7 }
 0x128   :  { %871 = vmatprep.subr.bf16.mxu0 %v6057_v3  ;;  %912 = vmatprep.subr.bf16.mxu1 %v6098_v10 }
 0x129   :  { %901 = vmatprep.mubr.bf16.mxu0 %v6005_v1  ;;  %942 = vmatprep.mubr.bf16.mxu1 %v6005_v1 }
 0x12b   :  { %872 = vmatpush1.bf16.msra.mxu0 %v6063_v4  ;;  %913 = vmatpush1.bf16.msra.mxu1 %v6103_v11 }
 0x12c   :  { %873 = vmatprep.subr.bf16.mxu0 %v6069_v5  ;;  %914 = vmatprep.subr.bf16.mxu1 %v6120_v14 }
 0x12f   :  { %874 = vmatpush1.bf16.msra.mxu0 %v6085_v8  ;;  %915 = vmatpush1.bf16.msra.mxu1 %v6127_v15 }
 0x130   :  { %875 = vmatprep.subr.bf16.mxu0 %v6092_v9  ;;  %916 = vmatprep.subr.bf16.mxu1 %v6133_v16 }
 0x133   :  { %876 = vmatpush1.bf16.msra.mxu0 %v6110_v12  ;;  %917 = vmatpush1.bf16.msra.mxu1 %v6151_v19 }
 0x134   :  { %877 = vmatprep.subr.bf16.mxu0 %v6115_v13  ;;  %918 = vmatprep.subr.bf16.mxu1 %v6157_v20 }
 0x137   :  { %878 = vmatpush1.bf16.msra.mxu0 %v6139_v17  ;;  %919 = vmatpush1.bf16.msra.mxu1 %v6175_v23 }
 0x138   :  { %879 = vmatprep.subr.bf16.mxu0 %v6145_v18  ;;  %920 = vmatprep.subr.bf16.mxu1 %v6186_v25 }
 0x13b   :  { %880 = vmatpush1.bf16.msra.mxu0 %v6162_v21  ;;  %921 = vmatpush1.bf16.msra.mxu1 %v6196_v27 }
 0x13c   :  { %881 = vmatprep.subr.bf16.mxu0 %v6168_v22  ;;  %922 = vmatprep.subr.bf16.mxu1 %v6202_v28 }
 0x13f   :  { %882 = vmatpush1.bf16.msra.mxu0 %v6180_v24  ;;  %923 = vmatpush1.bf16.msra.mxu1 %v6218_v31 }
 0x140   :  { %883 = vmatprep.subr.bf16.mxu0 %v6191_v26  ;;  %924 = vmatprep.subr.bf16.mxu1 %v6224_v32 }
 0x143   :  { %884 = vmatpush1.bf16.msra.mxu0 %v6209_v29  ;;  %925 = vmatpush1.bf16.msra.mxu1 %v6234_v34 }
 0x144   :  { %1186 = vmatprep.subr.bf16.mxu0 %v6044_v0  ;;  %1227 = vmatprep.subr.bf16.mxu1 %v6074_v6 }
 0x1f9   :  { %v586_v45 = vpop.f32.mrb[4].mxu0  ;;  %v627_v46 = vpop.f32.mrb[4].mxu1 }
 0x1fa   :  { %v634_v47 = vadd.f32 %v586_v45, %v355_v43  ;;  %v588_v49 = vpop.f32.mrb[5].mxu0  ;;  %v629_v50 = vpop.f32.mrb[5].mxu1  ;;  %v636_v60 = vadd.f32 %v627_v46, %v357_v58  ;;  %v6425_v58 = vld [vmem:[%s6741_s3 + $0x28] ss:$16 sps:$4 sm:$0xff]  }
 0x1fb   :  { %v635_v51 = vadd.f32 %v588_v49, %v356_v44  ;;  %v590_v52 = vpop.f32.mrb[6].mxu0  ;;  %v631_v0 = vpop.f32.mrb[6].mxu1  ;;  %v637_v57 = vadd.f32 %v629_v50, %v358_v56  ;;  %v6415_v56 = vld [vmem:[%s6741_s3 + $0x2c] ss:$16 sps:$4 sm:$0xff]  }
 0x1fc   :  { %v5247_v53 = vmul.f32 -1.442695, %v634_v47  ;;  %v591_v6 = vpop.f32.mrb[7].mxu0  ;;  %v632_v54 = vpop.f32.mrb[7].mxu1  ;;  %v6386_v0 = vld [vmem:[%s6741_s3 + $0x4] ss:$16 sps:$4 sm:$0xff]  }
 0x1fd   :  { %v5248_v55 = vmul.f32 -1.442695, %v635_v51  ;;  %v5249_v59 = vmul.f32 -1.442695, %v637_v57  ;;  %v6396_v6 = vld [vmem:[%s6741_s3] ss:$16 sps:$4 sm:$0xff]  }
 0x1fe   :  { %5893 = vpow2.f32 %v5247_v53  ;;  %v6391_v53 = vld [vmem:[%s6741_s3 + $0xc] ss:$16 sps:$4 sm:$0xff]   ;;  %v6401_v54 = vld [vmem:[%s6741_s3 + $0x8] ss:$16 sps:$4 sm:$0xff]   ;;  %v6420_v57 = vld [vmem:[%s6741_s3 + $0x20] ss:$16 sps:$4 sm:$0xff]  }
 0x1ff   :  { %5895 = vpow2.f32 %v5248_v55  ;;  %v6410_v55 = vld [vmem:[%s6741_s3 + $0x24] ss:$16 sps:$4 sm:$0xff]  }
 0x200   :  { %5897 = vpow2.f32 %v5249_v59  ;;  %v6434_v59 = vld [vmem:[%s6741_s3 + $0x44] ss:$16 sps:$4 sm:$0xff]  }
 0x201   :  { %5899 = vtanh.f32 %v636_v60  ;;  %v6439_v60 = vld [vmem:[%s6741_s3 + $0x4c] ss:$16 sps:$4 sm:$0xff]  }
 0x208   :  { %v5894_v61 = vpop.eup %5893 }
 0x209   :  { %v5896_v62 = vpop.eup %5895  ;;  %v641_v63 = vadd.f32 1.0, %v5894_v61  ;;  %v6444_v61 = vld [vmem:[%s6741_s3 + $0x40] ss:$16 sps:$4 sm:$0xff]  }
 0x20a   :  { %v647_v30 = vadd.f32 1.0, %v5896_v62  ;;  %v5898_v33 = vpop.eup %5897  ;;  %v6449_v62 = vld [vmem:[%s6741_s3 + $0x48] ss:$16 sps:$4 sm:$0xff]  }
 0x20b   :  { %5901 = vrcp.f32 %v641_v63  ;;  %v5900_v35 = vpop.eup %5899  ;;  %v654_v40 = vadd.f32 1.0, %v5898_v33  ;;  %v6458_v63 = vld [vmem:[%s6741_s3 + $0x64] ss:$16 sps:$4 sm:$0xff]   ;;  %v6468_v33 = vld [vmem:[%s6741_s3 + $0x60] ss:$16 sps:$4 sm:$0xff]  }
 0x20c   :  { %5903 = vrcp.f32 %v647_v30  ;;  %v6463_v30 = vld [vmem:[%s6741_s3 + $0x6c] ss:$16 sps:$4 sm:$0xff]  }
 0x20d   :  { %5905 = vrcp.f32 %v654_v40  ;;  %v6497_v40 = vld [vmem:[%s6741_s3 + $0x8c] ss:$16 sps:$4 sm:$0xff]  }
 0x215   :  { %v5902_v36 = vpop.eup %5901 }
 0x216   :  { %v5904_v38 = vpop.eup %5903  ;;  %v658_v39 = vmul.f32 %v5902_v36, %v5900_v35  ;;  %v6473_v35 = vld [vmem:[%s6741_s3 + $0x68] ss:$16 sps:$4 sm:$0xff]   ;;  %v6482_v36 = vld [vmem:[%s6741_s3 + $0x80] ss:$16 sps:$4 sm:$0xff]  }
 0x217   :  { %v657_v41 = vmul.f32 %v5904_v38, %v6283_v37  ;;  %v5906_v43 = vpop.eup %5905  ;;  %v6487_v38 = vld [vmem:[%s6741_s3 + $0x84] ss:$16 sps:$4 sm:$0xff]  }
 0x219   :  { %v6330_v42 = vadd.f32 %v658_v39, %v657_v41  ;;  %v6492_v39 = vld [vmem:[%s6741_s3 + $0x88] ss:$16 sps:$4 sm:$0xff]   ;;  %v6502_v41 = vld [vmem:[%s6741_s3 + $0xa4] ss:$16 sps:$4 sm:$0xff]  }
 0x21b   :  { %5907 = vtanh.f32 %v6330_v42 }
 0x225   :  { %v5908_v44 = vpop.eup %5907 }
 0x226   :  { %v661_v45 = vmul.f32 %v5908_v44, %v5906_v43  ;;  %v6515_v43 = vld [vmem:[%s6741_s3 + $0xa0] ss:$16 sps:$4 sm:$0xff]   ;;  %v6522_v44 = vld [vmem:[%s6741_s3 + $0xa8] ss:$16 sps:$4 sm:$0xff]  }
 0x228   :  { %v664_v46 = vpack.c.bf16 %v661_v45, %v661_v45  ;;  %v6527_v45 = vld [vmem:[%s6741_s3 + $0xc4] ss:$16 sps:$4 sm:$0xff]  }
 0x22a   :  { %5250 = vst [vmem:[%s6745_s4 + $0x4] sm:$0xf] %v664_v46  ;;  %902 = vmatmul.mubr.bf16.vlgmr.msra.gmra.mrb[8].mxu0 %v664_v46  ;;  %943 = vmatmul.mubr.bf16.vlgmr.msra.gmra.mrb[8].mxu1 %v664_v46  ;;  %v6533_v46 = vld [vmem:[%s6741_s3 + $0xcc] ss:$16 sps:$4 sm:$0xff]  }
 0x22b   :  { %1187 = vmatpush1.bf16.msra.mxu0 %v6051_v2  ;;  %1228 = vmatpush1.bf16.msra.mxu1 %v6079_v7  ;;  %v5251_v2 = vld [vmem:[%s6743_s2 + $0x20] sm:$0xff] }
 0x22c   :  { %1188 = vmatprep.subr.bf16.mxu0 %v6057_v3  ;;  %1229 = vmatprep.subr.bf16.mxu1 %v6098_v10  ;;  %v672_v3 = vunpack.c.l.bf16 %v5251_v2 }
 0x22d   :  { %1218 = vmatprep.mubr.bf16.mxu0 %v6005_v1  ;;  %1259 = vmatprep.mubr.bf16.mxu1 %v6005_v1 }
 0x22f   :  { %1189 = vmatpush1.bf16.msra.mxu0 %v6063_v4  ;;  %1230 = vmatpush1.bf16.msra.mxu1 %v6103_v11  ;;  %v673_v4 = vunpack.c.h.bf16 %v5251_v2  ;;  %v6539_v2 = vld [vmem:[%s6741_s3 + $0xc0] ss:$16 sps:$4 sm:$0xff]  }
 0x230   :  { %1190 = vmatprep.subr.bf16.mxu0 %v6069_v5  ;;  %1231 = vmatprep.subr.bf16.mxu1 %v6120_v14 }
 0x233   :  { %1191 = vmatpush1.bf16.msra.mxu0 %v6085_v8  ;;  %1232 = vmatpush1.bf16.msra.mxu1 %v6127_v15 }
 0x234   :  { %1192 = vmatprep.subr.bf16.mxu0 %v6092_v9  ;;  %1233 = vmatprep.subr.bf16.mxu1 %v6133_v16  ;;  %v5252_v9 = vld [vmem:[%s6743_s2 + $0x28] sm:$0xff] }
 0x237   :  { %1193 = vmatpush1.bf16.msra.mxu0 %v6110_v12  ;;  %1234 = vmatpush1.bf16.msra.mxu1 %v6151_v19  ;;  %v675_v19 = vunpack.c.h.bf16 %v5252_v9 }
 0x238   :  { %1194 = vmatprep.subr.bf16.mxu0 %v6115_v13  ;;  %1235 = vmatprep.subr.bf16.mxu1 %v6157_v20 }
 0x23b   :  { %1195 = vmatpush1.bf16.msra.mxu0 %v6139_v17  ;;  %1236 = vmatpush1.bf16.msra.mxu1 %v6175_v23 }
 0x23c   :  { %1196 = vmatprep.subr.bf16.mxu0 %v6145_v18  ;;  %1237 = vmatprep.subr.bf16.mxu1 %v6186_v25 }
 0x23f   :  { %1197 = vmatpush1.bf16.msra.mxu0 %v6162_v21  ;;  %1238 = vmatpush1.bf16.msra.mxu1 %v6196_v27  ;;  %v674_v21 = vunpack.c.l.bf16 %v5252_v9  ;;  %v5289_v9 = vld [vmem:[%s6743_s2 + $0x30] sm:$0xff] }
 0x240   :  { %1198 = vmatprep.subr.bf16.mxu0 %v6168_v22  ;;  %1239 = vmatprep.subr.bf16.mxu1 %v6202_v28 }
 0x243   :  { %1199 = vmatpush1.bf16.msra.mxu0 %v6180_v24  ;;  %1240 = vmatpush1.bf16.msra.mxu1 %v6218_v31 }
 0x244   :  { %1200 = vmatprep.subr.bf16.mxu0 %v6191_v26  ;;  %1241 = vmatprep.subr.bf16.mxu1 %v6224_v32 }
 0x247   :  { %1201 = vmatpush1.bf16.msra.mxu0 %v6209_v29  ;;  %1242 = vmatpush1.bf16.msra.mxu1 %v6234_v34 }
 0x248   :  { %1503 = vmatprep.subr.bf16.mxu0 %v6386_v0  ;;  %1544 = vmatprep.subr.bf16.mxu1 %v6391_v53 }
 0x2fd   :  { %v903_v5 = vpop.f32.mrb[8].mxu0  ;;  %v944_v7 = vpop.f32.mrb[8].mxu1 }
 0x2fe   :  { %v951_v8 = vadd.f32 %v903_v5, %v672_v3  ;;  %v905_v10 = vpop.f32.mrb[9].mxu0  ;;  %v946_v11 = vpop.f32.mrb[9].mxu1  ;;  %v953_v23 = vadd.f32 %v944_v7, %v674_v21  ;;  %v6546_v3 = vld [vmem:[%s6741_s3 + $0xc8] ss:$16 sps:$4 sm:$0xff]   ;;  %v6557_v5 = vld [vmem:[%s6741_s3 + $0xec] ss:$16 sps:$4 sm:$0xff]  }
 0x2ff   :  { %v952_v12 = vadd.f32 %v905_v10, %v673_v4  ;;  %v907_v13 = vpop.f32.mrb[10].mxu0  ;;  %v948_v14 = vpop.f32.mrb[10].mxu1  ;;  %v954_v20 = vadd.f32 %v946_v11, %v675_v19  ;;  %v6551_v4 = vld [vmem:[%s6741_s3 + $0xe4] ss:$16 sps:$4 sm:$0xff]   ;;  %v6563_v7 = vld [vmem:[%s6741_s3 + $0xe0] ss:$16 sps:$4 sm:$0xff]   ;;  %v989_v10 = vunpack.c.l.bf16 %v5289_v9  ;;  %v990_v11 = vunpack.c.h.bf16 %v5289_v9 }
 0x300   :  { %v5285_v15 = vmul.f32 -1.442695, %v951_v8  ;;  %v908_v16 = vpop.f32.mrb[11].mxu0  ;;  %v949_v17 = vpop.f32.mrb[11].mxu1  ;;  %v6570_v8 = vld [vmem:[%s6741_s3 + $0xe8] ss:$16 sps:$4 sm:$0xff]  }
 0x301   :  { %v5286_v18 = vmul.f32 -1.442695, %v952_v12  ;;  %v5287_v22 = vmul.f32 -1.442695, %v954_v20 }
 0x302   :  { %5909 = vpow2.f32 %v5285_v15  ;;  %v5290_v15 = vld [vmem:[%s6743_s2 + $0x38] sm:$0xff] }
 0x303   :  { %5911 = vpow2.f32 %v5286_v18 }
 0x304   :  { %5913 = vpow2.f32 %v5287_v22 }
 0x305   :  { %5915 = vtanh.f32 %v953_v23 }
 0x30c   :  { %v5910_v24 = vpop.eup %5909 }
 0x30d   :  { %v5912_v25 = vpop.eup %5911  ;;  %v958_v26 = vadd.f32 1.0, %v5910_v24 }
 0x30e   :  { %v964_v27 = vadd.f32 1.0, %v5912_v25  ;;  %v5914_v28 = vpop.eup %5913  ;;  %v992_v25 = vunpack.c.h.bf16 %v5290_v15 }
 0x30f   :  { %5917 = vrcp.f32 %v958_v26  ;;  %v5916_v29 = vpop.eup %5915  ;;  %v971_v37 = vadd.f32 1.0, %v5914_v28 }
 0x310   :  { %5919 = vrcp.f32 %v964_v27  ;;  %v991_v27 = vunpack.c.l.bf16 %v5290_v15 }
 0x311   :  { %5921 = vrcp.f32 %v971_v37 }
 0x319   :  { %v5918_v31 = vpop.eup %5917 }
 0x31a   :  { %v5920_v32 = vpop.eup %5919  ;;  %v975_v34 = vmul.f32 %v5918_v31, %v5916_v29 }
 0x31b   :  { %v974_v47 = vmul.f32 %v5920_v32, %v6330_v42  ;;  %v5922_v49 = vpop.eup %5921  ;;  %v6508_v42 = vld [vmem:[%s6741_s3 + $0xac] ss:$16 sps:$4 sm:$0xff]  }
 0x31d   :  { %v6375_v48 = vadd.f32 %v975_v34, %v974_v47 }
 0x31f   :  { %5923 = vtanh.f32 %v6375_v48 }
 0x329   :  { %v5924_v50 = vpop.eup %5923 }
 0x32a   :  { %v978_v51 = vmul.f32 %v5924_v50, %v5922_v49 }
 0x32c   :  { %v981_v52 = vpack.c.bf16 %v978_v51, %v978_v51 }
 0x32e   :  { %5288 = vst [vmem:[%s6745_s4 + $0x8] sm:$0xf] %v981_v52  ;;  %1219 = vmatmul.mubr.bf16.vlgmr.msra.gmra.mrb[12].mxu0 %v981_v52  ;;  %1260 = vmatmul.mubr.bf16.vlgmr.msra.gmra.mrb[12].mxu1 %v981_v52 }
 0x32f   :  { %1535 = vmatprep.mubr.bf16.mxu0 %v6005_v1  ;;  %1576 = vmatprep.mubr.bf16.mxu1 %v6005_v1 }
 0x330   :  { %1504 = vmatpush1.bf16.msra.mxu0 %v6396_v6  ;;  %1545 = vmatpush1.bf16.msra.mxu1 %v6401_v54 }
 0x331   :  { %1505 = vmatprep.subr.bf16.mxu0 %v6410_v55  ;;  %1546 = vmatprep.subr.bf16.mxu1 %v6415_v56 }
 0x334   :  { %1506 = vmatpush1.bf16.msra.mxu0 %v6420_v57  ;;  %1547 = vmatpush1.bf16.msra.mxu1 %v6425_v58 }
 0x335   :  { %1507 = vmatprep.subr.bf16.mxu0 %v6434_v59  ;;  %1548 = vmatprep.subr.bf16.mxu1 %v6439_v60 }
 0x338   :  { %1508 = vmatpush1.bf16.msra.mxu0 %v6444_v61  ;;  %1549 = vmatpush1.bf16.msra.mxu1 %v6449_v62 }
 0x339   :  { %1509 = vmatprep.subr.bf16.mxu0 %v6458_v63  ;;  %1550 = vmatprep.subr.bf16.mxu1 %v6463_v30 }
 0x33c   :  { %1510 = vmatpush1.bf16.msra.mxu0 %v6468_v33  ;;  %1551 = vmatpush1.bf16.msra.mxu1 %v6473_v35 }
 0x33d   :  { %1511 = vmatprep.subr.bf16.mxu0 %v6487_v38  ;;  %1552 = vmatprep.subr.bf16.mxu1 %v6497_v40 }
 0x340   :  { %1512 = vmatpush1.bf16.msra.mxu0 %v6482_v36  ;;  %1553 = vmatpush1.bf16.msra.mxu1 %v6492_v39 }
 0x341   :  { %1513 = vmatprep.subr.bf16.mxu0 %v6502_v41  ;;  %1554 = vmatprep.subr.bf16.mxu1 %v6508_v42 }
 0x344   :  { %1514 = vmatpush1.bf16.msra.mxu0 %v6515_v43  ;;  %1555 = vmatpush1.bf16.msra.mxu1 %v6522_v44 }
 0x345   :  { %1515 = vmatprep.subr.bf16.mxu0 %v6527_v45  ;;  %1556 = vmatprep.subr.bf16.mxu1 %v6533_v46 }
 0x348   :  { %1516 = vmatpush1.bf16.msra.mxu0 %v6539_v2  ;;  %1557 = vmatpush1.bf16.msra.mxu1 %v6546_v3 }
 0x349   :  { %1517 = vmatprep.subr.bf16.mxu0 %v6551_v4  ;;  %1558 = vmatprep.subr.bf16.mxu1 %v6557_v5 }
 0x34c   :  { %1518 = vmatpush1.bf16.msra.mxu0 %v6563_v7  ;;  %1559 = vmatpush1.bf16.msra.mxu1 %v6570_v8 }
 0x34d   :  { %1820 = vmatprep.subr.bf16.mxu0 %v6386_v0  ;;  %1861 = vmatprep.subr.bf16.mxu1 %v6391_v53 }
 0x401   :  { %v1220_v12 = vpop.f32.mrb[12].mxu0  ;;  %v1261_v13 = vpop.f32.mrb[12].mxu1 }
 0x402   :  { %v1268_v14 = vadd.f32 %v1220_v12, %v989_v10  ;;  %v1222_v16 = vpop.f32.mrb[13].mxu0  ;;  %v1263_v17 = vpop.f32.mrb[13].mxu1  ;;  %v1270_v29 = vadd.f32 %v1261_v13, %v991_v27 }
 0x403   :  { %v1269_v18 = vadd.f32 %v1222_v16, %v990_v11  ;;  %v1224_v19 = vpop.f32.mrb[14].mxu0  ;;  %v1265_v20 = vpop.f32.mrb[14].mxu1  ;;  %v1271_v26 = vadd.f32 %v1263_v17, %v992_v25 }
 0x404   :  { %v5323_v21 = vmul.f32 -1.442695, %v1268_v14  ;;  %v1225_v22 = vpop.f32.mrb[15].mxu0  ;;  %v1266_v23 = vpop.f32.mrb[15].mxu1 }
 0x405   :  { %v5324_v24 = vmul.f32 -1.442695, %v1269_v18  ;;  %v5325_v28 = vmul.f32 -1.442695, %v1271_v26 }
 0x406   :  { %5925 = vpow2.f32 %v5323_v21  ;;  %v5328_v21 = vld [vmem:[%s6743_s2 + $0x48] sm:$0xff] }
 0x407   :  { %5927 = vpow2.f32 %v5324_v24 }
 0x408   :  { %5929 = vpow2.f32 %v5325_v28 }
 0x409   :  { %5931 = vtanh.f32 %v1270_v29 }
 0x410   :  { %v5926_v31 = vpop.eup %5925 }
 0x411   :  { %v5928_v32 = vpop.eup %5927  ;;  %v1275_v34 = vadd.f32 1.0, %v5926_v31 }
 0x412   :  { %v1281_v37 = vadd.f32 1.0, %v5928_v32  ;;  %v5930_v47 = vpop.eup %5929  ;;  %v1309_v32 = vunpack.c.h.bf16 %v5328_v21 }
 0x413   :  { %5933 = vrcp.f32 %v1275_v34  ;;  %v5932_v49 = vpop.eup %5931  ;;  %v1288_v9 = vadd.f32 1.0, %v5930_v47 }
 0x414   :  { %5935 = vrcp.f32 %v1281_v37  ;;  %v1308_v37 = vunpack.c.l.bf16 %v5328_v21 }
 0x415   :  { %5937 = vrcp.f32 %v1288_v9 }
 0x41d   :  { %v5934_v50 = vpop.eup %5933 }
 0x41e   :  { %v5936_v51 = vpop.eup %5935  ;;  %v1292_v52 = vmul.f32 %v5934_v50, %v5932_v49 }
 0x41f   :  { %v1291_v10 = vmul.f32 %v5936_v51, %v6375_v48  ;;  %v5938_v12 = vpop.eup %5937  ;;  %v5327_v48 = vld [vmem:[%s6743_s2 + $0x40] sm:$0xff] }
 0x420   :  { %v1306_v16 = vunpack.c.l.bf16 %v5327_v48  ;;  %v1307_v17 = vunpack.c.h.bf16 %v5327_v48 }
 0x421   :  { %v6584_v11 = vadd.f32 %v1292_v52, %v1291_v10 }
 0x423   :  { %5939 = vtanh.f32 %v6584_v11 }
 0x42d   :  { %v5940_v13 = vpop.eup %5939 }
 0x42e   :  { %v1295_v14 = vmul.f32 %v5940_v13, %v5938_v12 }
 0x430   :  { %v1298_v15 = vpack.c.bf16 %v1295_v14, %v1295_v14 }
 0x432   :  { %5326 = vst [vmem:[%s6745_s4 + $0xc] sm:$0xf] %v1298_v15  ;;  %1536 = vmatmul.mubr.bf16.vlgmr.msra.gmra.mrb[16].mxu0 %v1298_v15  ;;  %1577 = vmatmul.mubr.bf16.vlgmr.msra.gmra.mrb[16].mxu1 %v1298_v15 }
 0x433   :  { %1821 = vmatpush1.bf16.msra.mxu0 %v6396_v6  ;;  %1862 = vmatpush1.bf16.msra.mxu1 %v6401_v54 }
 0x434   :  { %1822 = vmatprep.subr.bf16.mxu0 %v6410_v55  ;;  %1863 = vmatprep.subr.bf16.mxu1 %v6415_v56 }
 0x435   :  { %1852 = vmatprep.mubr.bf16.mxu0 %v6005_v1  ;;  %1893 = vmatprep.mubr.bf16.mxu1 %v6005_v1 }
 0x437   :  { %1823 = vmatpush1.bf16.msra.mxu0 %v6420_v57  ;;  %1864 = vmatpush1.bf16.msra.mxu1 %v6425_v58 }
 0x438   :  { %1824 = vmatprep.subr.bf16.mxu0 %v6434_v59  ;;  %1865 = vmatprep.subr.bf16.mxu1 %v6439_v60 }
 0x43b   :  { %1825 = vmatpush1.bf16.msra.mxu0 %v6444_v61  ;;  %1866 = vmatpush1.bf16.msra.mxu1 %v6449_v62 }
 0x43c   :  { %1826 = vmatprep.subr.bf16.mxu0 %v6458_v63  ;;  %1867 = vmatprep.subr.bf16.mxu1 %v6463_v30 }
 0x43f   :  { %1827 = vmatpush1.bf16.msra.mxu0 %v6468_v33  ;;  %1868 = vmatpush1.bf16.msra.mxu1 %v6473_v35 }
 0x440   :  { %1828 = vmatprep.subr.bf16.mxu0 %v6487_v38  ;;  %1869 = vmatprep.subr.bf16.mxu1 %v6497_v40 }
 0x443   :  { %1829 = vmatpush1.bf16.msra.mxu0 %v6482_v36  ;;  %1870 = vmatpush1.bf16.msra.mxu1 %v6492_v39 }
 0x444   :  { %1830 = vmatprep.subr.bf16.mxu0 %v6502_v41  ;;  %1871 = vmatprep.subr.bf16.mxu1 %v6508_v42 }
 0x447   :  { %1831 = vmatpush1.bf16.msra.mxu0 %v6515_v43  ;;  %1872 = vmatpush1.bf16.msra.mxu1 %v6522_v44 }
 0x448   :  { %1832 = vmatprep.subr.bf16.mxu0 %v6527_v45  ;;  %1873 = vmatprep.subr.bf16.mxu1 %v6533_v46 }
 0x44b   :  { %1833 = vmatpush1.bf16.msra.mxu0 %v6539_v2  ;;  %1874 = vmatpush1.bf16.msra.mxu1 %v6546_v3 }
 0x44c   :  { %1834 = vmatprep.subr.bf16.mxu0 %v6551_v4  ;;  %1875 = vmatprep.subr.bf16.mxu1 %v6557_v5 }
 0x44f   :  { %1835 = vmatpush1.bf16.msra.mxu0 %v6563_v7  ;;  %1876 = vmatpush1.bf16.msra.mxu1 %v6570_v8 }
 0x450   :  { %2137 = vmatprep.subr.bf16.mxu0 %v6386_v0  ;;  %2178 = vmatprep.subr.bf16.mxu1 %v6391_v53 }
 0x505   :  { %v1537_v18 = vpop.f32.mrb[16].mxu0  ;;  %v1578_v19 = vpop.f32.mrb[16].mxu1 }
 0x506   :  { %v1585_v20 = vadd.f32 %v1537_v18, %v1306_v16  ;;  %v1539_v22 = vpop.f32.mrb[17].mxu0  ;;  %v1580_v23 = vpop.f32.mrb[17].mxu1  ;;  %v1587_v49 = vadd.f32 %v1578_v19, %v1308_v37 }
 0x507   :  { %v1586_v24 = vadd.f32 %v1539_v22, %v1307_v17  ;;  %v1541_v25 = vpop.f32.mrb[18].mxu0  ;;  %v1582_v26 = vpop.f32.mrb[18].mxu1  ;;  %v1588_v34 = vadd.f32 %v1580_v23, %v1309_v32 }
 0x508   :  { %v5361_v27 = vmul.f32 -1.442695, %v1585_v20  ;;  %v1542_v28 = vpop.f32.mrb[19].mxu0  ;;  %v1583_v29 = vpop.f32.mrb[19].mxu1 }
 0x509   :  { %v5362_v31 = vmul.f32 -1.442695, %v1586_v24  ;;  %v5363_v47 = vmul.f32 -1.442695, %v1588_v34 }
 0x50a   :  { %5941 = vpow2.f32 %v5361_v27  ;;  %v5366_v27 = vld [vmem:[%s6743_s2 + $0x58] sm:$0xff] }
 0x50b   :  { %5943 = vpow2.f32 %v5362_v31 }
 0x50c   :  { %5945 = vpow2.f32 %v5363_v47 }
 0x50d   :  { %5947 = vtanh.f32 %v1587_v49  ;;  %v1626_v49 = vunpack.c.h.bf16 %v5366_v27 }
 0x514   :  { %v5942_v50 = vpop.eup %5941 }
 0x515   :  { %v5944_v51 = vpop.eup %5943  ;;  %v1592_v52 = vadd.f32 1.0, %v5942_v50 }
 0x516   :  { %v1598_v9 = vadd.f32 1.0, %v5944_v51  ;;  %v5946_v10 = vpop.eup %5945  ;;  %v1625_v51 = vunpack.c.l.bf16 %v5366_v27 }
 0x517   :  { %5949 = vrcp.f32 %v1592_v52  ;;  %v5948_v12 = vpop.eup %5947  ;;  %v1605_v48 = vadd.f32 1.0, %v5946_v10 }
 0x518   :  { %5951 = vrcp.f32 %v1598_v9 }
 0x519   :  { %5953 = vrcp.f32 %v1605_v48 }
 0x521   :  { %v5950_v13 = vpop.eup %5949 }
 0x522   :  { %v5952_v14 = vpop.eup %5951  ;;  %v1609_v15 = vmul.f32 %v5950_v13, %v5948_v12 }
 0x523   :  { %v1608_v16 = vmul.f32 %v5952_v14, %v6584_v11  ;;  %v5954_v18 = vpop.eup %5953  ;;  %v5365_v11 = vld [vmem:[%s6743_s2 + $0x50] sm:$0xff] }
 0x524   :  { %v1623_v22 = vunpack.c.l.bf16 %v5365_v11  ;;  %v1624_v23 = vunpack.c.h.bf16 %v5365_v11 }
 0x525   :  { %v6631_v17 = vadd.f32 %v1609_v15, %v1608_v16 }
 0x527   :  { %5955 = vtanh.f32 %v6631_v17 }
 0x531   :  { %v5956_v19 = vpop.eup %5955 }
 0x532   :  { %v1612_v20 = vmul.f32 %v5956_v19, %v5954_v18 }
 0x534   :  { %v1615_v21 = vpack.c.bf16 %v1612_v20, %v1612_v20 }
 0x536   :  { %5364 = vst [vmem:[%s6745_s4 + $0x10] sm:$0xf] %v1615_v21  ;;  %1853 = vmatmul.mubr.bf16.vlgmr.msra.gmra.mrb[20].mxu0 %v1615_v21  ;;  %1894 = vmatmul.mubr.bf16.vlgmr.msra.gmra.mrb[20].mxu1 %v1615_v21 }
 0x537   :  { %2138 = vmatpush1.bf16.msra.mxu0 %v6396_v6  ;;  %2179 = vmatpush1.bf16.msra.mxu1 %v6401_v54 }
 0x538   :  { %2139 = vmatprep.subr.bf16.mxu0 %v6410_v55  ;;  %2180 = vmatprep.subr.bf16.mxu1 %v6415_v56 }
 0x539   :  { %2169 = vmatprep.mubr.bf16.mxu0 %v6005_v1  ;;  %2210 = vmatprep.mubr.bf16.mxu1 %v6005_v1 }
 0x53b   :  { %2140 = vmatpush1.bf16.msra.mxu0 %v6420_v57  ;;  %2181 = vmatpush1.bf16.msra.mxu1 %v6425_v58 }
 0x53c   :  { %2141 = vmatprep.subr.bf16.mxu0 %v6434_v59  ;;  %2182 = vmatprep.subr.bf16.mxu1 %v6439_v60 }
 0x53f   :  { %2142 = vmatpush1.bf16.msra.mxu0 %v6444_v61  ;;  %2183 = vmatpush1.bf16.msra.mxu1 %v6449_v62 }
 0x540   :  { %2143 = vmatprep.subr.bf16.mxu0 %v6458_v63  ;;  %2184 = vmatprep.subr.bf16.mxu1 %v6463_v30 }
 0x543   :  { %2144 = vmatpush1.bf16.msra.mxu0 %v6468_v33  ;;  %2185 = vmatpush1.bf16.msra.mxu1 %v6473_v35 }
 0x544   :  { %2145 = vmatprep.subr.bf16.mxu0 %v6487_v38  ;;  %2186 = vmatprep.subr.bf16.mxu1 %v6497_v40 }
 0x547   :  { %2146 = vmatpush1.bf16.msra.mxu0 %v6482_v36  ;;  %2187 = vmatpush1.bf16.msra.mxu1 %v6492_v39 }
 0x548   :  { %2147 = vmatprep.subr.bf16.mxu0 %v6502_v41  ;;  %2188 = vmatprep.subr.bf16.mxu1 %v6508_v42 }
 0x54b   :  { %2148 = vmatpush1.bf16.msra.mxu0 %v6515_v43  ;;  %2189 = vmatpush1.bf16.msra.mxu1 %v6522_v44 }
 0x54c   :  { %2149 = vmatprep.subr.bf16.mxu0 %v6527_v45  ;;  %2190 = vmatprep.subr.bf16.mxu1 %v6533_v46 }
 0x54f   :  { %2150 = vmatpush1.bf16.msra.mxu0 %v6539_v2  ;;  %2191 = vmatpush1.bf16.msra.mxu1 %v6546_v3 }
 0x550   :  { %2151 = vmatprep.subr.bf16.mxu0 %v6551_v4  ;;  %2192 = vmatprep.subr.bf16.mxu1 %v6557_v5 }
 0x553   :  { %2152 = vmatpush1.bf16.msra.mxu0 %v6563_v7  ;;  %2193 = vmatpush1.bf16.msra.mxu1 %v6570_v8 }
 0x554   :  { %2454 = vmatprep.subr.bf16.mxu0 %v6386_v0  ;;  %2495 = vmatprep.subr.bf16.mxu1 %v6391_v53 }
 0x609   :  { %v1854_v24 = vpop.f32.mrb[20].mxu0  ;;  %v1895_v25 = vpop.f32.mrb[20].mxu1 }
 0x60a   :  { %v1902_v26 = vadd.f32 %v1854_v24, %v1623_v22  ;;  %v1856_v28 = vpop.f32.mrb[21].mxu0  ;;  %v1897_v29 = vpop.f32.mrb[21].mxu1  ;;  %v1904_v9 = vadd.f32 %v1895_v25, %v1625_v51 }
 0x60b   :  { %v1903_v31 = vadd.f32 %v1856_v28, %v1624_v23  ;;  %v1858_v32 = vpop.f32.mrb[22].mxu0  ;;  %v1899_v0 = vpop.f32.mrb[22].mxu1  ;;  %v1905_v50 = vadd.f32 %v1897_v29, %v1626_v49  ;;  %v5442_v49 = vld [vmem:[%s6743_s2 + $0x78] sm:$0xff] }
 0x60c   :  { %v5399_v34 = vmul.f32 -1.442695, %v1902_v26  ;;  %v1859_v53 = vpop.f32.mrb[23].mxu0  ;;  %v1900_v37 = vpop.f32.mrb[23].mxu1  ;;  %v5441_v32 = vld [vmem:[%s6743_s2 + $0x70] sm:$0xff] }
 0x60d   :  { %v5400_v47 = vmul.f32 -1.442695, %v1903_v31  ;;  %v5401_v52 = vmul.f32 -1.442695, %v1905_v50  ;;  %v2257_v0 = vunpack.c.l.bf16 %v5441_v32 }
 0x60e   :  { %5957 = vpow2.f32 %v5399_v34  ;;  %v2258_v34 = vunpack.c.h.bf16 %v5441_v32 }
 0x60f   :  { %5959 = vpow2.f32 %v5400_v47 }
 0x610   :  { %5961 = vpow2.f32 %v5401_v52 }
 0x611   :  { %5963 = vtanh.f32 %v1904_v9 }
 0x618   :  { %v5958_v10 = vpop.eup %5957 }
 0x619   :  { %v5960_v12 = vpop.eup %5959  ;;  %v1909_v13 = vadd.f32 1.0, %v5958_v10 }
 0x61a   :  { %v1915_v14 = vadd.f32 1.0, %v5960_v12  ;;  %v5962_v15 = vpop.eup %5961 }
 0x61b   :  { %5965 = vrcp.f32 %v1909_v13  ;;  %v5964_v48 = vpop.eup %5963  ;;  %v1922_v20 = vadd.f32 1.0, %v5962_v15 }
 0x61c   :  { %5967 = vrcp.f32 %v1915_v14 }
 0x61d   :  { %5969 = vrcp.f32 %v1922_v20 }
 0x625   :  { %v5966_v16 = vpop.eup %5965 }
 0x626   :  { %v5968_v18 = vpop.eup %5967  ;;  %v1926_v19 = vmul.f32 %v5966_v16, %v5964_v48  ;;  %v2260_v48 = vunpack.c.h.bf16 %v5442_v49 }
 0x627   :  { %v1925_v21 = vmul.f32 %v5968_v18, %v6631_v17  ;;  %v5970_v22 = vpop.eup %5969  ;;  %v2259_v18 = vunpack.c.l.bf16 %v5442_v49 }
 0x629   :  { %v6678_v11 = vadd.f32 %v1926_v19, %v1925_v21 }
 0x62b   :  { %5971 = vtanh.f32 %v6678_v11 }
 0x635   :  { %v5972_v23 = vpop.eup %5971 }
 0x636   :  { %v1929_v24 = vmul.f32 %v5972_v23, %v5970_v22 }
 0x638   :  { %v1932_v25 = vpack.c.bf16 %v1929_v24, %v1929_v24 }
 0x63a   :  { %5402 = vst [vmem:[%s6745_s4 + $0x14] sm:$0xf] %v1932_v25  ;;  %2170 = vmatmul.mubr.bf16.vlgmr.msra.gmra.mrb[24].mxu0 %v1932_v25  ;;  %2211 = vmatmul.mubr.bf16.vlgmr.msra.gmra.mrb[24].mxu1 %v1932_v25 }
 0x63b   :  { %2455 = vmatpush1.bf16.msra.mxu0 %v6396_v6  ;;  %2496 = vmatpush1.bf16.msra.mxu1 %v6401_v54 }
 0x63c   :  { %2456 = vmatprep.subr.bf16.mxu0 %v6410_v55  ;;  %2497 = vmatprep.subr.bf16.mxu1 %v6415_v56 }
 0x63d   :  { %2486 = vmatprep.mubr.bf16.mxu0 %v6005_v1  ;;  %2527 = vmatprep.mubr.bf16.mxu1 %v6005_v1  ;;  %v5403_v1 = vld [vmem:[%s6743_s2 + $0x60] sm:$0xff] }
 0x63e   :  { %v1940_v6 = vunpack.c.l.bf16 %v5403_v1  ;;  %v1941_v54 = vunpack.c.h.bf16 %v5403_v1 }
 0x63f   :  { %2457 = vmatpush1.bf16.msra.mxu0 %v6420_v57  ;;  %2498 = vmatpush1.bf16.msra.mxu1 %v6425_v58  ;;  %v5404_v58 = vld [vmem:[%s6743_s2 + $0x68] sm:$0xff] }
 0x640   :  { %2458 = vmatprep.subr.bf16.mxu0 %v6434_v59  ;;  %2499 = vmatprep.subr.bf16.mxu1 %v6439_v60 }
 0x643   :  { %2459 = vmatpush1.bf16.msra.mxu0 %v6444_v61  ;;  %2500 = vmatpush1.bf16.msra.mxu1 %v6449_v62 }
 0x644   :  { %2460 = vmatprep.subr.bf16.mxu0 %v6458_v63  ;;  %2501 = vmatprep.subr.bf16.mxu1 %v6463_v30 }
 0x647   :  { %2461 = vmatpush1.bf16.msra.mxu0 %v6468_v33  ;;  %2502 = vmatpush1.bf16.msra.mxu1 %v6473_v35 }
 0x648   :  { %2462 = vmatprep.subr.bf16.mxu0 %v6487_v38  ;;  %2503 = vmatprep.subr.bf16.mxu1 %v6497_v40  ;;  %v1943_v38 = vunpack.c.h.bf16 %v5404_v58  ;;  %v1942_v40 = vunpack.c.l.bf16 %v5404_v58 }
 0x64b   :  { %2463 = vmatpush1.bf16.msra.mxu0 %v6482_v36  ;;  %2504 = vmatpush1.bf16.msra.mxu1 %v6492_v39 }
 0x64c   :  { %2464 = vmatprep.subr.bf16.mxu0 %v6502_v41  ;;  %2505 = vmatprep.subr.bf16.mxu1 %v6508_v42 }
 0x64f   :  { %2465 = vmatpush1.bf16.msra.mxu0 %v6515_v43  ;;  %2506 = vmatpush1.bf16.msra.mxu1 %v6522_v44 }
 0x650   :  { %2466 = vmatprep.subr.bf16.mxu0 %v6527_v45  ;;  %2507 = vmatprep.subr.bf16.mxu1 %v6533_v46 }
 0x653   :  { %2467 = vmatpush1.bf16.msra.mxu0 %v6539_v2  ;;  %2508 = vmatpush1.bf16.msra.mxu1 %v6546_v3 }
 0x654   :  { %2468 = vmatprep.subr.bf16.mxu0 %v6551_v4  ;;  %2509 = vmatprep.subr.bf16.mxu1 %v6557_v5 }
 0x657   :  { %2469 = vmatpush1.bf16.msra.mxu0 %v6563_v7  ;;  %2510 = vmatpush1.bf16.msra.mxu1 %v6570_v8 }
 0x70d   :  { %v2171_v55 = vpop.f32.mrb[24].mxu0  ;;  %v2212_v56 = vpop.f32.mrb[24].mxu1 }
 0x70e   :  { %v2219_v57 = vadd.f32 %v2171_v55, %v1940_v6  ;;  %v2173_v59 = vpop.f32.mrb[25].mxu0  ;;  %v2214_v60 = vpop.f32.mrb[25].mxu1  ;;  %v2221_v42 = vadd.f32 %v2212_v56, %v1942_v40 }
 0x70f   :  { %v2220_v61 = vadd.f32 %v2173_v59, %v1941_v54  ;;  %v2175_v62 = vpop.f32.mrb[26].mxu0  ;;  %v2216_v63 = vpop.f32.mrb[26].mxu1  ;;  %v2222_v39 = vadd.f32 %v2214_v60, %v1943_v38 }
 0x710   :  { %v5437_v30 = vmul.f32 -1.442695, %v2219_v57  ;;  %v2176_v33 = vpop.f32.mrb[27].mxu0  ;;  %v2217_v35 = vpop.f32.mrb[27].mxu1 }
 0x711   :  { %v5438_v36 = vmul.f32 -1.442695, %v2220_v61  ;;  %v5439_v41 = vmul.f32 -1.442695, %v2222_v39 }
 0x712   :  { %5973 = vpow2.f32 %v5437_v30 }
 0x713   :  { %5975 = vpow2.f32 %v5438_v36 }
 0x714   :  { %5977 = vpow2.f32 %v5439_v41 }
 0x715   :  { %5979 = vtanh.f32 %v2221_v42 }
 0x71c   :  { %v5974_v43 = vpop.eup %5973 }
 0x71d   :  { %v5976_v44 = vpop.eup %5975  ;;  %v2226_v45 = vadd.f32 1.0, %v5974_v43 }
 0x71e   :  { %v2232_v46 = vadd.f32 1.0, %v5976_v44  ;;  %v5978_v2 = vpop.eup %5977 }
 0x71f   :  { %5981 = vrcp.f32 %v2226_v45  ;;  %v5980_v3 = vpop.eup %5979  ;;  %v2239_v8 = vadd.f32 1.0, %v5978_v2 }
 0x720   :  { %5983 = vrcp.f32 %v2232_v46 }
 0x721   :  { %5985 = vrcp.f32 %v2239_v8 }
 0x729   :  { %v5982_v4 = vpop.eup %5981 }
 0x72a   :  { %v5984_v5 = vpop.eup %5983  ;;  %v2243_v7 = vmul.f32 %v5982_v4, %v5980_v3 }
 0x72b   :  { %v2242_v17 = vmul.f32 %v5984_v5, %v6678_v11  ;;  %v5986_v27 = vpop.eup %5985 }
 0x72d   :  { %v2244_v26 = vadd.f32 %v2243_v7, %v2242_v17 }
 0x72f   :  { %5987 = vtanh.f32 %v2244_v26 }
 0x739   :  { %v5988_v28 = vpop.eup %5987 }
 0x73a   :  { %v2246_v29 = vmul.f32 %v5988_v28, %v5986_v27 }
 0x73c   :  { %v2249_v31 = vpack.c.bf16 %v2246_v29, %v2246_v29 }
 0x73e   :  { %5440 = vst [vmem:[%s6745_s4 + $0x18] sm:$0xf] %v2249_v31  ;;  %2487 = vmatmul.mubr.bf16.vlgmr.msra.gmra.mrb[28].mxu0 %v2249_v31  ;;  %2528 = vmatmul.mubr.bf16.vlgmr.msra.gmra.mrb[28].mxu1 %v2249_v31 }
 0x811   :  { %v2488_v53 = vpop.f32.mrb[28].mxu0  ;;  %v2529_v37 = vpop.f32.mrb[28].mxu1 }
 0x812   :  { %v2536_v47 = vadd.f32 %v2488_v53, %v2257_v0  ;;  %v2490_v50 = vpop.f32.mrb[29].mxu0  ;;  %v2531_v51 = vpop.f32.mrb[29].mxu1  ;;  %v2538_v20 = vadd.f32 %v2529_v37, %v2259_v18 }
 0x813   :  { %v2537_v52 = vadd.f32 %v2490_v50, %v2258_v34  ;;  %v2492_v9 = vpop.f32.mrb[30].mxu0  ;;  %v2533_v10 = vpop.f32.mrb[30].mxu1  ;;  %v2539_v16 = vadd.f32 %v2531_v51, %v2260_v48 }
 0x814   :  { %v5475_v12 = vmul.f32 -1.442695, %v2536_v47  ;;  %v2493_v13 = vpop.f32.mrb[31].mxu0  ;;  %v2534_v14 = vpop.f32.mrb[31].mxu1 }
 0x815   :  { %v5476_v15 = vmul.f32 -1.442695, %v2537_v52  ;;  %v5477_v19 = vmul.f32 -1.442695, %v2539_v16 }
 0x816   :  { %5989 = vpow2.f32 %v5475_v12 }
 0x817   :  { %5991 = vpow2.f32 %v5476_v15 }
 0x818   :  { %5993 = vpow2.f32 %v5477_v19 }
 0x819   :  { %5995 = vtanh.f32 %v2538_v20 }
 0x820   :  { %v5990_v21 = vpop.eup %5989 }
 0x821   :  { %v5992_v11 = vpop.eup %5991  ;;  %v2543_v22 = vadd.f32 1.0, %v5990_v21 }
 0x822   :  { %v2549_v23 = vadd.f32 1.0, %v5992_v11  ;;  %v5994_v24 = vpop.eup %5993 }
 0x823   :  { %5997 = vrcp.f32 %v2543_v22  ;;  %v5996_v25 = vpop.eup %5995  ;;  %v2556_v55 = vadd.f32 1.0, %v5994_v24 }
 0x824   :  { %5999 = vrcp.f32 %v2549_v23 }
 0x825   :  { %6001 = vrcp.f32 %v2556_v55 }
 0x82d   :  { %v5998_v1 = vpop.eup %5997 }
 0x82e   :  { %v6000_v6 = vpop.eup %5999  ;;  %v2560_v54 = vmul.f32 %v5998_v1, %v5996_v25 }
 0x82f   :  { %v2559_v56 = vmul.f32 %v6000_v6, %v2244_v26  ;;  %v6002_v58 = vpop.eup %6001 }
 0x831   :  { %v2561_v57 = vadd.f32 %v2560_v54, %v2559_v56 }
 0x833   :  { %6003 = vtanh.f32 %v2561_v57  ;;  %5165 = vst [vmem:[%s6746_s6] sm:$0xff] %v2561_v57 }
 0x83d   :  { %v6004_v59 = vpop.eup %6003 }
 0x83e   :  { %v2563_v60 = vmul.f32 %v6004_v59, %v6002_v58 }
 0x840   :  { %v2566_v61 = vpack.c.bf16 %v2563_v60, %v2563_v60  ;;  %5163 = vst [vmem:[%s6747_s5] sm:$0xff] %v2563_v60 }
 0x842   :  { %5478 = vst [vmem:[%s6745_s4 + $0x1c] sm:$0xf] %v2566_v61 }

</bundles_post_ra>
